<compile_context>
chip_gen: v7x
topology: tpu7x:2x2x1
jax: 0.10.0
libtpu: 0.0.40
codegen_flags: <defaults>
</compile_context>

<pallas_src>
import itertools
import math

import jax
import jax.numpy as jnp
import numpy as np
from jax.experimental import pallas as pl
from jax.experimental.pallas import tpu as pltpu

# ----------------------------- configuration --------------------------------
NUM_ZBINS = 2
NS = 2                                   # num_samples
NUM_ELLS = 2
NUM_KBINS = 16
NC = 4                                   # num_cosmo_params
NBIAS = 2                                # num_bias_params
MLP_DIMS = [32, 32, 32]                  # all equal so weights stack uniformly
NB = len(MLP_DIMS) - 1                   # num_mlp_blocks
NL = 2                                   # num_block_layers
USE_SKIP = True
D = 8                                    # split_dim
S = 4                                    # split_size
NT = 1                                   # num_transformer_blocks
BATCH = 2

H = MLP_DIMS[0]                          # 32
E = S * D                                # embedding_dim = 32
O = NUM_ELLS * NUM_KBINS                 # output_dim = 32
NUM_SPECTRA = NS + math.comb(NS, 2)      # 3
N_NET = NUM_ZBINS * NUM_SPECTRA          # 6
F_IN = NC + 2 * NBIAS                    # 8
GI = N_NET * F_IN                        # 48   flat (padded-from) input width
GW = N_NET * H                           # 192  flat activation / slab width

assert all(d == H for d in MLP_DIMS) and E == H and O == H, \
    "fused weight slab requires equal hidden/embedding/output widths"

# cross-spectra flag per network, in ModuleList order (z outer, (s1<=s2) inner)
CROSS_FLAGS = []
for _z in range(NUM_ZBINS):
    for _s1, _s2 in itertools.product(range(NS), repeat=2):
        if _s1 > _s2:
            continue
        CROSS_FLAGS.append(_s1 != _s2)


# ------------------------ fused-slab index tables -----------------------------
def _make_index_tables():
    w_idx, v_idx = {}, {}

    def aw(key):
        w_idx[key] = len(w_idx)

    def av(key):
        v_idx[key] = len(v_idx)

    aw("w_in"); av("b_in")
    for ib in range(NB):
        for il in range(NL):
            aw(("w_lay", ib, il))
            av(("b_lay", ib, il)); av(("a_beta", ib, il)); av(("a_gamma", ib, il))
        aw(("w_bo", ib)); av(("b_bo", ib))
        aw(("w_sk", ib)); av(("b_sk", ib))
    aw("w_emb"); av("b_emb")
    for it in range(NT):
        for nm in ("wq", "wk", "wv", "wo", "wf1", "wf2"):
            aw((nm, it))
        for nm in ("bq", "bk", "bv", "bo", "ln1_g", "ln1_b",
                   "ln2_g", "ln2_b", "bf1", "bf2", "t_beta", "t_gamma"):
            av((nm, it))
    aw("w_out"); av("b_out")
    aw("avg_d")                          # constant: per-token (D-group) mean matrix
    for o in range(1, S):
        aw(("perm", o))                  # constant: token-shift permutation by o
    return w_idx, v_idx


W_IDX, V_IDX = _make_index_tables()
NW, NV = len(W_IDX), len(V_IDX)


# ------------------------------ shared math ----------------------------------
def _dot(a, b):
    # used inside the Pallas kernel (Mosaic MXU matmul, f32 accumulation)
    return jnp.dot(a, b, preferred_element_type=jnp.float32)


def _dot_hp(a, b):
    # used by the pure-JAX reference (force exact-f32 XLA matmul)
    return jnp.dot(a, b, preferred_element_type=jnp.float32,
                   precision=jax.lax.Precision.HIGHEST)


def _act(x, beta, gamma):
    # learnable activation: (gamma + sigmoid(beta*x)*(1-gamma)) * x
    sig = 1.0 / (1.0 + jnp.exp(-beta * x))
    return (gamma + sig * (1.0 - gamma)) * x


def _layernorm(x, g, b, eps=1e-5):
    m = jnp.mean(x, axis=-1, keepdims=True)
    v = jnp.mean((x - m) ** 2, axis=-1, keepdims=True)
    return (x - m) * jax.lax.rsqrt(v + eps) * g + b


# --------------------- pure-JAX per-network reference -------------------------
def single_forward(x, p):
    """Reference forward of one single_transformer (un-fused, pure JAX)."""
    h = _dot_hp(x, p["w_in"][...]) + p["b_in"][...]

    for ib in range(NB):
        y = h
        for il in range(NL):
            y = _dot_hp(y, p["w_lay"][ib, il]) + p["b_lay"][ib, il]
            y = _act(y, p["a_beta"][ib, il], p["a_gamma"][ib, il])
        y = _dot_hp(y, p["w_bo"][ib]) + p["b_bo"][ib]
        if USE_SKIP:
            y = y + _dot_hp(h, p["w_sk"][ib]) + p["b_sk"][ib]
        h = y

    e = _dot_hp(h, p["w_emb"][...]) + p["b_emb"][...]

    inv_sqrt_d = 1.0 / math.sqrt(D)
    for it in range(NT):
        toks = [e[:, s * D:(s + 1) * D] for s in range(S)]
        q = [_dot_hp(t, p["wq"][it]) + p["bq"][it] for t in toks]
        k = [_dot_hp(t, p["wk"][it]) + p["bk"][it] for t in toks]
        v = [_dot_hp(t, p["wv"][it]) + p["bv"][it] for t in toks]
        new_toks = []
        for si in range(S):
            scores = jnp.concatenate(
                [jnp.sum(q[si] * k[ti], axis=-1, keepdims=True) for ti in range(S)],
                axis=-1) * inv_sqrt_d
            m = jnp.max(scores, axis=-1, keepdims=True)
            pw = jnp.exp(scores - m)
            pw = pw / jnp.sum(pw, axis=-1, keepdims=True)
            att = pw[:, 0:1] * v[0]
            for ti in range(1, S):
                att = att + pw[:, ti:ti + 1] * v[ti]
            att = _dot_hp(att, p["wo"][it]) + p["bo"][it]
            h1 = _layernorm(toks[si] + att, p["ln1_g"][it], p["ln1_b"][it])
            ff = jnp.maximum(_dot_hp(h1, p["wf1"][it]) + p["bf1"][it], 0.0)
            ff = _dot_hp(ff, p["wf2"][it]) + p["bf2"][it]
            new_toks.append(_layernorm(h1 + ff, p["ln2_g"][it], p["ln2_b"][it]))
        e = jnp.concatenate(new_toks, axis=-1)
        e = _act(e, p["t_beta"][it], p["t_gamma"][it])

    return _dot_hp(e, p["w_out"][...]) + p["b_out"][...]


# ------------------------------ Pallas kernel --------------------------------
def stacked_kernel(x_ref, w_ref, v_ref, o_ref):
    def Wm(key):                     # (GW, GW) fused block-diagonal weight
        return w_ref[W_IDX[key]]

    def Vb(key):                     # (1, GW) fused bias / gain vector
        return v_ref[V_IDX[key]]

    def group_layernorm(x, g, b, avg_d, eps=1e-5):
        # per-token LayerNorm over D, via the block-diagonal D-group mean matrix
        m = _dot(x, avg_d)
        var = _dot((x - m) * (x - m), avg_d)
        return (x - m) * jax.lax.rsqrt(var + eps) * g + b

    x = x_ref[...]                   # (B, GW), zero-padded beyond GI columns

    # ---- input layer + ResNet MLP blocks (block-diagonal over networks) ----
    h = _dot(x, Wm("w_in")) + Vb("b_in")
    for ib in range(NB):
        y = h
        for il in range(NL):
            y = _dot(y, Wm(("w_lay", ib, il))) + Vb(("b_lay", ib, il))
            y = _act(y, Vb(("a_beta", ib, il)), Vb(("a_gamma", ib, il)))
        y = _dot(y, Wm(("w_bo", ib))) + Vb(("b_bo", ib))
        if USE_SKIP:
            y = y + _dot(h, Wm(("w_sk", ib))) + Vb(("b_sk", ib))
        h = y

    # ---- embedding ----------------------------------------------------------
    e = _dot(h, Wm("w_emb")) + Vb("b_emb")

    # ---- transformer encoder blocks (token-shift formulation, all 2-D) ------
    avg_d = Wm("avg_d")              # D-group mean matrix (constant)
    sqrt_d = math.sqrt(D)
    for it in range(NT):
        q = _dot(e, Wm(("wq", it))) + Vb(("bq", it))
        k = _dot(e, Wm(("wk", it))) + Vb(("bk", it))
        v = _dot(e, Wm(("wv", it))) + Vb(("bv", it))

        # shift o places key/value token (s+o) mod S of the same network under
        # query token s, so scores / softmax / weighted sum become elementwise
        # ops + D-group means — no reshapes, slices or concatenates.
        k_sh = [k] + [_dot(k, Wm(("perm", o))) for o in range(1, S)]
        v_sh = [v] + [_dot(v, Wm(("perm", o))) for o in range(1, S)]

        # scores[.., s -> (s+o)%S], replicated across each token's D lanes
        sc = [_dot(q * k_sh[o], avg_d) * sqrt_d for o in range(S)]
        m = sc[0]
        for o in range(1, S):
            m = jnp.maximum(m, sc[o])
        pw = [jnp.exp(sc[o] - m) for o in range(S)]
        denom = pw[0]
        for o in range(1, S):
            denom = denom + pw[o]
        inv_denom = 1.0 / denom

        att = (pw[0] * inv_denom) * v_sh[0]
        for o in range(1, S):
            att = att + (pw[o] * inv_denom) * v_sh[o]
        att = _dot(att, Wm(("wo", it))) + Vb(("bo", it))

        h1 = group_layernorm(e + att, Vb(("ln1_g", it)), Vb(("ln1_b", it)), avg_d)
        ff = jnp.maximum(_dot(h1, Wm(("wf1", it))) + Vb(("bf1", it)), 0.0)
        ff = _dot(ff, Wm(("wf2", it))) + Vb(("bf2", it))
        e = group_layernorm(h1 + ff, Vb(("ln2_g", it)), Vb(("ln2_b", it)), avg_d)
        e = _act(e, Vb(("t_beta", it)), Vb(("t_gamma", it)))

    # ---- output layer (lane-dense (B, N_NET*O) slab) -------------------------
    o_ref[...] = _dot(e, Wm("w_out")) + Vb("b_out")


# --------------------- wrapper-side parameter fusion --------------------------
def _block_diag(w):
    # (n, a, b) -> (n*a, n*b) block-diagonal
    n, a, b = w.shape
    eye = jnp.eye(n, dtype=w.dtype)
    return (eye[:, None, :, None] * w[:, :, None, :]).reshape(n * a, n * b)


def _token_block_diag(w):
    # per-token (D,D) weight shared across the S tokens of each network:
    # (N_NET, D, D) -> (GW, GW) with N_NET*S diagonal D-blocks.
    return _block_diag(jnp.repeat(w, S, axis=0))


def _token_tile(vec):
    # per-token (D,) vector shared across the S tokens of each network -> (GW,)
    return jnp.tile(vec, (1, S)).reshape(-1)


def _avg_d_matrix():
    blk = np.arange(GW) // D
    return jnp.asarray((blk[:, None] == blk[None, :]).astype(np.float32) / D)


def _token_perm(offset):
    # e @ P places key/value token (s+offset) % S of the same network under
    # query token s:  P[src, dst] = 1  where dst=(n,s,d), src=(n,(s+offset)%S,d)
    c = np.arange(GW)
    n, s, d = c // E, (c % E) // D, c % D
    src = n * E + ((s + offset) % S) * D + d
    perm = np.zeros((GW, GW), np.float32)
    perm[src, c] = 1.0
    return jnp.asarray(perm)


def build_fused_params(p):
    """Fuse per-network parameter stacks into two VMEM-resident slabs:
    a (NW, GW, GW) block-diagonal weight slab and a (NV, 1, GW) vector slab."""
    w = [None] * NW
    v = [None] * NV

    w[W_IDX["w_in"]] = jnp.pad(_block_diag(p["w_in"]), ((0, GW - GI), (0, 0)))
    v[V_IDX["b_in"]] = p["b_in"][:, 0, :].reshape(-1)
    for ib in range(NB):
        for il in range(NL):
            w[W_IDX[("w_lay", ib, il)]] = _block_diag(p["w_lay"][:, ib, il])
            v[V_IDX[("b_lay", ib, il)]] = p["b_lay"][:, ib, il, 0, :].reshape(-1)
            v[V_IDX[("a_beta", ib, il)]] = p["a_beta"][:, ib, il, 0, :].reshape(-1)
            v[V_IDX[("a_gamma", ib, il)]] = p["a_gamma"][:, ib, il, 0, :].reshape(-1)
        w[W_IDX[("w_bo", ib)]] = _block_diag(p["w_bo"][:, ib])
        v[V_IDX[("b_bo", ib)]] = p["b_bo"][:, ib, 0, :].reshape(-1)
        w[W_IDX[("w_sk", ib)]] = _block_diag(p["w_sk"][:, ib])
        v[V_IDX[("b_sk", ib)]] = p["b_sk"][:, ib, 0, :].reshape(-1)
    w[W_IDX["w_emb"]] = _block_diag(p["w_emb"])
    v[V_IDX["b_emb"]] = p["b_emb"][:, 0, :].reshape(-1)
    for it in range(NT):
        for nm in ("wq", "wk", "wv", "wo", "wf1", "wf2"):
            w[W_IDX[(nm, it)]] = _token_block_diag(p[nm][:, it])
        for nm in ("bq", "bk", "bv", "bo", "ln1_g", "ln1_b",
                   "ln2_g", "ln2_b", "bf1", "bf2"):
            v[V_IDX[(nm, it)]] = _token_tile(p[nm][:, it, 0, :])
        v[V_IDX[("t_beta", it)]] = p["t_beta"][:, it, 0, :].reshape(-1)
        v[V_IDX[("t_gamma", it)]] = p["t_gamma"][:, it, 0, :].reshape(-1)
    w[W_IDX["w_out"]] = _block_diag(p["w_out"])
    v[V_IDX["b_out"]] = p["b_out"][:, 0, :].reshape(-1)
    w[W_IDX["avg_d"]] = _avg_d_matrix()
    for o in range(1, S):
        w[W_IDX[("perm", o)]] = _token_perm(o)

    assert all(a is not None for a in w) and all(a is not None for a in v)
    w_slab = jnp.stack(w).astype(jnp.float32)                   # (NW, GW, GW)
    v_slab = jnp.stack(v).astype(jnp.float32).reshape(NV, 1, GW)
    return w_slab, v_slab


def organize_parameters(raw):
    """JAX port of stacked_transformer.organize_parameters."""
    b = raw.shape[0]
    org = jnp.zeros((b, N_NET, F_IN), jnp.float32)
    org = org.at[:, :, :NC].set(raw[:, :NC][:, None, :])
    it = 0
    iterate = NS * NUM_ZBINS
    for z in range(NUM_ZBINS):
        for s1, s2 in itertools.product(range(NS), repeat=2):
            if s1 > s2:
                continue
            idx1 = z * NS + s1
            idx2 = z * NS + s2
            org = org.at[:, it, NC:NC + NBIAS].set(raw[:, NC + idx1::iterate])
            org = org.at[:, it, NC + NBIAS:NC + 2 * NBIAS].set(raw[:, NC + idx2::iterate])
            it += 1
    return org


@jax.jit
def stacked_transformer_forward(raw_input, w_slab, v_slab):
    b = raw_input.shape[0]
    organized = organize_parameters(raw_input)             # (B, N_NET, F_IN)
    x = organized.reshape(b, GI)
    x = jnp.pad(x, ((0, 0), (0, GW - GI)))                 # lane-dense, matches padded w_in
    out = pl.pallas_call(
        stacked_kernel,
        out_shape=jax.ShapeDtypeStruct((b, GW), jnp.float32),
        compiler_params=pltpu.CompilerParams(vmem_limit_bytes=32 * 1024 * 1024),
    )(x, w_slab, v_slab)
    # columns are n*O + o with n = z*NUM_SPECTRA + ps -> (B, spectra, zbins, O)
    out = out.reshape(b, NUM_ZBINS, NUM_SPECTRA, O)
    return jnp.transpose(out, (0, 2, 1, 3))


# --------------------------- parameter construction --------------------------
def init_stacked_params(key):
    keys = iter(jax.random.split(key, 40))
    p = {}

    def w(shape, fan_in):
        return jax.random.normal(next(keys), shape, jnp.float32) / math.sqrt(fan_in)

    def b(shape):
        return jax.random.normal(next(keys), shape, jnp.float32) * 0.01

    p["w_in"] = w((N_NET, F_IN, H), F_IN)
    p["b_in"] = b((N_NET, 1, H))
    p["w_lay"] = w((N_NET, NB, NL, H, H), H)
    p["b_lay"] = b((N_NET, NB, NL, 1, H))
    p["a_beta"] = jax.random.normal(next(keys), (N_NET, NB, NL, 1, H), jnp.float32)
    p["a_gamma"] = jax.random.normal(next(keys), (N_NET, NB, NL, 1, H), jnp.float32)
    p["w_bo"] = w((N_NET, NB, H, H), H)
    p["b_bo"] = b((N_NET, NB, 1, H))
    p["w_sk"] = w((N_NET, NB, H, H), H)
    p["b_sk"] = b((N_NET, NB, 1, H))
    p["w_emb"] = w((N_NET, H, E), H)
    p["b_emb"] = b((N_NET, 1, E))
    for nm in ["wq", "wk", "wv", "wo", "wf1", "wf2"]:
        p[nm] = w((N_NET, NT, D, D), D)
    for nm in ["bq", "bk", "bv", "bo", "bf1", "bf2"]:
        p[nm] = b((N_NET, NT, 1, D))
    p["ln1_g"] = jnp.ones((N_NET, NT, 1, D), jnp.float32)
    p["ln1_b"] = jnp.zeros((N_NET, NT, 1, D), jnp.float32)
    p["ln2_g"] = jnp.ones((N_NET, NT, 1, D), jnp.float32)
    p["ln2_b"] = jnp.zeros((N_NET, NT, 1, D), jnp.float32)
    p["t_beta"] = jax.random.normal(next(keys), (N_NET, NT, 1, E), jnp.float32)
    p["t_gamma"] = jax.random.normal(next(keys), (N_NET, NT, 1, E), jnp.float32)
    p["w_out"] = w((N_NET, E, O), E)
    p["b_out"] = b((N_NET, 1, O))

    # non-cross-spectra networks drop the last NBIAS inputs before their input
    # Linear -> equivalent to zeroing the corresponding weight rows.
    mask = jnp.array(
        [[1.0] * (NC + NBIAS) + ([1.0] * NBIAS if cf else [0.0] * NBIAS)
         for cf in CROSS_FLAGS], jnp.float32)                 # (N_NET, F_IN)
    p["w_in"] = p["w_in"] * mask[:, :, None]
    return p


# ---------------------------------- main --------------------------------------
if __name__ == "__main__":
    key = jax.random.PRNGKey(0)
    kp, kx = jax.random.split(key)
    params = init_stacked_params(kp)
    raw = jax.random.normal(kx, (BATCH, NC + NBIAS * NS * NUM_ZBINS), jnp.float32)

    w_slab, v_slab = build_fused_params(params)
    out = stacked_transformer_forward(raw, w_slab, v_slab)
    out = jax.block_until_ready(out)
    assert out.shape == (BATCH, NUM_SPECTRA, NUM_ZBINS, O), out.shape

    # pure-JAX per-network reference (original un-fused formulation, no Pallas)
    organized = organize_parameters(raw)
    x_t = jnp.transpose(organized, (1, 0, 2))
    refs = []
    for n in range(N_NET):
        pn = {name: val[n] for name, val in params.items()}
        refs.append(single_forward(x_t[n], pn))
    ref = jnp.stack(refs).reshape(NUM_ZBINS, NUM_SPECTRA, BATCH, O)
    ref = jnp.transpose(ref, (2, 1, 0, 3))

    # tolerance covers MXU f32-pass rounding differences between the fused
    # block-diagonal kernel path and the exact-precision per-network reference.
    max_err = float(jnp.max(jnp.abs(out - ref)))
    assert max_err < 2e-2, f"kernel/reference mismatch: max abs err = {max_err}"
    print("KERNEL_OK")
</pallas_src>

<mosaic_0001>
module attributes {stable_mosaic.version = 11 : i64} {
  func.func @stacked_kernel(%arg0: memref<2x192xf32, #tpu.memory_space<vmem>>, %arg1: memref<21x192x192xf32, #tpu.memory_space<vmem>>, %arg2: memref<31x1x192xf32, #tpu.memory_space<vmem>>, %arg3: memref<2x192xf32, #tpu.memory_space<vmem>>) attributes {dimension_semantics = [], scalar_prefetch = 0 : i64, scratch_operands = 0 : i64, tpu.core_type = #tpu.core_type<tc>} {
    %c0 = arith.constant 0 : index
    %c0_0 = arith.constant 0 : index
    %0 = vector.load %arg0[%c0, %c0_0] : memref<2x192xf32, #tpu.memory_space<vmem>>, vector<2x192xf32>
    %c0_1 = arith.constant 0 : index
    %c0_2 = arith.constant 0 : index
    %c0_3 = arith.constant 0 : index
    %1 = vector.load %arg1[%c0_1, %c0_2, %c0_3] : memref<21x192x192xf32, #tpu.memory_space<vmem>>, vector<1x192x192xf32>
    %2 = vector.shape_cast %1 : vector<1x192x192xf32> to vector<192x192xf32>
    %cst = arith.constant dense<0.000000e+00> : vector<2x192xf32>
    %3 = tpu.matmul %0, %2, %cst {dimension_numbers = #tpu.dot_dimension_numbers<[1], [0], [0], [1], [0, 0, 1, 1], [], []>} : vector<2x192xf32>, vector<192x192xf32>, vector<2x192xf32> -> vector<2x192xf32>
    %c0_4 = arith.constant 0 : index
    %c0_5 = arith.constant 0 : index
    %c0_6 = arith.constant 0 : index
    %4 = vector.load %arg2[%c0_4, %c0_5, %c0_6] : memref<31x1x192xf32, #tpu.memory_space<vmem>>, vector<1x1x192xf32>
    %5 = vector.shape_cast %4 : vector<1x1x192xf32> to vector<1x192xf32>
    %6 = vector.broadcast %5 : vector<1x192xf32> to vector<2x192xf32>
    %7 = arith.addf %3, %6 : vector<2x192xf32>
    %c1 = arith.constant 1 : index
    %c0_7 = arith.constant 0 : index
    %c0_8 = arith.constant 0 : index
    %8 = vector.load %arg1[%c1, %c0_7, %c0_8] : memref<21x192x192xf32, #tpu.memory_space<vmem>>, vector<1x192x192xf32>
    %9 = vector.shape_cast %8 : vector<1x192x192xf32> to vector<192x192xf32>
    %cst_9 = arith.constant dense<0.000000e+00> : vector<2x192xf32>
    %10 = tpu.matmul %7, %9, %cst_9 {dimension_numbers = #tpu.dot_dimension_numbers<[1], [0], [0], [1], [0, 0, 1, 1], [], []>} : vector<2x192xf32>, vector<192x192xf32>, vector<2x192xf32> -> vector<2x192xf32>
    %c1_10 = arith.constant 1 : index
    %c0_11 = arith.constant 0 : index
    %c0_12 = arith.constant 0 : index
    %11 = vector.load %arg2[%c1_10, %c0_11, %c0_12] : memref<31x1x192xf32, #tpu.memory_space<vmem>>, vector<1x1x192xf32>
    %12 = vector.shape_cast %11 : vector<1x1x192xf32> to vector<1x192xf32>
    %13 = vector.broadcast %12 : vector<1x192xf32> to vector<2x192xf32>
    %14 = arith.addf %10, %13 : vector<2x192xf32>
    %c2 = arith.constant 2 : index
    %c0_13 = arith.constant 0 : index
    %c0_14 = arith.constant 0 : index
    %15 = vector.load %arg2[%c2, %c0_13, %c0_14] : memref<31x1x192xf32, #tpu.memory_space<vmem>>, vector<1x1x192xf32>
    %16 = vector.shape_cast %15 : vector<1x1x192xf32> to vector<1x192xf32>
    %c3 = arith.constant 3 : index
    %c0_15 = arith.constant 0 : index
    %c0_16 = arith.constant 0 : index
    %17 = vector.load %arg2[%c3, %c0_15, %c0_16] : memref<31x1x192xf32, #tpu.memory_space<vmem>>, vector<1x1x192xf32>
    %18 = vector.shape_cast %17 : vector<1x1x192xf32> to vector<1x192xf32>
    %cst_17 = arith.constant 0.000000e+00 : f32
    %19 = vector.broadcast %cst_17 : f32 to vector<1x192xf32>
    %20 = arith.subf %19, %16 : vector<1x192xf32>
    %21 = vector.broadcast %20 : vector<1x192xf32> to vector<2x192xf32>
    %22 = arith.mulf %21, %14 : vector<2x192xf32>
    %23 = math.exp %22 : vector<2x192xf32>
    %cst_18 = arith.constant 1.000000e+00 : f32
    %24 = vector.broadcast %cst_18 : f32 to vector<2x192xf32>
    %25 = arith.addf %24, %23 : vector<2x192xf32>
    %cst_19 = arith.constant 1.000000e+00 : f32
    %26 = vector.broadcast %cst_19 : f32 to vector<2x192xf32>
    %27 = arith.divf %26, %25 : vector<2x192xf32>
    %cst_20 = arith.constant 1.000000e+00 : f32
    %28 = vector.broadcast %cst_20 : f32 to vector<1x192xf32>
    %29 = arith.subf %28, %18 : vector<1x192xf32>
    %30 = vector.broadcast %29 : vector<1x192xf32> to vector<2x192xf32>
    %31 = arith.mulf %27, %30 : vector<2x192xf32>
    %32 = vector.broadcast %18 : vector<1x192xf32> to vector<2x192xf32>
    %33 = arith.addf %32, %31 : vector<2x192xf32>
    %34 = arith.mulf %33, %14 : vector<2x192xf32>
    %c2_21 = arith.constant 2 : index
    %c0_22 = arith.constant 0 : index
    %c0_23 = arith.constant 0 : index
    %35 = vector.load %arg1[%c2_21, %c0_22, %c0_23] : memref<21x192x192xf32, #tpu.memory_space<vmem>>, vector<1x192x192xf32>
    %36 = vector.shape_cast %35 : vector<1x192x192xf32> to vector<192x192xf32>
    %cst_24 = arith.constant dense<0.000000e+00> : vector<2x192xf32>
    %37 = tpu.matmul %34, %36, %cst_24 {dimension_numbers = #tpu.dot_dimension_numbers<[1], [0], [0], [1], [0, 0, 1, 1], [], []>} : vector<2x192xf32>, vector<192x192xf32>, vector<2x192xf32> -> vector<2x192xf32>
    %c4 = arith.constant 4 : index
    %c0_25 = arith.constant 0 : index
    %c0_26 = arith.constant 0 : index
    %38 = vector.load %arg2[%c4, %c0_25, %c0_26] : memref<31x1x192xf32, #tpu.memory_space<vmem>>, vector<1x1x192xf32>
    %39 = vector.shape_cast %38 : vector<1x1x192xf32> to vector<1x192xf32>
    %40 = vector.broadcast %39 : vector<1x192xf32> to vector<2x192xf32>
    %41 = arith.addf %37, %40 : vector<2x192xf32>
    %c5 = arith.constant 5 : index
    %c0_27 = arith.constant 0 : index
    %c0_28 = arith.constant 0 : index
    %42 = vector.load %arg2[%c5, %c0_27, %c0_28] : memref<31x1x192xf32, #tpu.memory_space<vmem>>, vector<1x1x192xf32>
    %43 = vector.shape_cast %42 : vector<1x1x192xf32> to vector<1x192xf32>
    %c6 = arith.constant 6 : index
    %c0_29 = arith.constant 0 : index
    %c0_30 = arith.constant 0 : index
    %44 = vector.load %arg2[%c6, %c0_29, %c0_30] : memref<31x1x192xf32, #tpu.memory_space<vmem>>, vector<1x1x192xf32>
    %45 = vector.shape_cast %44 : vector<1x1x192xf32> to vector<1x192xf32>
    %cst_31 = arith.constant 0.000000e+00 : f32
    %46 = vector.broadcast %cst_31 : f32 to vector<1x192xf32>
    %47 = arith.subf %46, %43 : vector<1x192xf32>
    %48 = vector.broadcast %47 : vector<1x192xf32> to vector<2x192xf32>
    %49 = arith.mulf %48, %41 : vector<2x192xf32>
    %50 = math.exp %49 : vector<2x192xf32>
    %cst_32 = arith.constant 1.000000e+00 : f32
    %51 = vector.broadcast %cst_32 : f32 to vector<2x192xf32>
    %52 = arith.addf %51, %50 : vector<2x192xf32>
    %cst_33 = arith.constant 1.000000e+00 : f32
    %53 = vector.broadcast %cst_33 : f32 to vector<2x192xf32>
    %54 = arith.divf %53, %52 : vector<2x192xf32>
    %cst_34 = arith.constant 1.000000e+00 : f32
    %55 = vector.broadcast %cst_34 : f32 to vector<1x192xf32>
    %56 = arith.subf %55, %45 : vector<1x192xf32>
    %57 = vector.broadcast %56 : vector<1x192xf32> to vector<2x192xf32>
    %58 = arith.mulf %54, %57 : vector<2x192xf32>
    %59 = vector.broadcast %45 : vector<1x192xf32> to vector<2x192xf32>
    %60 = arith.addf %59, %58 : vector<2x192xf32>
    %61 = arith.mulf %60, %41 : vector<2x192xf32>
    %c3_35 = arith.constant 3 : index
    %c0_36 = arith.constant 0 : index
    %c0_37 = arith.constant 0 : index
    %62 = vector.load %arg1[%c3_35, %c0_36, %c0_37] : memref<21x192x192xf32, #tpu.memory_space<vmem>>, vector<1x192x192xf32>
    %63 = vector.shape_cast %62 : vector<1x192x192xf32> to vector<192x192xf32>
    %cst_38 = arith.constant dense<0.000000e+00> : vector<2x192xf32>
    %64 = tpu.matmul %61, %63, %cst_38 {dimension_numbers = #tpu.dot_dimension_numbers<[1], [0], [0], [1], [0, 0, 1, 1], [], []>} : vector<2x192xf32>, vector<192x192xf32>, vector<2x192xf32> -> vector<2x192xf32>
    %c7 = arith.constant 7 : index
    %c0_39 = arith.constant 0 : index
    %c0_40 = arith.constant 0 : index
    %65 = vector.load %arg2[%c7, %c0_39, %c0_40] : memref<31x1x192xf32, #tpu.memory_space<vmem>>, vector<1x1x192xf32>
    %66 = vector.shape_cast %65 : vector<1x1x192xf32> to vector<1x192xf32>
    %67 = vector.broadcast %66 : vector<1x192xf32> to vector<2x192xf32>
    %68 = arith.addf %64, %67 : vector<2x192xf32>
    %c4_41 = arith.constant 4 : index
    %c0_42 = arith.constant 0 : index
    %c0_43 = arith.constant 0 : index
    %69 = vector.load %arg1[%c4_41, %c0_42, %c0_43] : memref<21x192x192xf32, #tpu.memory_space<vmem>>, vector<1x192x192xf32>
    %70 = vector.shape_cast %69 : vector<1x192x192xf32> to vector<192x192xf32>
    %cst_44 = arith.constant dense<0.000000e+00> : vector<2x192xf32>
    %71 = tpu.matmul %7, %70, %cst_44 {dimension_numbers = #tpu.dot_dimension_numbers<[1], [0], [0], [1], [0, 0, 1, 1], [], []>} : vector<2x192xf32>, vector<192x192xf32>, vector<2x192xf32> -> vector<2x192xf32>
    %72 = arith.addf %68, %71 : vector<2x192xf32>
    %c8 = arith.constant 8 : index
    %c0_45 = arith.constant 0 : index
    %c0_46 = arith.constant 0 : index
    %73 = vector.load %arg2[%c8, %c0_45, %c0_46] : memref<31x1x192xf32, #tpu.memory_space<vmem>>, vector<1x1x192xf32>
    %74 = vector.shape_cast %73 : vector<1x1x192xf32> to vector<1x192xf32>
    %75 = vector.broadcast %74 : vector<1x192xf32> to vector<2x192xf32>
    %76 = arith.addf %72, %75 : vector<2x192xf32>
    %c5_47 = arith.constant 5 : index
    %c0_48 = arith.constant 0 : index
    %c0_49 = arith.constant 0 : index
    %77 = vector.load %arg1[%c5_47, %c0_48, %c0_49] : memref<21x192x192xf32, #tpu.memory_space<vmem>>, vector<1x192x192xf32>
    %78 = vector.shape_cast %77 : vector<1x192x192xf32> to vector<192x192xf32>
    %cst_50 = arith.constant dense<0.000000e+00> : vector<2x192xf32>
    %79 = tpu.matmul %76, %78, %cst_50 {dimension_numbers = #tpu.dot_dimension_numbers<[1], [0], [0], [1], [0, 0, 1, 1], [], []>} : vector<2x192xf32>, vector<192x192xf32>, vector<2x192xf32> -> vector<2x192xf32>
    %c9 = arith.constant 9 : index
    %c0_51 = arith.constant 0 : index
    %c0_52 = arith.constant 0 : index
    %80 = vector.load %arg2[%c9, %c0_51, %c0_52] : memref<31x1x192xf32, #tpu.memory_space<vmem>>, vector<1x1x192xf32>
    %81 = vector.shape_cast %80 : vector<1x1x192xf32> to vector<1x192xf32>
    %82 = vector.broadcast %81 : vector<1x192xf32> to vector<2x192xf32>
    %83 = arith.addf %79, %82 : vector<2x192xf32>
    %c10 = arith.constant 10 : index
    %c0_53 = arith.constant 0 : index
    %c0_54 = arith.constant 0 : index
    %84 = vector.load %arg2[%c10, %c0_53, %c0_54] : memref<31x1x192xf32, #tpu.memory_space<vmem>>, vector<1x1x192xf32>
    %85 = vector.shape_cast %84 : vector<1x1x192xf32> to vector<1x192xf32>
    %c11 = arith.constant 11 : index
    %c0_55 = arith.constant 0 : index
    %c0_56 = arith.constant 0 : index
    %86 = vector.load %arg2[%c11, %c0_55, %c0_56] : memref<31x1x192xf32, #tpu.memory_space<vmem>>, vector<1x1x192xf32>
    %87 = vector.shape_cast %86 : vector<1x1x192xf32> to vector<1x192xf32>
    %cst_57 = arith.constant 0.000000e+00 : f32
    %88 = vector.broadcast %cst_57 : f32 to vector<1x192xf32>
    %89 = arith.subf %88, %85 : vector<1x192xf32>
    %90 = vector.broadcast %89 : vector<1x192xf32> to vector<2x192xf32>
    %91 = arith.mulf %90, %83 : vector<2x192xf32>
    %92 = math.exp %91 : vector<2x192xf32>
    %cst_58 = arith.constant 1.000000e+00 : f32
    %93 = vector.broadcast %cst_58 : f32 to vector<2x192xf32>
    %94 = arith.addf %93, %92 : vector<2x192xf32>
    %cst_59 = arith.constant 1.000000e+00 : f32
    %95 = vector.broadcast %cst_59 : f32 to vector<2x192xf32>
    %96 = arith.divf %95, %94 : vector<2x192xf32>
    %cst_60 = arith.constant 1.000000e+00 : f32
    %97 = vector.broadcast %cst_60 : f32 to vector<1x192xf32>
    %98 = arith.subf %97, %87 : vector<1x192xf32>
    %99 = vector.broadcast %98 : vector<1x192xf32> to vector<2x192xf32>
    %100 = arith.mulf %96, %99 : vector<2x192xf32>
    %101 = vector.broadcast %87 : vector<1x192xf32> to vector<2x192xf32>
    %102 = arith.addf %101, %100 : vector<2x192xf32>
    %103 = arith.mulf %102, %83 : vector<2x192xf32>
    %c6_61 = arith.constant 6 : index
    %c0_62 = arith.constant 0 : index
    %c0_63 = arith.constant 0 : index
    %104 = vector.load %arg1[%c6_61, %c0_62, %c0_63] : memref<21x192x192xf32, #tpu.memory_space<vmem>>, vector<1x192x192xf32>
    %105 = vector.shape_cast %104 : vector<1x192x192xf32> to vector<192x192xf32>
    %cst_64 = arith.constant dense<0.000000e+00> : vector<2x192xf32>
    %106 = tpu.matmul %103, %105, %cst_64 {dimension_numbers = #tpu.dot_dimension_numbers<[1], [0], [0], [1], [0, 0, 1, 1], [], []>} : vector<2x192xf32>, vector<192x192xf32>, vector<2x192xf32> -> vector<2x192xf32>
    %c12 = arith.constant 12 : index
    %c0_65 = arith.constant 0 : index
    %c0_66 = arith.constant 0 : index
    %107 = vector.load %arg2[%c12, %c0_65, %c0_66] : memref<31x1x192xf32, #tpu.memory_space<vmem>>, vector<1x1x192xf32>
    %108 = vector.shape_cast %107 : vector<1x1x192xf32> to vector<1x192xf32>
    %109 = vector.broadcast %108 : vector<1x192xf32> to vector<2x192xf32>
    %110 = arith.addf %106, %109 : vector<2x192xf32>
    %c13 = arith.constant 13 : index
    %c0_67 = arith.constant 0 : index
    %c0_68 = arith.constant 0 : index
    %111 = vector.load %arg2[%c13, %c0_67, %c0_68] : memref<31x1x192xf32, #tpu.memory_space<vmem>>, vector<1x1x192xf32>
    %112 = vector.shape_cast %111 : vector<1x1x192xf32> to vector<1x192xf32>
    %c14 = arith.constant 14 : index
    %c0_69 = arith.constant 0 : index
    %c0_70 = arith.constant 0 : index
    %113 = vector.load %arg2[%c14, %c0_69, %c0_70] : memref<31x1x192xf32, #tpu.memory_space<vmem>>, vector<1x1x192xf32>
    %114 = vector.shape_cast %113 : vector<1x1x192xf32> to vector<1x192xf32>
    %cst_71 = arith.constant 0.000000e+00 : f32
    %115 = vector.broadcast %cst_71 : f32 to vector<1x192xf32>
    %116 = arith.subf %115, %112 : vector<1x192xf32>
    %117 = vector.broadcast %116 : vector<1x192xf32> to vector<2x192xf32>
    %118 = arith.mulf %117, %110 : vector<2x192xf32>
    %119 = math.exp %118 : vector<2x192xf32>
    %cst_72 = arith.constant 1.000000e+00 : f32
    %120 = vector.broadcast %cst_72 : f32 to vector<2x192xf32>
    %121 = arith.addf %120, %119 : vector<2x192xf32>
    %cst_73 = arith.constant 1.000000e+00 : f32
    %122 = vector.broadcast %cst_73 : f32 to vector<2x192xf32>
    %123 = arith.divf %122, %121 : vector<2x192xf32>
    %cst_74 = arith.constant 1.000000e+00 : f32
    %124 = vector.broadcast %cst_74 : f32 to vector<1x192xf32>
    %125 = arith.subf %124, %114 : vector<1x192xf32>
    %126 = vector.broadcast %125 : vector<1x192xf32> to vector<2x192xf32>
    %127 = arith.mulf %123, %126 : vector<2x192xf32>
    %128 = vector.broadcast %114 : vector<1x192xf32> to vector<2x192xf32>
    %129 = arith.addf %128, %127 : vector<2x192xf32>
    %130 = arith.mulf %129, %110 : vector<2x192xf32>
    %c7_75 = arith.constant 7 : index
    %c0_76 = arith.constant 0 : index
    %c0_77 = arith.constant 0 : index
    %131 = vector.load %arg1[%c7_75, %c0_76, %c0_77] : memref<21x192x192xf32, #tpu.memory_space<vmem>>, vector<1x192x192xf32>
    %132 = vector.shape_cast %131 : vector<1x192x192xf32> to vector<192x192xf32>
    %cst_78 = arith.constant dense<0.000000e+00> : vector<2x192xf32>
    %133 = tpu.matmul %130, %132, %cst_78 {dimension_numbers = #tpu.dot_dimension_numbers<[1], [0], [0], [1], [0, 0, 1, 1], [], []>} : vector<2x192xf32>, vector<192x192xf32>, vector<2x192xf32> -> vector<2x192xf32>
    %c15 = arith.constant 15 : index
    %c0_79 = arith.constant 0 : index
    %c0_80 = arith.constant 0 : index
    %134 = vector.load %arg2[%c15, %c0_79, %c0_80] : memref<31x1x192xf32, #tpu.memory_space<vmem>>, vector<1x1x192xf32>
    %135 = vector.shape_cast %134 : vector<1x1x192xf32> to vector<1x192xf32>
    %136 = vector.broadcast %135 : vector<1x192xf32> to vector<2x192xf32>
    %137 = arith.addf %133, %136 : vector<2x192xf32>
    %c8_81 = arith.constant 8 : index
    %c0_82 = arith.constant 0 : index
    %c0_83 = arith.constant 0 : index
    %138 = vector.load %arg1[%c8_81, %c0_82, %c0_83] : memref<21x192x192xf32, #tpu.memory_space<vmem>>, vector<1x192x192xf32>
    %139 = vector.shape_cast %138 : vector<1x192x192xf32> to vector<192x192xf32>
    %cst_84 = arith.constant dense<0.000000e+00> : vector<2x192xf32>
    %140 = tpu.matmul %76, %139, %cst_84 {dimension_numbers = #tpu.dot_dimension_numbers<[1], [0], [0], [1], [0, 0, 1, 1], [], []>} : vector<2x192xf32>, vector<192x192xf32>, vector<2x192xf32> -> vector<2x192xf32>
    %141 = arith.addf %137, %140 : vector<2x192xf32>
    %c16 = arith.constant 16 : index
    %c0_85 = arith.constant 0 : index
    %c0_86 = arith.constant 0 : index
    %142 = vector.load %arg2[%c16, %c0_85, %c0_86] : memref<31x1x192xf32, #tpu.memory_space<vmem>>, vector<1x1x192xf32>
    %143 = vector.shape_cast %142 : vector<1x1x192xf32> to vector<1x192xf32>
    %144 = vector.broadcast %143 : vector<1x192xf32> to vector<2x192xf32>
    %145 = arith.addf %141, %144 : vector<2x192xf32>
    %c9_87 = arith.constant 9 : index
    %c0_88 = arith.constant 0 : index
    %c0_89 = arith.constant 0 : index
    %146 = vector.load %arg1[%c9_87, %c0_88, %c0_89] : memref<21x192x192xf32, #tpu.memory_space<vmem>>, vector<1x192x192xf32>
    %147 = vector.shape_cast %146 : vector<1x192x192xf32> to vector<192x192xf32>
    %cst_90 = arith.constant dense<0.000000e+00> : vector<2x192xf32>
    %148 = tpu.matmul %145, %147, %cst_90 {dimension_numbers = #tpu.dot_dimension_numbers<[1], [0], [0], [1], [0, 0, 1, 1], [], []>} : vector<2x192xf32>, vector<192x192xf32>, vector<2x192xf32> -> vector<2x192xf32>
    %c17 = arith.constant 17 : index
    %c0_91 = arith.constant 0 : index
    %c0_92 = arith.constant 0 : index
    %149 = vector.load %arg2[%c17, %c0_91, %c0_92] : memref<31x1x192xf32, #tpu.memory_space<vmem>>, vector<1x1x192xf32>
    %150 = vector.shape_cast %149 : vector<1x1x192xf32> to vector<1x192xf32>
    %151 = vector.broadcast %150 : vector<1x192xf32> to vector<2x192xf32>
    %152 = arith.addf %148, %151 : vector<2x192xf32>
    %c17_93 = arith.constant 17 : index
    %c0_94 = arith.constant 0 : index
    %c0_95 = arith.constant 0 : index
    %153 = vector.load %arg1[%c17_93, %c0_94, %c0_95] : memref<21x192x192xf32, #tpu.memory_space<vmem>>, vector<1x192x192xf32>
    %154 = vector.shape_cast %153 : vector<1x192x192xf32> to vector<192x192xf32>
    %c10_96 = arith.constant 10 : index
    %c0_97 = arith.constant 0 : index
    %c0_98 = arith.constant 0 : index
    %155 = vector.load %arg1[%c10_96, %c0_97, %c0_98] : memref<21x192x192xf32, #tpu.memory_space<vmem>>, vector<1x192x192xf32>
    %156 = vector.shape_cast %155 : vector<1x192x192xf32> to vector<192x192xf32>
    %cst_99 = arith.constant dense<0.000000e+00> : vector<2x192xf32>
    %157 = tpu.matmul %152, %156, %cst_99 {dimension_numbers = #tpu.dot_dimension_numbers<[1], [0], [0], [1], [0, 0, 1, 1], [], []>} : vector<2x192xf32>, vector<192x192xf32>, vector<2x192xf32> -> vector<2x192xf32>
    %c18 = arith.constant 18 : index
    %c0_100 = arith.constant 0 : index
    %c0_101 = arith.constant 0 : index
    %158 = vector.load %arg2[%c18, %c0_100, %c0_101] : memref<31x1x192xf32, #tpu.memory_space<vmem>>, vector<1x1x192xf32>
    %159 = vector.shape_cast %158 : vector<1x1x192xf32> to vector<1x192xf32>
    %160 = vector.broadcast %159 : vector<1x192xf32> to vector<2x192xf32>
    %161 = arith.addf %157, %160 : vector<2x192xf32>
    %c11_102 = arith.constant 11 : index
    %c0_103 = arith.constant 0 : index
    %c0_104 = arith.constant 0 : index
    %162 = vector.load %arg1[%c11_102, %c0_103, %c0_104] : memref<21x192x192xf32, #tpu.memory_space<vmem>>, vector<1x192x192xf32>
    %163 = vector.shape_cast %162 : vector<1x192x192xf32> to vector<192x192xf32>
    %cst_105 = arith.constant dense<0.000000e+00> : vector<2x192xf32>
    %164 = tpu.matmul %152, %163, %cst_105 {dimension_numbers = #tpu.dot_dimension_numbers<[1], [0], [0], [1], [0, 0, 1, 1], [], []>} : vector<2x192xf32>, vector<192x192xf32>, vector<2x192xf32> -> vector<2x192xf32>
    %c19 = arith.constant 19 : index
    %c0_106 = arith.constant 0 : index
    %c0_107 = arith.constant 0 : index
    %165 = vector.load %arg2[%c19, %c0_106, %c0_107] : memref<31x1x192xf32, #tpu.memory_space<vmem>>, vector<1x1x192xf32>
    %166 = vector.shape_cast %165 : vector<1x1x192xf32> to vector<1x192xf32>
    %167 = vector.broadcast %166 : vector<1x192xf32> to vector<2x192xf32>
    %168 = arith.addf %164, %167 : vector<2x192xf32>
    %c12_108 = arith.constant 12 : index
    %c0_109 = arith.constant 0 : index
    %c0_110 = arith.constant 0 : index
    %169 = vector.load %arg1[%c12_108, %c0_109, %c0_110] : memref<21x192x192xf32, #tpu.memory_space<vmem>>, vector<1x192x192xf32>
    %170 = vector.shape_cast %169 : vector<1x192x192xf32> to vector<192x192xf32>
    %cst_111 = arith.constant dense<0.000000e+00> : vector<2x192xf32>
    %171 = tpu.matmul %152, %170, %cst_111 {dimension_numbers = #tpu.dot_dimension_numbers<[1], [0], [0], [1], [0, 0, 1, 1], [], []>} : vector<2x192xf32>, vector<192x192xf32>, vector<2x192xf32> -> vector<2x192xf32>
    %c20 = arith.constant 20 : index
    %c0_112 = arith.constant 0 : index
    %c0_113 = arith.constant 0 : index
    %172 = vector.load %arg2[%c20, %c0_112, %c0_113] : memref<31x1x192xf32, #tpu.memory_space<vmem>>, vector<1x1x192xf32>
    %173 = vector.shape_cast %172 : vector<1x1x192xf32> to vector<1x192xf32>
    %174 = vector.broadcast %173 : vector<1x192xf32> to vector<2x192xf32>
    %175 = arith.addf %171, %174 : vector<2x192xf32>
    %c18_114 = arith.constant 18 : index
    %c0_115 = arith.constant 0 : index
    %c0_116 = arith.constant 0 : index
    %176 = vector.load %arg1[%c18_114, %c0_115, %c0_116] : memref<21x192x192xf32, #tpu.memory_space<vmem>>, vector<1x192x192xf32>
    %177 = vector.shape_cast %176 : vector<1x192x192xf32> to vector<192x192xf32>
    %cst_117 = arith.constant dense<0.000000e+00> : vector<2x192xf32>
    %178 = tpu.matmul %168, %177, %cst_117 {dimension_numbers = #tpu.dot_dimension_numbers<[1], [0], [0], [1], [0, 0, 1, 1], [], []>} : vector<2x192xf32>, vector<192x192xf32>, vector<2x192xf32> -> vector<2x192xf32>
    %c19_118 = arith.constant 19 : index
    %c0_119 = arith.constant 0 : index
    %c0_120 = arith.constant 0 : index
    %179 = vector.load %arg1[%c19_118, %c0_119, %c0_120] : memref<21x192x192xf32, #tpu.memory_space<vmem>>, vector<1x192x192xf32>
    %180 = vector.shape_cast %179 : vector<1x192x192xf32> to vector<192x192xf32>
    %cst_121 = arith.constant dense<0.000000e+00> : vector<2x192xf32>
    %181 = tpu.matmul %168, %180, %cst_121 {dimension_numbers = #tpu.dot_dimension_numbers<[1], [0], [0], [1], [0, 0, 1, 1], [], []>} : vector<2x192xf32>, vector<192x192xf32>, vector<2x192xf32> -> vector<2x192xf32>
    %c20_122 = arith.constant 20 : index
    %c0_123 = arith.constant 0 : index
    %c0_124 = arith.constant 0 : index
    %182 = vector.load %arg1[%c20_122, %c0_123, %c0_124] : memref<21x192x192xf32, #tpu.memory_space<vmem>>, vector<1x192x192xf32>
    %183 = vector.shape_cast %182 : vector<1x192x192xf32> to vector<192x192xf32>
    %cst_125 = arith.constant dense<0.000000e+00> : vector<2x192xf32>
    %184 = tpu.matmul %168, %183, %cst_125 {dimension_numbers = #tpu.dot_dimension_numbers<[1], [0], [0], [1], [0, 0, 1, 1], [], []>} : vector<2x192xf32>, vector<192x192xf32>, vector<2x192xf32> -> vector<2x192xf32>
    %c18_126 = arith.constant 18 : index
    %c0_127 = arith.constant 0 : index
    %c0_128 = arith.constant 0 : index
    %185 = vector.load %arg1[%c18_126, %c0_127, %c0_128] : memref<21x192x192xf32, #tpu.memory_space<vmem>>, vector<1x192x192xf32>
    %186 = vector.shape_cast %185 : vector<1x192x192xf32> to vector<192x192xf32>
    %cst_129 = arith.constant dense<0.000000e+00> : vector<2x192xf32>
    %187 = tpu.matmul %175, %186, %cst_129 {dimension_numbers = #tpu.dot_dimension_numbers<[1], [0], [0], [1], [0, 0, 1, 1], [], []>} : vector<2x192xf32>, vector<192x192xf32>, vector<2x192xf32> -> vector<2x192xf32>
    %c19_130 = arith.constant 19 : index
    %c0_131 = arith.constant 0 : index
    %c0_132 = arith.constant 0 : index
    %188 = vector.load %arg1[%c19_130, %c0_131, %c0_132] : memref<21x192x192xf32, #tpu.memory_space<vmem>>, vector<1x192x192xf32>
    %189 = vector.shape_cast %188 : vector<1x192x192xf32> to vector<192x192xf32>
    %cst_133 = arith.constant dense<0.000000e+00> : vector<2x192xf32>
    %190 = tpu.matmul %175, %189, %cst_133 {dimension_numbers = #tpu.dot_dimension_numbers<[1], [0], [0], [1], [0, 0, 1, 1], [], []>} : vector<2x192xf32>, vector<192x192xf32>, vector<2x192xf32> -> vector<2x192xf32>
    %c20_134 = arith.constant 20 : index
    %c0_135 = arith.constant 0 : index
    %c0_136 = arith.constant 0 : index
    %191 = vector.load %arg1[%c20_134, %c0_135, %c0_136] : memref<21x192x192xf32, #tpu.memory_space<vmem>>, vector<1x192x192xf32>
    %192 = vector.shape_cast %191 : vector<1x192x192xf32> to vector<192x192xf32>
    %cst_137 = arith.constant dense<0.000000e+00> : vector<2x192xf32>
    %193 = tpu.matmul %175, %192, %cst_137 {dimension_numbers = #tpu.dot_dimension_numbers<[1], [0], [0], [1], [0, 0, 1, 1], [], []>} : vector<2x192xf32>, vector<192x192xf32>, vector<2x192xf32> -> vector<2x192xf32>
    %194 = arith.mulf %161, %168 : vector<2x192xf32>
    %cst_138 = arith.constant dense<0.000000e+00> : vector<2x192xf32>
    %195 = tpu.matmul %194, %154, %cst_138 {dimension_numbers = #tpu.dot_dimension_numbers<[1], [0], [0], [1], [0, 0, 1, 1], [], []>} : vector<2x192xf32>, vector<192x192xf32>, vector<2x192xf32> -> vector<2x192xf32>
    %cst_139 = arith.constant 2.82842708 : f32
    %196 = vector.broadcast %cst_139 : f32 to vector<2x192xf32>
    %197 = arith.mulf %195, %196 : vector<2x192xf32>
    %198 = arith.mulf %161, %178 : vector<2x192xf32>
    %cst_140 = arith.constant dense<0.000000e+00> : vector<2x192xf32>
    %199 = tpu.matmul %198, %154, %cst_140 {dimension_numbers = #tpu.dot_dimension_numbers<[1], [0], [0], [1], [0, 0, 1, 1], [], []>} : vector<2x192xf32>, vector<192x192xf32>, vector<2x192xf32> -> vector<2x192xf32>
    %cst_141 = arith.constant 2.82842708 : f32
    %200 = vector.broadcast %cst_141 : f32 to vector<2x192xf32>
    %201 = arith.mulf %199, %200 : vector<2x192xf32>
    %202 = arith.mulf %161, %181 : vector<2x192xf32>
    %cst_142 = arith.constant dense<0.000000e+00> : vector<2x192xf32>
    %203 = tpu.matmul %202, %154, %cst_142 {dimension_numbers = #tpu.dot_dimension_numbers<[1], [0], [0], [1], [0, 0, 1, 1], [], []>} : vector<2x192xf32>, vector<192x192xf32>, vector<2x192xf32> -> vector<2x192xf32>
    %cst_143 = arith.constant 2.82842708 : f32
    %204 = vector.broadcast %cst_143 : f32 to vector<2x192xf32>
    %205 = arith.mulf %203, %204 : vector<2x192xf32>
    %206 = arith.mulf %161, %184 : vector<2x192xf32>
    %cst_144 = arith.constant dense<0.000000e+00> : vector<2x192xf32>
    %207 = tpu.matmul %206, %154, %cst_144 {dimension_numbers = #tpu.dot_dimension_numbers<[1], [0], [0], [1], [0, 0, 1, 1], [], []>} : vector<2x192xf32>, vector<192x192xf32>, vector<2x192xf32> -> vector<2x192xf32>
    %cst_145 = arith.constant 2.82842708 : f32
    %208 = vector.broadcast %cst_145 : f32 to vector<2x192xf32>
    %209 = arith.mulf %207, %208 : vector<2x192xf32>
    %210 = arith.maximumf %197, %201 : vector<2x192xf32>
    %211 = arith.maximumf %210, %205 : vector<2x192xf32>
    %212 = arith.maximumf %211, %209 : vector<2x192xf32>
    %213 = arith.subf %197, %212 : vector<2x192xf32>
    %214 = math.exp %213 : vector<2x192xf32>
    %215 = arith.subf %201, %212 : vector<2x192xf32>
    %216 = math.exp %215 : vector<2x192xf32>
    %217 = arith.subf %205, %212 : vector<2x192xf32>
    %218 = math.exp %217 : vector<2x192xf32>
    %219 = arith.subf %209, %212 : vector<2x192xf32>
    %220 = math.exp %219 : vector<2x192xf32>
    %221 = arith.addf %214, %216 : vector<2x192xf32>
    %222 = arith.addf %221, %218 : vector<2x192xf32>
    %223 = arith.addf %222, %220 : vector<2x192xf32>
    %cst_146 = arith.constant 1.000000e+00 : f32
    %224 = vector.broadcast %cst_146 : f32 to vector<2x192xf32>
    %225 = arith.divf %224, %223 : vector<2x192xf32>
    %226 = arith.mulf %214, %225 : vector<2x192xf32>
    %227 = arith.mulf %226, %175 : vector<2x192xf32>
    %228 = arith.mulf %216, %225 : vector<2x192xf32>
    %229 = arith.mulf %228, %187 : vector<2x192xf32>
    %230 = arith.addf %227, %229 : vector<2x192xf32>
    %231 = arith.mulf %218, %225 : vector<2x192xf32>
    %232 = arith.mulf %231, %190 : vector<2x192xf32>
    %233 = arith.addf %230, %232 : vector<2x192xf32>
    %234 = arith.mulf %220, %225 : vector<2x192xf32>
    %235 = arith.mulf %234, %193 : vector<2x192xf32>
    %236 = arith.addf %233, %235 : vector<2x192xf32>
    %c13_147 = arith.constant 13 : index
    %c0_148 = arith.constant 0 : index
    %c0_149 = arith.constant 0 : index
    %237 = vector.load %arg1[%c13_147, %c0_148, %c0_149] : memref<21x192x192xf32, #tpu.memory_space<vmem>>, vector<1x192x192xf32>
    %238 = vector.shape_cast %237 : vector<1x192x192xf32> to vector<192x192xf32>
    %cst_150 = arith.constant dense<0.000000e+00> : vector<2x192xf32>
    %239 = tpu.matmul %236, %238, %cst_150 {dimension_numbers = #tpu.dot_dimension_numbers<[1], [0], [0], [1], [0, 0, 1, 1], [], []>} : vector<2x192xf32>, vector<192x192xf32>, vector<2x192xf32> -> vector<2x192xf32>
    %c21 = arith.constant 21 : index
    %c0_151 = arith.constant 0 : index
    %c0_152 = arith.constant 0 : index
    %240 = vector.load %arg2[%c21, %c0_151, %c0_152] : memref<31x1x192xf32, #tpu.memory_space<vmem>>, vector<1x1x192xf32>
    %241 = vector.shape_cast %240 : vector<1x1x192xf32> to vector<1x192xf32>
    %242 = vector.broadcast %241 : vector<1x192xf32> to vector<2x192xf32>
    %243 = arith.addf %239, %242 : vector<2x192xf32>
    %244 = arith.addf %152, %243 : vector<2x192xf32>
    %c22 = arith.constant 22 : index
    %c0_153 = arith.constant 0 : index
    %c0_154 = arith.constant 0 : index
    %245 = vector.load %arg2[%c22, %c0_153, %c0_154] : memref<31x1x192xf32, #tpu.memory_space<vmem>>, vector<1x1x192xf32>
    %246 = vector.shape_cast %245 : vector<1x1x192xf32> to vector<1x192xf32>
    %c23 = arith.constant 23 : index
    %c0_155 = arith.constant 0 : index
    %c0_156 = arith.constant 0 : index
    %247 = vector.load %arg2[%c23, %c0_155, %c0_156] : memref<31x1x192xf32, #tpu.memory_space<vmem>>, vector<1x1x192xf32>
    %248 = vector.shape_cast %247 : vector<1x1x192xf32> to vector<1x192xf32>
    %cst_157 = arith.constant dense<0.000000e+00> : vector<2x192xf32>
    %249 = tpu.matmul %244, %154, %cst_157 {dimension_numbers = #tpu.dot_dimension_numbers<[1], [0], [0], [1], [0, 0, 1, 1], [], []>} : vector<2x192xf32>, vector<192x192xf32>, vector<2x192xf32> -> vector<2x192xf32>
    %250 = arith.subf %244, %249 : vector<2x192xf32>
    %251 = arith.subf %244, %249 : vector<2x192xf32>
    %252 = arith.mulf %250, %251 : vector<2x192xf32>
    %cst_158 = arith.constant dense<0.000000e+00> : vector<2x192xf32>
    %253 = tpu.matmul %252, %154, %cst_158 {dimension_numbers = #tpu.dot_dimension_numbers<[1], [0], [0], [1], [0, 0, 1, 1], [], []>} : vector<2x192xf32>, vector<192x192xf32>, vector<2x192xf32> -> vector<2x192xf32>
    %254 = arith.subf %244, %249 : vector<2x192xf32>
    %cst_159 = arith.constant 9.99999974E-6 : f32
    %255 = vector.broadcast %cst_159 : f32 to vector<2x192xf32>
    %256 = arith.addf %253, %255 : vector<2x192xf32>
    %257 = math.rsqrt %256 : vector<2x192xf32>
    %258 = arith.mulf %254, %257 : vector<2x192xf32>
    %259 = vector.broadcast %246 : vector<1x192xf32> to vector<2x192xf32>
    %260 = arith.mulf %258, %259 : vector<2x192xf32>
    %261 = vector.broadcast %248 : vector<1x192xf32> to vector<2x192xf32>
    %262 = arith.addf %260, %261 : vector<2x192xf32>
    %c14_160 = arith.constant 14 : index
    %c0_161 = arith.constant 0 : index
    %c0_162 = arith.constant 0 : index
    %263 = vector.load %arg1[%c14_160, %c0_161, %c0_162] : memref<21x192x192xf32, #tpu.memory_space<vmem>>, vector<1x192x192xf32>
    %264 = vector.shape_cast %263 : vector<1x192x192xf32> to vector<192x192xf32>
    %cst_163 = arith.constant dense<0.000000e+00> : vector<2x192xf32>
    %265 = tpu.matmul %262, %264, %cst_163 {dimension_numbers = #tpu.dot_dimension_numbers<[1], [0], [0], [1], [0, 0, 1, 1], [], []>} : vector<2x192xf32>, vector<192x192xf32>, vector<2x192xf32> -> vector<2x192xf32>
    %c26 = arith.constant 26 : index
    %c0_164 = arith.constant 0 : index
    %c0_165 = arith.constant 0 : index
    %266 = vector.load %arg2[%c26, %c0_164, %c0_165] : memref<31x1x192xf32, #tpu.memory_space<vmem>>, vector<1x1x192xf32>
    %267 = vector.shape_cast %266 : vector<1x1x192xf32> to vector<1x192xf32>
    %268 = vector.broadcast %267 : vector<1x192xf32> to vector<2x192xf32>
    %269 = arith.addf %265, %268 : vector<2x192xf32>
    %cst_166 = arith.constant 0.000000e+00 : f32
    %270 = vector.broadcast %cst_166 : f32 to vector<2x192xf32>
    %271 = arith.maximumf %269, %270 : vector<2x192xf32>
    %c15_167 = arith.constant 15 : index
    %c0_168 = arith.constant 0 : index
    %c0_169 = arith.constant 0 : index
    %272 = vector.load %arg1[%c15_167, %c0_168, %c0_169] : memref<21x192x192xf32, #tpu.memory_space<vmem>>, vector<1x192x192xf32>
    %273 = vector.shape_cast %272 : vector<1x192x192xf32> to vector<192x192xf32>
    %cst_170 = arith.constant dense<0.000000e+00> : vector<2x192xf32>
    %274 = tpu.matmul %271, %273, %cst_170 {dimension_numbers = #tpu.dot_dimension_numbers<[1], [0], [0], [1], [0, 0, 1, 1], [], []>} : vector<2x192xf32>, vector<192x192xf32>, vector<2x192xf32> -> vector<2x192xf32>
    %c27 = arith.constant 27 : index
    %c0_171 = arith.constant 0 : index
    %c0_172 = arith.constant 0 : index
    %275 = vector.load %arg2[%c27, %c0_171, %c0_172] : memref<31x1x192xf32, #tpu.memory_space<vmem>>, vector<1x1x192xf32>
    %276 = vector.shape_cast %275 : vector<1x1x192xf32> to vector<1x192xf32>
    %277 = vector.broadcast %276 : vector<1x192xf32> to vector<2x192xf32>
    %278 = arith.addf %274, %277 : vector<2x192xf32>
    %279 = arith.addf %262, %278 : vector<2x192xf32>
    %c24 = arith.constant 24 : index
    %c0_173 = arith.constant 0 : index
    %c0_174 = arith.constant 0 : index
    %280 = vector.load %arg2[%c24, %c0_173, %c0_174] : memref<31x1x192xf32, #tpu.memory_space<vmem>>, vector<1x1x192xf32>
    %281 = vector.shape_cast %280 : vector<1x1x192xf32> to vector<1x192xf32>
    %c25 = arith.constant 25 : index
    %c0_175 = arith.constant 0 : index
    %c0_176 = arith.constant 0 : index
    %282 = vector.load %arg2[%c25, %c0_175, %c0_176] : memref<31x1x192xf32, #tpu.memory_space<vmem>>, vector<1x1x192xf32>
    %283 = vector.shape_cast %282 : vector<1x1x192xf32> to vector<1x192xf32>
    %cst_177 = arith.constant dense<0.000000e+00> : vector<2x192xf32>
    %284 = tpu.matmul %279, %154, %cst_177 {dimension_numbers = #tpu.dot_dimension_numbers<[1], [0], [0], [1], [0, 0, 1, 1], [], []>} : vector<2x192xf32>, vector<192x192xf32>, vector<2x192xf32> -> vector<2x192xf32>
    %285 = arith.subf %279, %284 : vector<2x192xf32>
    %286 = arith.subf %279, %284 : vector<2x192xf32>
    %287 = arith.mulf %285, %286 : vector<2x192xf32>
    %cst_178 = arith.constant dense<0.000000e+00> : vector<2x192xf32>
    %288 = tpu.matmul %287, %154, %cst_178 {dimension_numbers = #tpu.dot_dimension_numbers<[1], [0], [0], [1], [0, 0, 1, 1], [], []>} : vector<2x192xf32>, vector<192x192xf32>, vector<2x192xf32> -> vector<2x192xf32>
    %289 = arith.subf %279, %284 : vector<2x192xf32>
    %cst_179 = arith.constant 9.99999974E-6 : f32
    %290 = vector.broadcast %cst_179 : f32 to vector<2x192xf32>
    %291 = arith.addf %288, %290 : vector<2x192xf32>
    %292 = math.rsqrt %291 : vector<2x192xf32>
    %293 = arith.mulf %289, %292 : vector<2x192xf32>
    %294 = vector.broadcast %281 : vector<1x192xf32> to vector<2x192xf32>
    %295 = arith.mulf %293, %294 : vector<2x192xf32>
    %296 = vector.broadcast %283 : vector<1x192xf32> to vector<2x192xf32>
    %297 = arith.addf %295, %296 : vector<2x192xf32>
    %c28 = arith.constant 28 : index
    %c0_180 = arith.constant 0 : index
    %c0_181 = arith.constant 0 : index
    %298 = vector.load %arg2[%c28, %c0_180, %c0_181] : memref<31x1x192xf32, #tpu.memory_space<vmem>>, vector<1x1x192xf32>
    %299 = vector.shape_cast %298 : vector<1x1x192xf32> to vector<1x192xf32>
    %c29 = arith.constant 29 : index
    %c0_182 = arith.constant 0 : index
    %c0_183 = arith.constant 0 : index
    %300 = vector.load %arg2[%c29, %c0_182, %c0_183] : memref<31x1x192xf32, #tpu.memory_space<vmem>>, vector<1x1x192xf32>
    %301 = vector.shape_cast %300 : vector<1x1x192xf32> to vector<1x192xf32>
    %cst_184 = arith.constant 0.000000e+00 : f32
    %302 = vector.broadcast %cst_184 : f32 to vector<1x192xf32>
    %303 = arith.subf %302, %299 : vector<1x192xf32>
    %304 = vector.broadcast %303 : vector<1x192xf32> to vector<2x192xf32>
    %305 = arith.mulf %304, %297 : vector<2x192xf32>
    %306 = math.exp %305 : vector<2x192xf32>
    %cst_185 = arith.constant 1.000000e+00 : f32
    %307 = vector.broadcast %cst_185 : f32 to vector<2x192xf32>
    %308 = arith.addf %307, %306 : vector<2x192xf32>
    %cst_186 = arith.constant 1.000000e+00 : f32
    %309 = vector.broadcast %cst_186 : f32 to vector<2x192xf32>
    %310 = arith.divf %309, %308 : vector<2x192xf32>
    %cst_187 = arith.constant 1.000000e+00 : f32
    %311 = vector.broadcast %cst_187 : f32 to vector<1x192xf32>
    %312 = arith.subf %311, %301 : vector<1x192xf32>
    %313 = vector.broadcast %312 : vector<1x192xf32> to vector<2x192xf32>
    %314 = arith.mulf %310, %313 : vector<2x192xf32>
    %315 = vector.broadcast %301 : vector<1x192xf32> to vector<2x192xf32>
    %316 = arith.addf %315, %314 : vector<2x192xf32>
    %317 = arith.mulf %316, %297 : vector<2x192xf32>
    %c16_188 = arith.constant 16 : index
    %c0_189 = arith.constant 0 : index
    %c0_190 = arith.constant 0 : index
    %318 = vector.load %arg1[%c16_188, %c0_189, %c0_190] : memref<21x192x192xf32, #tpu.memory_space<vmem>>, vector<1x192x192xf32>
    %319 = vector.shape_cast %318 : vector<1x192x192xf32> to vector<192x192xf32>
    %cst_191 = arith.constant dense<0.000000e+00> : vector<2x192xf32>
    %320 = tpu.matmul %317, %319, %cst_191 {dimension_numbers = #tpu.dot_dimension_numbers<[1], [0], [0], [1], [0, 0, 1, 1], [], []>} : vector<2x192xf32>, vector<192x192xf32>, vector<2x192xf32> -> vector<2x192xf32>
    %c30 = arith.constant 30 : index
    %c0_192 = arith.constant 0 : index
    %c0_193 = arith.constant 0 : index
    %321 = vector.load %arg2[%c30, %c0_192, %c0_193] : memref<31x1x192xf32, #tpu.memory_space<vmem>>, vector<1x1x192xf32>
    %322 = vector.shape_cast %321 : vector<1x1x192xf32> to vector<1x192xf32>
    %323 = vector.broadcast %322 : vector<1x192xf32> to vector<2x192xf32>
    %324 = arith.addf %320, %323 : vector<2x192xf32>
    %c0_194 = arith.constant 0 : index
    %c0_195 = arith.constant 0 : index
    %325 = vector.load %arg3[%c0_194, %c0_195] : memref<2x192xf32, #tpu.memory_space<vmem>>, vector<2x192xf32>
    tpu.vector_store %arg3[%c0_194, %c0_195], %324 {strides = array<i32>} : memref<2x192xf32, #tpu.memory_space<vmem>>, vector<2x192xf32>,
    return
  }
}

</mosaic_0001>

<bundles_post_ra>
// kernel: stacked_transformer_forward.1
= control target key start
LH: loop header
LB: loop body
LE: loop exit
PB: predicated region body
PF: predicated region fallthrough
CT: control target
= control target key end

     0   :  { %8 = vsyncpa [#allocation3], 0  ;;  %s6528_s0 = inlined_call_operand.vmem [shape: f32[2,192], index: 0, kind: input, shape index: {}]   ;;  %s6529_s1 = inlined_call_operand.hbm [shape: f32[21,192,192], index: 1, kind: input, shape index: {}]   ;;  %s6530_s2 = inlined_call_operand.hbm [shape: f32[31,1,192], index: 2, kind: input, shape index: {}]   ;;  %s6531_s3 = inlined_call_operand.vmem [shape: f32[2,192], index: 3, kind: output, shape index: {}]  }
   0x1   :  { %9 = vsyncpa [#allocation5], 0  ;;  %s5696_s12 = smov [#allocation2]   ;;  %s5648_s16 = scalar_lea.hbm %s6529_s1, 129024 }
   0x2   :  { %s17_s13 = sshll.u32 %s5696_s12, 4  ;;  %p5649_p0 = scmp.ne.s32.totalorder %s6529_s1, %s5648_s16  ;;  %s18_s13 = int_to_ptr.vmem [resolvable:$true] %s17_s13 }
   0x3   :  { %p5652_p1 = scmp.lt.u32.totalorder %s5648_s16, %s6529_s1 }
   0x5   :  { %p5654_p2 = pnand %p5652_p1, %p5649_p0 }
   0x7   :  { %5657 = shalt.err (!%p5654_p2)
}
   0x8   :  { %s5658_s21 = scalar_lea.vmem %s18_s13, 129024  ;;  %p5663_p4 = scmp.lt.s32.totalorder %s18_s13, %s18_s13 }
   0x9   :  { %p5659_p3 = scmp.ne.s32.totalorder %s18_s13, %s5658_s21  ;;  %p5664_p5 = scmp.lt.s32.totalorder %s5658_s21, %s5658_s21 }
   0xb   :  { %p5665_p6 = por %p5664_p5, %p5663_p4 }
   0xd   :  { %p5666_p7 = pnand %p5665_p6, %p5659_p3 }
   0xf   :  { %5669 = shalt.err (!%p5666_p7)
}
  0x10   :  { %s5697_s22 = smov 256   ;;  %s5698_s23 = smov 16  }
  0x11   :  { %23 = dma.hbm_to_vmem [thread:$0]  %s6529_s1, 129024, %s18_s13, [#allocation3], %s5697_s22, %s5697_s22, %s5698_s23  }
  0x12   :  { %s5699_s26 = smov [#allocation4]   ;;  %s5670_s30 = scalar_lea.hbm %s6530_s2, 992 }
  0x13   :  { %s29_s27 = sshll.u32 %s5699_s26, 4  ;;  %p5671_p8 = scmp.ne.s32.totalorder %s6530_s2, %s5670_s30  ;;  %s30_s27 = int_to_ptr.vmem [resolvable:$true] %s29_s27 }
  0x14   :  { %p5674_p9 = scmp.lt.u32.totalorder %s5670_s30, %s6530_s2 }
  0x16   :  { %p5676_p10 = pnand %p5674_p9, %p5671_p8 }
  0x18   :  { %5679 = shalt.err (!%p5676_p10)
}
  0x19   :  { %s5680_s8 = scalar_lea.vmem %s30_s27, 992  ;;  %p5685_p12 = scmp.lt.s32.totalorder %s30_s27, %s30_s27 }
  0x1a   :  { %p5681_p11 = scmp.ne.s32.totalorder %s30_s27, %s5680_s8  ;;  %p5686_p13 = scmp.lt.s32.totalorder %s5680_s8, %s5680_s8 }
  0x1c   :  { %p5687_p0 = por %p5686_p13, %p5685_p12 }
  0x1e   :  { %p5688_p1 = pnand %p5687_p0, %p5681_p11 }
  0x20   :  { %5691 = shalt.err (!%p5688_p1)
}
  0x21   :  { %s5700_s1 = smov 32   ;;  %s5701_s9 = smov 2  }
  0x22   :  { %35 = dma.hbm_to_vmem [thread:$0]  %s6530_s2, 992, %s30_s27, [#allocation5], %s5700_s1, %s5700_s1, %s5701_s9  }
  0x23   :  { %5692 = dma.done.wait [#allocation3], 129024  }
  0x24   :  { %5693 = vsyncadd [#allocation3], 4294838272 }
  0x25   :  { %5694 = dma.done.wait [#allocation5], 992  }
  0x26   :  { %5695 = vsyncadd [#allocation5], 4294966304  ;;  %v44_v0 = vld [vmem:[#allocation2 + $0x8] sm:$0xff]  ;;  %v46_v1 = vld [vmem:[#allocation2 + $0x18] sm:$0xff]  ;;  %vm113_vm0 = vcmask 523264   ;;  %vm4035_vm1 = vcmask 1041408  }
  0x27   :  { %v43_v2 = vld [vmem:[#allocation2] sm:$0xff]  ;;  %v4077_v3 = vpack.c.bf16 %v46_v1, %v44_v0  ;;  %v45_v4 = vld [vmem:[#allocation2 + $0x10] sm:$0xff]  ;;  %v48_v5 = vld [vmem:[#allocation2 + $0x28] sm:$0xff]  ;;  %vm4036_vm2 = vcmask 519170  }
  0x28   :  { %v50_v6 = vld [vmem:[#allocation2 + $0x38] sm:$0xff]  ;;  %v4079_v7 = vpack.c.bf16 %v45_v4, %v43_v2  ;;  %v47_v9 = vld [vmem:[#allocation2 + $0x20] sm:$0xff]  ;;  %v49_v10 = vld [vmem:[#allocation2 + $0x30] sm:$0xff] }
  0x29   :  { %v4081_v8 = vpack.c.bf16 %v50_v6, %v48_v5  ;;  %v52_v11 = vld [vmem:[#allocation2 + $0x48] sm:$0xff]  ;;  %4078 = vmatprep.subr.bf16.mxu0 %v4077_v3  ;;  %v54_v12 = vld [vmem:[#allocation2 + $0x58] sm:$0xff]  ;;  %v4083_v13 = vpack.c.bf16 %v49_v10, %v47_v9  ;;  %v51_v15 = vld [vmem:[#allocation2 + $0x40] sm:$0xff] }
  0x2a   :  { %4080 = vmatpush1.bf16.msra.mxu0 %v4079_v7  ;;  %v4085_v14 = vpack.c.bf16 %v54_v12, %v52_v11  ;;  %v53_v16 = vld [vmem:[#allocation2 + $0x50] sm:$0xff]  ;;  %v56_v17 = vld [vmem:[#allocation2 + $0x68] sm:$0xff]  ;;  %v58_v18 = vld [vmem:[#allocation2 + $0x78] sm:$0xff] }
  0x2b   :  { %4082 = vmatprep.subr.bf16.mxu0 %v4081_v8  ;;  %v4087_v19 = vpack.c.bf16 %v53_v16, %v51_v15  ;;  %v4089_v20 = vpack.c.bf16 %v58_v18, %v56_v17  ;;  %v55_v21 = vld [vmem:[#allocation2 + $0x60] sm:$0xff]  ;;  %v57_v22 = vld [vmem:[#allocation2 + $0x70] sm:$0xff]  ;;  %v60_v23 = vld [vmem:[#allocation2 + $0x88] sm:$0xff] }
  0x2c   :  { %v62_v24 = vld [vmem:[#allocation2 + $0x98] sm:$0xff]  ;;  %v4091_v25 = vpack.c.bf16 %v57_v22, %v55_v21  ;;  %v59_v27 = vld [vmem:[#allocation2 + $0x80] sm:$0xff]  ;;  %v61_v28 = vld [vmem:[#allocation2 + $0x90] sm:$0xff] }
  0x2d   :  { %v4093_v26 = vpack.c.bf16 %v62_v24, %v60_v23  ;;  %v64_v29 = vld [vmem:[#allocation2 + $0xa8] sm:$0xff]  ;;  %v66_v30 = vld [vmem:[#allocation2 + $0xb8] sm:$0xff]  ;;  %v63_v31 = vld [vmem:[#allocation2 + $0xa0] sm:$0xff]  ;;  %v4095_v33 = vpack.c.bf16 %v61_v28, %v59_v27 }
  0x2e   :  { %4084 = vmatpush1.bf16.msra.mxu0 %v4083_v13  ;;  %v65_v32 = vld [vmem:[#allocation2 + $0xb0] sm:$0xff]  ;;  %v68_v34 = vld [vmem:[#allocation2 + $0xc8] sm:$0xff]  ;;  %v70_v35 = vld [vmem:[#allocation2 + $0xd8] sm:$0xff]  ;;  %v4097_v39 = vpack.c.bf16 %v66_v30, %v64_v29 }
  0x2f   :  { %4086 = vmatprep.subr.bf16.mxu0 %v4085_v14  ;;  %v5750_v36 = vld.sshfl [vmem:[%s6528_s0] sm:$0x33 pattern:$0x76325410]  ;;  %v189_v37 = vld [vmem:[#allocation2 + $0x188] sm:$0xff]  ;;  %v191_v38 = vld [vmem:[#allocation2 + $0x198] sm:$0xff]  ;;  %v4099_v52 = vpack.c.bf16 %v65_v32, %v63_v31  ;;  %v4101_v56 = vpack.c.bf16 %v70_v35, %v68_v34 }
  0x30   :  { %v111_v40 = vcombine.high %v5750_v36, %v5750_v36  ;;  %v4125_v41 = vpack.c.bf16 %v191_v38, %v189_v37  ;;  %v188_v42 = vld [vmem:[#allocation2 + $0x180] sm:$0xff]  ;;  %v190_v43 = vld [vmem:[#allocation2 + $0x190] sm:$0xff]  ;;  %v193_v44 = vld [vmem:[#allocation2 + $0x1a8] sm:$0xff] }
  0x31   :  { %v4127_v45 = vpack.c.bf16 %v190_v43, %v188_v42  ;;  %v195_v46 = vld [vmem:[#allocation2 + $0x1b8] sm:$0xff]  ;;  %v192_v47 = vld [vmem:[#allocation2 + $0x1a0] sm:$0xff]  ;;  %v194_v48 = vld [vmem:[#allocation2 + $0x1b0] sm:$0xff] }
  0x32   :  { %4088 = vmatpush1.bf16.msra.mxu0 %v4087_v19  ;;  %4046 = vmatprep.mubr.msk.f32.mxu0 %vm113_vm0, %v111_v40  ;;  %v4129_v49 = vpack.c.bf16 %v195_v46, %v193_v44  ;;  %v197_v50 = vld [vmem:[#allocation2 + $0x1c8] sm:$0xff]  ;;  %v199_v51 = vld [vmem:[#allocation2 + $0x1d8] sm:$0xff]  ;;  %v67_v53 = vld [vmem:[#allocation2 + $0xc0] sm:$0xff]  ;;  %v4131_v55 = vpack.c.bf16 %v194_v48, %v192_v47 }
  0x33   :  { %4090 = vmatprep.subr.bf16.mxu0 %v4089_v20  ;;  %4126 = vmatprep.subr.bf16.mxu1 %v4125_v41  ;;  %v69_v54 = vld [vmem:[#allocation2 + $0xd0] sm:$0xff]  ;;  %v72_v57 = vld [vmem:[#allocation2 + $0xe8] sm:$0xff]  ;;  %v4133_v58 = vpack.c.bf16 %v199_v51, %v197_v50  ;;  %v196_v59 = vld [vmem:[#allocation2 + $0x1c0] sm:$0xff] }
  0x34   :  { %4128 = vmatpush1.bf16.msra.mxu1 %v4127_v45  ;;  %v198_v60 = vld [vmem:[#allocation2 + $0x1d0] sm:$0xff]  ;;  %v74_v61 = vld [vmem:[#allocation2 + $0xf8] sm:$0xff]  ;;  %v201_v62 = vld [vmem:[#allocation2 + $0x1e8] sm:$0xff]  ;;  %v4103_v0 = vpack.c.bf16 %v69_v54, %v67_v53 }
  0x35   :  { %4130 = vmatprep.subr.bf16.mxu1 %v4129_v49  ;;  %v203_v63 = vld [vmem:[#allocation2 + $0x1f8] sm:$0xff]  ;;  %v71_v1 = vld [vmem:[#allocation2 + $0xe0] sm:$0xff]  ;;  %v73_v2 = vld [vmem:[#allocation2 + $0xf0] sm:$0xff]  ;;  %v4135_v3 = vpack.c.bf16 %v198_v60, %v196_v59  ;;  %v4105_v4 = vpack.c.bf16 %v74_v61, %v72_v57 }
  0x36   :  { %4092 = vmatpush1.bf16.msra.mxu0 %v4091_v25  ;;  %v76_v5 = vld [vmem:[#allocation2 + $0x108] sm:$0xff]  ;;  %v4137_v6 = vpack.c.bf16 %v203_v63, %v201_v62  ;;  %v200_v7 = vld [vmem:[#allocation2 + $0x1e0] sm:$0xff]  ;;  %v202_v8 = vld [vmem:[#allocation2 + $0x1f0] sm:$0xff]  ;;  %v4107_v12 = vpack.c.bf16 %v73_v2, %v71_v1 }
  0x37   :  { %4094 = vmatprep.subr.bf16.mxu0 %v4093_v26  ;;  %v78_v9 = vld [vmem:[#allocation2 + $0x118] sm:$0xff]  ;;  %v205_v10 = vld [vmem:[#allocation2 + $0x208] sm:$0xff]  ;;  %v75_v13 = vld [vmem:[#allocation2 + $0x100] sm:$0xff]  ;;  %v4139_v15 = vpack.c.bf16 %v202_v8, %v200_v7 }
  0x38   :  { %4132 = vmatpush1.bf16.msra.mxu1 %v4131_v55  ;;  %v207_v11 = vld [vmem:[#allocation2 + $0x218] sm:$0xff]  ;;  %v77_v14 = vld [vmem:[#allocation2 + $0x110] sm:$0xff]  ;;  %v4109_v16 = vpack.c.bf16 %v78_v9, %v76_v5  ;;  %v80_v17 = vld [vmem:[#allocation2 + $0x128] sm:$0xff] }
  0x39   :  { %4134 = vmatprep.subr.bf16.mxu1 %v4133_v58  ;;  %v4141_v18 = vpack.c.bf16 %v207_v11, %v205_v10  ;;  %v204_v19 = vld [vmem:[#allocation2 + $0x200] sm:$0xff]  ;;  %v206_v20 = vld [vmem:[#allocation2 + $0x210] sm:$0xff]  ;;  %v82_v21 = vld [vmem:[#allocation2 + $0x138] sm:$0xff]  ;;  %v4111_v24 = vpack.c.bf16 %v77_v14, %v75_v13 }
  0x3a   :  { %4096 = vmatpush1.bf16.msra.mxu0 %v4095_v33  ;;  %v209_v22 = vld [vmem:[#allocation2 + $0x228] sm:$0xff]  ;;  %v211_v23 = vld [vmem:[#allocation2 + $0x238] sm:$0xff]  ;;  %v79_v25 = vld [vmem:[#allocation2 + $0x120] sm:$0xff]  ;;  %v4143_v27 = vpack.c.bf16 %v206_v20, %v204_v19  ;;  %v4113_v28 = vpack.c.bf16 %v82_v21, %v80_v17 }
  0x3b   :  { %4098 = vmatprep.subr.bf16.mxu0 %v4097_v39  ;;  %v81_v26 = vld [vmem:[#allocation2 + $0x130] sm:$0xff]  ;;  %v84_v29 = vld [vmem:[#allocation2 + $0x148] sm:$0xff]  ;;  %v4145_v30 = vpack.c.bf16 %v211_v23, %v209_v22  ;;  %v208_v31 = vld [vmem:[#allocation2 + $0x220] sm:$0xff] }
  0x3c   :  { %4136 = vmatpush1.bf16.msra.mxu1 %v4135_v3  ;;  %v210_v32 = vld [vmem:[#allocation2 + $0x230] sm:$0xff]  ;;  %v86_v33 = vld [vmem:[#allocation2 + $0x158] sm:$0xff]  ;;  %v213_v34 = vld [vmem:[#allocation2 + $0x248] sm:$0xff]  ;;  %v4115_v37 = vpack.c.bf16 %v81_v26, %v79_v25 }
  0x3d   :  { %4138 = vmatprep.subr.bf16.mxu1 %v4137_v6  ;;  %v215_v35 = vld [vmem:[#allocation2 + $0x258] sm:$0xff]  ;;  %v83_v38 = vld [vmem:[#allocation2 + $0x140] sm:$0xff]  ;;  %v85_v39 = vld [vmem:[#allocation2 + $0x150] sm:$0xff]  ;;  %v4147_v40 = vpack.c.bf16 %v210_v32, %v208_v31  ;;  %v4117_v41 = vpack.c.bf16 %v86_v33, %v84_v29  ;;  %v93_v33 = vlaneseq }
  0x3e   :  { %4100 = vmatpush1.bf16.msra.mxu0 %v4099_v52  ;;  %v88_v42 = vld [vmem:[#allocation2 + $0x168] sm:$0xff]  ;;  %v4149_v43 = vpack.c.bf16 %v215_v35, %v213_v34  ;;  %v212_v44 = vld [vmem:[#allocation2 + $0x240] sm:$0xff]  ;;  %v214_v45 = vld [vmem:[#allocation2 + $0x250] sm:$0xff]  ;;  %v4119_v49 = vpack.c.bf16 %v85_v39, %v83_v38 }
  0x3f   :  { %4102 = vmatprep.subr.bf16.mxu0 %v4101_v56  ;;  %v90_v46 = vld [vmem:[#allocation2 + $0x178] sm:$0xff]  ;;  %v217_v47 = vld [vmem:[#allocation2 + $0x268] sm:$0xff]  ;;  %v87_v50 = vld [vmem:[#allocation2 + $0x160] sm:$0xff]  ;;  %v4151_v51 = vpack.c.bf16 %v214_v45, %v212_v44  ;;  %v5756_v34 = vshrl.u32 %v93_v33, 7 }
  0x40   :  { %4140 = vmatpush1.bf16.msra.mxu1 %v4139_v15  ;;  %v219_v48 = vld [vmem:[#allocation2 + $0x278] sm:$0xff]  ;;  %v4121_v52 = vpack.c.bf16 %v90_v46, %v88_v42  ;;  %v89_v53 = vld [vmem:[#allocation2 + $0x170] sm:$0xff]  ;;  %v216_v55 = vld [vmem:[#allocation2 + $0x260] sm:$0xff] }
  0x41   :  { %4142 = vmatprep.subr.bf16.mxu1 %v4141_v18  ;;  %v4153_v54 = vpack.c.bf16 %v219_v48, %v217_v47  ;;  %v218_v56 = vld [vmem:[#allocation2 + $0x270] sm:$0xff]  ;;  %v221_v57 = vld [vmem:[#allocation2 + $0x288] sm:$0xff]  ;;  %v223_v58 = vld [vmem:[#allocation2 + $0x298] sm:$0xff]  ;;  %v4123_v59 = vpack.c.bf16 %v89_v53, %v87_v50  ;;  %6538 = vst [vmem:[#allocation8_spill] sm:$0xff] %v5756_v34  ;;  %v5759_v35 = vsub.s32 1, %v5756_v34  ;;  %v5762_v38 = vsub.s32 0, %v5756_v34 }
  0x42   :  { %4104 = vmatpush1.bf16.msra.mxu0 %v4103_v0  ;;  %v4155_v60 = vpack.c.bf16 %v218_v56, %v216_v55  ;;  %v4157_v61 = vpack.c.bf16 %v223_v58, %v221_v57  ;;  %v220_v62 = vld [vmem:[#allocation2 + $0x280] sm:$0xff]  ;;  %v222_v63 = vld [vmem:[#allocation2 + $0x290] sm:$0xff]  ;;  %v225_v0 = vld [vmem:[#allocation2 + $0x2a8] sm:$0xff] }
  0x43   :  { %4106 = vmatprep.subr.bf16.mxu0 %v4105_v4  ;;  %v227_v1 = vld [vmem:[#allocation2 + $0x2b8] sm:$0xff]  ;;  %v4159_v2 = vpack.c.bf16 %v222_v63, %v220_v62  ;;  %v224_v4 = vld [vmem:[#allocation2 + $0x2a0] sm:$0xff]  ;;  %v226_v5 = vld [vmem:[#allocation2 + $0x2b0] sm:$0xff] }
  0x44   :  { %4144 = vmatpush1.bf16.msra.mxu1 %v4143_v27  ;;  %v4161_v3 = vpack.c.bf16 %v227_v1, %v225_v0  ;;  %v229_v6 = vld [vmem:[#allocation2 + $0x2c8] sm:$0xff]  ;;  %v231_v7 = vld [vmem:[#allocation2 + $0x2d8] sm:$0xff]  ;;  %v4163_v8 = vpack.c.bf16 %v226_v5, %v224_v4  ;;  %v228_v10 = vld [vmem:[#allocation2 + $0x2c0] sm:$0xff] }
  0x45   :  { %4146 = vmatprep.subr.bf16.mxu1 %v4145_v30  ;;  %v4165_v9 = vpack.c.bf16 %v231_v7, %v229_v6  ;;  %v230_v11 = vld [vmem:[#allocation2 + $0x2d0] sm:$0xff]  ;;  %v233_v13 = vld [vmem:[#allocation2 + $0x2e8] sm:$0xff]  ;;  %v235_v14 = vld [vmem:[#allocation2 + $0x2f8] sm:$0xff] }
  0x46   :  { %4108 = vmatpush1.bf16.msra.mxu0 %v4107_v12  ;;  %v4167_v12 = vpack.c.bf16 %v230_v11, %v228_v10  ;;  %v4169_v15 = vpack.c.bf16 %v235_v14, %v233_v13  ;;  %v234_v17 = vld [vmem:[#allocation2 + $0x2f0] sm:$0xff]  ;;  %v382_v19 = vld [vmem:[#allocation2 + $0x308] sm:$0xff]  ;;  %v381_v20 = vld [vmem:[#allocation2 + $0x300] sm:$0xff] }
  0x47   :  { %4110 = vmatprep.subr.bf16.mxu0 %v4109_v16  ;;  %v232_v16 = vld [vmem:[#allocation2 + $0x2e0] sm:$0xff]  ;;  %v383_v22 = vld [vmem:[#allocation2 + $0x310] sm:$0xff]  ;;  %v386_v23 = vld [vmem:[#allocation2 + $0x328] sm:$0xff] }
  0x48   :  { %4148 = vmatpush1.bf16.msra.mxu1 %v4147_v40  ;;  %v4171_v18 = vpack.c.bf16 %v234_v17, %v232_v16  ;;  %v4175_v25 = vpack.c.bf16 %v383_v22, %v381_v20  ;;  %v385_v27 = vld [vmem:[#allocation2 + $0x320] sm:$0xff]  ;;  %v390_v29 = vld [vmem:[#allocation2 + $0x348] sm:$0xff]  ;;  %v392_v30 = vld [vmem:[#allocation2 + $0x358] sm:$0xff] }
  0x49   :  { %4150 = vmatprep.subr.bf16.mxu1 %v4149_v43  ;;  %v4181_v32 = vpack.c.bf16 %v392_v30, %v390_v29  ;;  %v389_v45 = vld [vmem:[#allocation2 + $0x340] sm:$0xff]  ;;  %v391_v46 = vld [vmem:[#allocation2 + $0x350] sm:$0xff]  ;;  %v394_v48 = vld [vmem:[#allocation2 + $0x368] sm:$0xff] }
  0x4a   :  { %4112 = vmatpush1.bf16.msra.mxu0 %v4111_v24  ;;  %v388_v24 = vld [vmem:[#allocation2 + $0x338] sm:$0xff]  ;;  %v4183_v47 = vpack.c.bf16 %v391_v46, %v389_v45  ;;  %v397_v57 = vld [vmem:[#allocation2 + $0x380] sm:$0xff]  ;;  %v399_v58 = vld [vmem:[#allocation2 + $0x390] sm:$0xff] }
  0x4b   :  { %4114 = vmatprep.subr.bf16.mxu0 %v4113_v28  ;;  %v4177_v26 = vpack.c.bf16 %v388_v24, %v386_v23  ;;  %v387_v28 = vld [vmem:[#allocation2 + $0x330] sm:$0xff]  ;;  %v400_v55 = vld [vmem:[#allocation2 + $0x398] sm:$0xff]  ;;  %v401_v63 = vld [vmem:[#allocation2 + $0x3a0] sm:$0xff] }
  0x4c   :  { %4152 = vmatpush1.bf16.msra.mxu1 %v4151_v51  ;;  %v4179_v31 = vpack.c.bf16 %v387_v28, %v385_v27  ;;  %v393_v51 = vld [vmem:[#allocation2 + $0x360] sm:$0xff]  ;;  %v403_v0 = vld [vmem:[#allocation2 + $0x3b0] sm:$0xff]  ;;  %v414_v14 = vld [vmem:[#allocation2 + $0x408] sm:$0xff] }
  0x4d   :  { %4154 = vmatprep.subr.bf16.mxu1 %v4153_v54  ;;  %v398_v54 = vld [vmem:[#allocation2 + $0x388] sm:$0xff]  ;;  %v4195_v1 = vpack.c.bf16 %v403_v0, %v401_v63  ;;  %v405_v5 = vld [vmem:[#allocation2 + $0x3c0] sm:$0xff]  ;;  %v407_v6 = vld [vmem:[#allocation2 + $0x3d0] sm:$0xff] }
  0x4e   :  { %4116 = vmatpush1.bf16.msra.mxu0 %v4115_v37  ;;  %v91_v37 = vld [vmem:[#allocation4] sm:$0x3]  ;;  %v4189_v56 = vpack.c.bf16 %v400_v55, %v398_v54  ;;  %v4199_v7 = vpack.c.bf16 %v407_v6, %v405_v5  ;;  %v420_v20 = vld [vmem:[#allocation2 + $0x438] sm:$0xff]  ;;  %v419_v23 = vld [vmem:[#allocation2 + $0x430] sm:$0xff] }
  0x4f   :  { %4118 = vmatprep.subr.bf16.mxu0 %v4117_v41  ;;  %v100_v39 = vrot.slane %v91_v37, %v5759_v35  ;;  %v96_v40 = vrot.slane %v91_v37, %v5762_v38  ;;  %v409_v11 = vld [vmem:[#allocation2 + $0x3e0] sm:$0xff]  ;;  %v423_v29 = vld [vmem:[#allocation2 + $0x450] sm:$0xff]  ;;  %v583_v54 = vld [vmem:[#allocation2 + $0x4c8] sm:$0xff] }
  0x50   :  { %4156 = vmatpush1.bf16.msra.mxu1 %v4155_v60  ;;  %v402_v60 = vld [vmem:[#allocation2 + $0x3a8] sm:$0xff]  ;;  %v413_v17 = vld [vmem:[#allocation2 + $0x400] sm:$0xff]  ;;  %v585_v55 = vld [vmem:[#allocation2 + $0x4d8] sm:$0xff] }
  0x51   :  { %4158 = vmatprep.subr.bf16.mxu1 %v4157_v61  ;;  %v404_v61 = vld [vmem:[#allocation2 + $0x3b8] sm:$0xff]  ;;  %v417_v22 = vld [vmem:[#allocation2 + $0x420] sm:$0xff]  ;;  %vm4037_vm3 = vmor %vm4036_vm2, %vm4035_vm1 }
  0x52   :  { %4120 = vmatpush1.bf16.msra.mxu0 %v4119_v49  ;;  %v396_v49 = vld [vmem:[#allocation2 + $0x378] sm:$0xff]  ;;  %v4193_v62 = vpack.c.bf16 %v404_v61, %v402_v60  ;;  %v4211_v24 = vpack.c.bf16 %v419_v23, %v417_v22  ;;  %v421_v28 = vld [vmem:[#allocation2 + $0x440] sm:$0xff] }
  0x53   :  { %4122 = vmatprep.subr.bf16.mxu0 %v4121_v52  ;;  %v4185_v50 = vpack.c.bf16 %v396_v49, %v394_v48  ;;  %v395_v52 = vld [vmem:[#allocation2 + $0x370] sm:$0xff]  ;;  %v4215_v30 = vpack.c.bf16 %v423_v29, %v421_v28  ;;  %v425_v37 = vld [vmem:[#allocation2 + $0x460] sm:$0xff]  ;;  %v579_v48 = vld [vmem:[#allocation2 + $0x4a8] sm:$0xff] }
  0x54   :  { %4160 = vmatpush1.bf16.msra.mxu1 %v4159_v2  ;;  %v4187_v53 = vpack.c.bf16 %v395_v52, %v393_v51  ;;  %v406_v2 = vld [vmem:[#allocation2 + $0x3c8] sm:$0xff]  ;;  %v574_v45 = vld [vmem:[#allocation2 + $0x480] sm:$0xff]  ;;  %v581_v49 = vld [vmem:[#allocation2 + $0x4b8] sm:$0xff] }
  0x55   :  { %4162 = vmatprep.subr.bf16.mxu1 %v4161_v3  ;;  %v408_v3 = vld [vmem:[#allocation2 + $0x3d8] sm:$0xff]  ;;  %v4225_v51 = vpack.c.bf16 %v581_v49, %v579_v48  ;;  %v578_v52 = vld [vmem:[#allocation2 + $0x4a0] sm:$0xff]  ;;  %v587_v29 = vld [vmem:[#allocation2 + $0x4e8] sm:$0xff] }
  0x56   :  { %4124 = vmatpush1.bf16.msra.mxu0 %v4123_v59  ;;  %v4191_v59 = vpack.c.bf16 %v399_v58, %v397_v57  ;;  %v4197_v4 = vpack.c.bf16 %v408_v3, %v406_v2  ;;  %v4229_v57 = vpack.c.bf16 %v585_v55, %v583_v54  ;;  %v582_v58 = vld [vmem:[#allocation2 + $0x4c0] sm:$0xff]  ;;  %v597_v48 = vld [vmem:[#allocation2 + $0x538] sm:$0xff] }
  0x57   :  { %v324_v61 = vld [vmem:[#allocation4 + $0x4] sm:$0x3]  ;;  %v601_v54 = vld [vmem:[#allocation2 + $0x558] sm:$0xff] }
  0x58   :  { %4164 = vmatpush1.bf16.msra.mxu1 %v4163_v8  ;;  %v410_v8 = vld [vmem:[#allocation2 + $0x3e8] sm:$0xff]  ;;  %v327_v63 = vsub.f32 0.0, %v324_v61  ;;  %v2343_v34 = vld [vmem:[#allocation2 + $0x1e38] sm:$0xff] }
  0x59   :  { %181 = vmatmul.mubr.f32.vlgmr.msra.gmra.mrb[0].mxu0 %v5750_v36  ;;  %4166 = vmatprep.subr.bf16.mxu1 %v4165_v9  ;;  %v384_v36 = vld [vmem:[#allocation2 + $0x318] sm:$0xff] }
  0x5a   :  { %v4173_v21 = vpack.c.bf16 %v384_v36, %v382_v19  ;;  %v412_v9 = vld [vmem:[#allocation2 + $0x3f8] sm:$0xff]  ;;  %v418_v36 = vld [vmem:[#allocation2 + $0x428] sm:$0xff]  ;;  %v332_v2 = vrot.slane %v327_v63, %v5762_v38 }
  0x5b   :  { %v4201_v10 = vpack.c.bf16 %v412_v9, %v410_v8 }
  0x5c   :  { %4168 = vmatpush1.bf16.msra.mxu1 %v4167_v12  ;;  %4174 = vmatprep.subr.bf16.mxu0 %v4173_v21  ;;  %v411_v12 = vld [vmem:[#allocation2 + $0x3f0] sm:$0xff]  ;;  %v4209_v21 = vpack.c.bf16 %v420_v20, %v418_v36 }
  0x5d   :  { %4170 = vmatprep.subr.bf16.mxu1 %v4169_v15  ;;  %4176 = vmatpush1.bf16.msra.mxu0 %v4175_v25  ;;  %v4203_v13 = vpack.c.bf16 %v411_v12, %v409_v11  ;;  %v416_v15 = vld [vmem:[#allocation2 + $0x418] sm:$0xff]  ;;  %v422_v25 = vld [vmem:[#allocation2 + $0x448] sm:$0xff] }
  0x5e   :  { %4178 = vmatprep.subr.bf16.mxu0 %v4177_v26  ;;  %v4205_v16 = vpack.c.bf16 %v416_v15, %v414_v14  ;;  %v424_v26 = vld [vmem:[#allocation2 + $0x458] sm:$0xff] }
  0x5f   :  { %v4213_v27 = vpack.c.bf16 %v424_v26, %v422_v25 }
  0x60   :  { %4172 = vmatpush1.bf16.msra.mxu1 %v4171_v18  ;;  %v415_v18 = vld [vmem:[#allocation2 + $0x410] sm:$0xff] }
  0x61   :  { %4180 = vmatpush1.bf16.msra.mxu0 %v4179_v31  ;;  %v4207_v19 = vpack.c.bf16 %v415_v18, %v413_v17  ;;  %v426_v31 = vld [vmem:[#allocation2 + $0x468] sm:$0xff] }
  0x62   :  { %4182 = vmatprep.subr.bf16.mxu0 %v4181_v32  ;;  %v428_v32 = vld [vmem:[#allocation2 + $0x478] sm:$0xff] }
  0x63   :  { %v4217_v33 = vpack.c.bf16 %v428_v32, %v426_v31  ;;  %v586_v32 = vld [vmem:[#allocation2 + $0x4e0] sm:$0xff] }
  0x65   :  { %4184 = vmatpush1.bf16.msra.mxu0 %v4183_v47  ;;  %v576_v47 = vld [vmem:[#allocation2 + $0x490] sm:$0xff] }
  0x66   :  { %4186 = vmatprep.subr.bf16.mxu0 %v4185_v50  ;;  %v4223_v50 = vpack.c.bf16 %v576_v47, %v574_v45  ;;  %v592_v45 = vld [vmem:[#allocation2 + $0x510] sm:$0xff]  ;;  %v595_v47 = vld [vmem:[#allocation2 + $0x528] sm:$0xff] }
  0x67   :  { %v4241_v49 = vpack.c.bf16 %v597_v48, %v595_v47  ;;  %v855_v48 = vld [vmem:[#allocation2 + $0x7c0] sm:$0xff] }
  0x69   :  { %4188 = vmatpush1.bf16.msra.mxu0 %v4187_v53  ;;  %v580_v53 = vld [vmem:[#allocation2 + $0x4b0] sm:$0xff] }
  0x6a   :  { %4190 = vmatprep.subr.bf16.mxu0 %v4189_v56  ;;  %v4227_v56 = vpack.c.bf16 %v580_v53, %v578_v52  ;;  %v599_v53 = vld [vmem:[#allocation2 + $0x548] sm:$0xff] }
  0x6b   :  { %v4245_v55 = vpack.c.bf16 %v601_v54, %v599_v53  ;;  %v859_v54 = vld [vmem:[#allocation2 + $0x7e0] sm:$0xff] }
  0x6d   :  { %4192 = vmatpush1.bf16.msra.mxu0 %v4191_v59  ;;  %v584_v59 = vld [vmem:[#allocation2 + $0x4d0] sm:$0xff] }
  0x6e   :  { %4194 = vmatprep.subr.bf16.mxu0 %v4193_v62  ;;  %v4231_v60 = vpack.c.bf16 %v584_v59, %v582_v58  ;;  %v237_v62 = vld [vmem:[#allocation4 + $0x2] sm:$0x3]  ;;  %v603_v59 = vld [vmem:[#allocation2 + $0x568] sm:$0xff] }
  0x6f   :  { %v242_v0 = vrot.slane %v237_v62, %v5762_v38 }
  0x71   :  { %4196 = vmatpush1.bf16.msra.mxu0 %v4195_v1  ;;  %v246_v1 = vrot.slane %v237_v62, %v5759_v35  ;;  %v602_v62 = vld [vmem:[#allocation2 + $0x560] sm:$0xff] }
  0x72   :  { %4198 = vmatprep.subr.bf16.mxu0 %v4197_v4  ;;  %v336_v4 = vrot.slane %v327_v63, %v5759_v35  ;;  %v604_v63 = vld [vmem:[#allocation2 + $0x570] sm:$0xff] }
  0x75   :  { %4200 = vmatpush1.bf16.msra.mxu0 %v4199_v7 }
  0x76   :  { %4202 = vmatprep.subr.bf16.mxu0 %v4201_v10 }
  0x79   :  { %4204 = vmatpush1.bf16.msra.mxu0 %v4203_v13 }
  0x7a   :  { %4206 = vmatprep.subr.bf16.mxu0 %v4205_v16  ;;  %v326_v16 = vld [vmem:[#allocation4 + $0x6] sm:$0x3] }
  0x7b   :  { %v351_v17 = vsub.f32 1.0, %v326_v16  ;;  %v369_v36 = vrot.slane %v326_v16, %v5762_v38 }
  0x7d   :  { %4208 = vmatpush1.bf16.msra.mxu0 %v4207_v19  ;;  %v356_v18 = vrot.slane %v351_v17, %v5762_v38  ;;  %v360_v19 = vrot.slane %v351_v17, %v5759_v35  ;;  %v616_v17 = vld [vmem:[#allocation2 + $0x5d0] sm:$0xff] }
  0x7e   :  { %4210 = vmatprep.subr.bf16.mxu0 %v4209_v21  ;;  %v373_v21 = vrot.slane %v326_v16, %v5759_v35  ;;  %v614_v16 = vld [vmem:[#allocation2 + $0x5c0] sm:$0xff] }
  0x81   :  { %4212 = vmatpush1.bf16.msra.mxu0 %v4211_v24 }
  0x82   :  { %4214 = vmatprep.subr.bf16.mxu0 %v4213_v27 }
  0x85   :  { %4216 = vmatpush1.bf16.msra.mxu0 %v4215_v30  ;;  %v589_v30 = vld [vmem:[#allocation2 + $0x4f8] sm:$0xff] }
  0x86   :  { %4218 = vmatprep.subr.bf16.mxu0 %v4217_v33  ;;  %v4233_v31 = vpack.c.bf16 %v589_v30, %v587_v29  ;;  %v588_v33 = vld [vmem:[#allocation2 + $0x4f0] sm:$0xff]  ;;  %v847_v29 = vld [vmem:[#allocation2 + $0x780] sm:$0xff] }
 0x12c   :  { %v182_v41 = vpop.f32.mrb[0].mxu0 }
 0x12d   :  { %v184_v42 = vpop.f32.mrb[1].mxu0  ;;  %v5768_v44 = vadd.f32 %v182_v41, %v96_v40  ;;  %v575_v41 = vld [vmem:[#allocation2 + $0x488] sm:$0xff] }
 0x12e   :  { %v5766_v43 = vadd.f32 %v184_v42, %v100_v39  ;;  %v427_v39 = vld [vmem:[#allocation2 + $0x470] sm:$0xff]  ;;  %v577_v42 = vld [vmem:[#allocation2 + $0x498] sm:$0xff] }
 0x12f   :  { %v4219_v40 = vpack.c.bf16 %v427_v39, %v425_v37  ;;  %v4221_v46 = vpack.c.bf16 %v577_v42, %v575_v41  ;;  %v4235_v37 = vpack.c.bf16 %v588_v33, %v586_v32  ;;  %v591_v39 = vld [vmem:[#allocation2 + $0x508] sm:$0xff]  ;;  %v590_v42 = vld [vmem:[#allocation2 + $0x500] sm:$0xff]  ;;  %v854_v33 = vld [vmem:[#allocation2 + $0x7b8] sm:$0xff] }
 0x130   :  { %4047 = vmatprep.mubr.msk.f32.mxu1 %vm113_vm0, %v5766_v43  ;;  %v852_v32 = vld [vmem:[#allocation2 + $0x7a8] sm:$0xff] }
 0x131   :  { %317 = vmatmul.mubr.f32.vlgmr.msra.gmra.mrb[0].mxu1 %v5768_v44  ;;  %4220 = vmatpush1.bf16.msra.mxu0 %v4219_v40  ;;  %v593_v40 = vld [vmem:[#allocation2 + $0x518] sm:$0xff] }
 0x132   :  { %4222 = vmatprep.subr.bf16.mxu1 %v4221_v46  ;;  %v4237_v41 = vpack.c.bf16 %v593_v40, %v591_v39  ;;  %v4239_v46 = vpack.c.bf16 %v592_v45, %v590_v42  ;;  %v4321_v39 = vpack.c.bf16 %v854_v33, %v852_v32  ;;  %v851_v40 = vld [vmem:[#allocation2 + $0x7a0] sm:$0xff]  ;;  %v856_v42 = vld [vmem:[#allocation2 + $0x7c8] sm:$0xff]  ;;  %v858_v45 = vld [vmem:[#allocation2 + $0x7d8] sm:$0xff] }
 0x133   :  { %4224 = vmatpush1.bf16.msra.mxu1 %v4223_v50  ;;  %v594_v50 = vld [vmem:[#allocation2 + $0x520] sm:$0xff]  ;;  %v4325_v47 = vpack.c.bf16 %v858_v45, %v856_v42 }
 0x134   :  { %4226 = vmatprep.subr.bf16.mxu1 %v4225_v51  ;;  %v596_v51 = vld [vmem:[#allocation2 + $0x530] sm:$0xff] }
 0x135   :  { %v4243_v52 = vpack.c.bf16 %v596_v51, %v594_v50  ;;  %v860_v50 = vld [vmem:[#allocation2 + $0x7e8] sm:$0xff]  ;;  %v862_v51 = vld [vmem:[#allocation2 + $0x7f8] sm:$0xff] }
 0x136   :  { %v4329_v53 = vpack.c.bf16 %v862_v51, %v860_v50 }
 0x137   :  { %4228 = vmatpush1.bf16.msra.mxu1 %v4227_v56  ;;  %v598_v56 = vld [vmem:[#allocation2 + $0x540] sm:$0xff] }
 0x138   :  { %4230 = vmatprep.subr.bf16.mxu1 %v4229_v57  ;;  %v600_v57 = vld [vmem:[#allocation2 + $0x550] sm:$0xff] }
 0x139   :  { %v4247_v58 = vpack.c.bf16 %v600_v57, %v598_v56  ;;  %v864_v56 = vld [vmem:[#allocation2 + $0x808] sm:$0xff]  ;;  %v866_v57 = vld [vmem:[#allocation2 + $0x818] sm:$0xff] }
 0x13b   :  { %4232 = vmatpush1.bf16.msra.mxu1 %v4231_v60  ;;  %v605_v60 = vld [vmem:[#allocation2 + $0x578] sm:$0xff] }
 0x13c   :  { %4234 = vmatprep.subr.bf16.mxu1 %v4233_v31  ;;  %v4249_v61 = vpack.c.bf16 %v605_v60, %v603_v59  ;;  %v849_v31 = vld [vmem:[#allocation2 + $0x790] sm:$0xff]  ;;  %v4333_v59 = vpack.c.bf16 %v866_v57, %v864_v56  ;;  %v863_v60 = vld [vmem:[#allocation2 + $0x800] sm:$0xff]  ;;  %v519_v56 = vld [vmem:[#allocation4 + $0xc] sm:$0x3] }
 0x13d   :  { %v544_v57 = vsub.f32 1.0, %v519_v56 }
 0x13f   :  { %4236 = vmatpush1.bf16.msra.mxu1 %v4235_v37  ;;  %v4319_v37 = vpack.c.bf16 %v849_v31, %v847_v29  ;;  %v890_v29 = vld [vmem:[#allocation2 + $0x8d8] sm:$0xff] }
 0x140   :  { %4238 = vmatprep.subr.bf16.mxu1 %v4237_v41  ;;  %v853_v41 = vld [vmem:[#allocation2 + $0x7b0] sm:$0xff] }
 0x143   :  { %4240 = vmatpush1.bf16.msra.mxu1 %v4239_v46  ;;  %v4323_v46 = vpack.c.bf16 %v853_v41, %v851_v40 }
 0x144   :  { %4242 = vmatprep.subr.bf16.mxu1 %v4241_v49  ;;  %v857_v49 = vld [vmem:[#allocation2 + $0x7d0] sm:$0xff] }
 0x147   :  { %4244 = vmatpush1.bf16.msra.mxu1 %v4243_v52  ;;  %v4327_v52 = vpack.c.bf16 %v857_v49, %v855_v48 }
 0x148   :  { %4246 = vmatprep.subr.bf16.mxu1 %v4245_v55  ;;  %v861_v55 = vld [vmem:[#allocation2 + $0x7f0] sm:$0xff] }
 0x14b   :  { %4248 = vmatpush1.bf16.msra.mxu1 %v4247_v58  ;;  %v4331_v58 = vpack.c.bf16 %v861_v55, %v859_v54 }
 0x14c   :  { %4250 = vmatprep.subr.bf16.mxu1 %v4249_v61  ;;  %v865_v61 = vld [vmem:[#allocation2 + $0x810] sm:$0xff] }
 0x204   :  { %v318_v3 = vpop.f32.mrb[0].mxu1 }
 0x205   :  { %v319_v5 = vadd.f32 %v318_v3, %v242_v0  ;;  %v320_v6 = vpop.f32.mrb[1].mxu1  ;;  %v4251_v0 = vpack.c.bf16 %v604_v63, %v602_v62  ;;  %v868_v62 = vld [vmem:[#allocation2 + $0x828] sm:$0xff]  ;;  %v870_v63 = vld [vmem:[#allocation2 + $0x838] sm:$0xff] }
 0x206   :  { %v321_v7 = vadd.f32 %v320_v6, %v246_v1  ;;  %v607_v1 = vld [vmem:[#allocation2 + $0x588] sm:$0xff] }
 0x207   :  { %v339_v8 = vmul.f32 %v332_v2, %v319_v5  ;;  %4252 = vmatpush1.bf16.msra.mxu1 %v4251_v0  ;;  %v609_v2 = vld [vmem:[#allocation2 + $0x598] sm:$0xff]  ;;  %v4335_v0 = vpack.c.bf16 %v865_v61, %v863_v60  ;;  %v562_v60 = vrot.slane %v519_v56, %v5762_v38 }
 0x208   :  { %v340_v9 = vmul.f32 %v336_v4, %v321_v7  ;;  %v4253_v3 = vpack.c.bf16 %v609_v2, %v607_v1  ;;  %v606_v4 = vld [vmem:[#allocation2 + $0x580] sm:$0xff]  ;;  %v4337_v1 = vpack.c.bf16 %v870_v63, %v868_v62  ;;  %v566_v62 = vrot.slane %v519_v56, %v5759_v35 }
 0x209   :  { %v341_v10 = vmul.f32 1.442695, %v339_v8  ;;  %v613_v8 = vld [vmem:[#allocation2 + $0x5b8] sm:$0xff]  ;;  %v867_v2 = vld [vmem:[#allocation2 + $0x820] sm:$0xff] }
 0x20a   :  { %v343_v11 = vmul.f32 1.442695, %v340_v9  ;;  %4254 = vmatprep.subr.bf16.mxu1 %v4253_v3  ;;  %v869_v3 = vld [vmem:[#allocation2 + $0x830] sm:$0xff] }
 0x20b   :  { %5580 = vpow2.f32 %v341_v10  ;;  %v610_v10 = vld [vmem:[#allocation2 + $0x5a0] sm:$0xff] }
 0x20c   :  { %5582 = vpow2.f32 %v343_v11  ;;  %v612_v11 = vld [vmem:[#allocation2 + $0x5b0] sm:$0xff] }
 0x215   :  { %v5581_v12 = vpop.eup %5580 }
 0x216   :  { %v5583_v13 = vpop.eup %5582  ;;  %v345_v14 = vadd.f32 1.0, %v5581_v12  ;;  %v4259_v12 = vpack.c.bf16 %v612_v11, %v610_v10  ;;  %v876_v10 = vld [vmem:[#allocation2 + $0x868] sm:$0xff]  ;;  %v878_v11 = vld [vmem:[#allocation2 + $0x878] sm:$0xff] }
 0x217   :  { %v346_v15 = vadd.f32 1.0, %v5583_v13  ;;  %v615_v13 = vld [vmem:[#allocation2 + $0x5c8] sm:$0xff] }
 0x218   :  { %5584 = vrcp.f32 %v345_v14  ;;  %v617_v14 = vld [vmem:[#allocation2 + $0x5d8] sm:$0xff] }
 0x219   :  { %5586 = vrcp.f32 %v346_v15  ;;  %v4261_v15 = vpack.c.bf16 %v617_v14, %v615_v13  ;;  %v4345_v13 = vpack.c.bf16 %v878_v11, %v876_v10  ;;  %v875_v14 = vld [vmem:[#allocation2 + $0x860] sm:$0xff] }
 0x222   :  { %v5585_v20 = vpop.eup %5584 }
 0x223   :  { %v5587_v22 = vpop.eup %5586  ;;  %v363_v23 = vmul.f32 %v5585_v20, %v356_v18  ;;  %v4263_v18 = vpack.c.bf16 %v616_v17, %v614_v16  ;;  %v880_v16 = vld [vmem:[#allocation2 + $0x888] sm:$0xff]  ;;  %v882_v17 = vld [vmem:[#allocation2 + $0x898] sm:$0xff] }
 0x224   :  { %v364_v24 = vmul.f32 %v5587_v22, %v360_v19  ;;  %v619_v19 = vld [vmem:[#allocation2 + $0x5e8] sm:$0xff]  ;;  %v620_v22 = vld [vmem:[#allocation2 + $0x5f0] sm:$0xff] }
 0x225   :  { %v376_v25 = vadd.f32 %v369_v36, %v363_v23  ;;  %v621_v36 = vld [vmem:[#allocation2 + $0x5f8] sm:$0xff] }
 0x226   :  { %v377_v26 = vadd.f32 %v373_v21, %v364_v24  ;;  %v4265_v20 = vpack.c.bf16 %v621_v36, %v619_v19  ;;  %v618_v21 = vld [vmem:[#allocation2 + $0x5e0] sm:$0xff]  ;;  %v711_v24 = vld [vmem:[#allocation2 + $0x608] sm:$0xff]  ;;  %v4349_v19 = vpack.c.bf16 %v882_v17, %v880_v16 }
 0x227   :  { %v378_v28 = vmul.f32 %v376_v25, %v319_v5  ;;  %v608_v5 = vld [vmem:[#allocation2 + $0x590] sm:$0xff]  ;;  %v4267_v23 = vpack.c.bf16 %v620_v22, %v618_v21  ;;  %v713_v25 = vld [vmem:[#allocation2 + $0x618] sm:$0xff]  ;;  %v879_v36 = vld [vmem:[#allocation2 + $0x880] sm:$0xff] }
 0x228   :  { %v379_v27 = vmul.f32 %v377_v26, %v321_v7  ;;  %v4255_v6 = vpack.c.bf16 %v608_v5, %v606_v4  ;;  %v611_v7 = vld [vmem:[#allocation2 + $0x5a8] sm:$0xff]  ;;  %v4269_v26 = vpack.c.bf16 %v713_v25, %v711_v24  ;;  %v874_v5 = vld [vmem:[#allocation2 + $0x858] sm:$0xff] }
 0x229   :  { %v4257_v9 = vpack.c.bf16 %v613_v8, %v611_v7  ;;  %v872_v4 = vld [vmem:[#allocation2 + $0x848] sm:$0xff]  ;;  %v871_v8 = vld [vmem:[#allocation2 + $0x840] sm:$0xff]  ;;  %v886_v22 = vld [vmem:[#allocation2 + $0x8b8] sm:$0xff] }
 0x22a   :  { %4048 = vmatprep.mubr.msk.f32.mxu0 %vm113_vm0, %v379_v27  ;;  %4256 = vmatpush1.bf16.msra.mxu1 %v4255_v6  ;;  %v848_v27 = vld [vmem:[#allocation2 + $0x788] sm:$0xff]  ;;  %v4339_v6 = vpack.c.bf16 %v869_v3, %v867_v2  ;;  %v4341_v7 = vpack.c.bf16 %v874_v5, %v872_v4  ;;  %v710_v3 = vld [vmem:[#allocation2 + $0x600] sm:$0xff]  ;;  %v712_v4 = vld [vmem:[#allocation2 + $0x610] sm:$0xff] }
 0x22b   :  { %510 = vmatmul.mubr.f32.vlgmr.msra.gmra.mrb[2].mxu0 %v378_v28  ;;  %4258 = vmatprep.subr.bf16.mxu1 %v4257_v9  ;;  %v850_v28 = vld [vmem:[#allocation2 + $0x798] sm:$0xff]  ;;  %v873_v9 = vld [vmem:[#allocation2 + $0x850] sm:$0xff]  ;;  %v884_v21 = vld [vmem:[#allocation2 + $0x8a8] sm:$0xff] }
 0x22c   :  { %v4317_v30 = vpack.c.bf16 %v850_v28, %v848_v27  ;;  %v517_v24 = vld [vmem:[#allocation4 + $0xa] sm:$0x3]  ;;  %v4353_v25 = vpack.c.bf16 %v886_v22, %v884_v21  ;;  %v885_v27 = vld [vmem:[#allocation2 + $0x8b0] sm:$0xff] }
 0x22d   :  { %v888_v28 = vld [vmem:[#allocation2 + $0x8c8] sm:$0xff]  ;;  %v520_v31 = vsub.f32 0.0, %v517_v24  ;;  %v724_v24 = vld [vmem:[#allocation2 + $0x670] sm:$0xff] }
 0x22e   :  { %4260 = vmatpush1.bf16.msra.mxu1 %v4259_v12  ;;  %4318 = vmatprep.subr.bf16.mxu0 %v4317_v30  ;;  %v4343_v12 = vpack.c.bf16 %v873_v9, %v871_v8  ;;  %v430_v30 = vld [vmem:[#allocation4 + $0x8] sm:$0x3]  ;;  %v4357_v33 = vpack.c.bf16 %v890_v29, %v888_v28  ;;  %v4271_v9 = vpack.c.bf16 %v712_v4, %v710_v3  ;;  %v728_v29 = vld [vmem:[#allocation2 + $0x690] sm:$0xff]  ;;  %v753_v3 = vld [vmem:[#allocation2 + $0x758] sm:$0xff] }
 0x22f   :  { %4262 = vmatprep.subr.bf16.mxu1 %v4261_v15  ;;  %4320 = vmatpush1.bf16.msra.mxu0 %v4319_v37  ;;  %v877_v15 = vld [vmem:[#allocation2 + $0x870] sm:$0xff]  ;;  %v435_v37 = vrot.slane %v430_v30, %v5762_v38  ;;  %v525_v40 = vrot.slane %v520_v31, %v5762_v38  ;;  %v529_v42 = vrot.slane %v520_v31, %v5759_v35  ;;  %v733_v31 = vld [vmem:[#allocation2 + $0x6b8] sm:$0xff] }
 0x230   :  { %4322 = vmatprep.subr.bf16.mxu0 %v4321_v39  ;;  %v439_v39 = vrot.slane %v430_v30, %v5759_v35  ;;  %v731_v30 = vld [vmem:[#allocation2 + $0x6a8] sm:$0xff] }
 0x232   :  { %4264 = vmatpush1.bf16.msra.mxu1 %v4263_v18  ;;  %v4347_v18 = vpack.c.bf16 %v877_v15, %v875_v14  ;;  %v719_v14 = vld [vmem:[#allocation2 + $0x648] sm:$0xff]  ;;  %v721_v15 = vld [vmem:[#allocation2 + $0x658] sm:$0xff] }
 0x233   :  { %4266 = vmatprep.subr.bf16.mxu1 %v4265_v20  ;;  %4324 = vmatpush1.bf16.msra.mxu0 %v4323_v46  ;;  %v881_v20 = vld [vmem:[#allocation2 + $0x890] sm:$0xff]  ;;  %v4277_v17 = vpack.c.bf16 %v721_v15, %v719_v14  ;;  %v887_v15 = vld [vmem:[#allocation2 + $0x8c0] sm:$0xff] }
 0x234   :  { %4326 = vmatprep.subr.bf16.mxu0 %v4325_v47 }
 0x236   :  { %4268 = vmatpush1.bf16.msra.mxu1 %v4267_v23  ;;  %v4351_v23 = vpack.c.bf16 %v881_v20, %v879_v36  ;;  %v723_v36 = vld [vmem:[#allocation2 + $0x668] sm:$0xff]  ;;  %v725_v20 = vld [vmem:[#allocation2 + $0x678] sm:$0xff] }
 0x237   :  { %4270 = vmatprep.subr.bf16.mxu1 %v4269_v26  ;;  %4328 = vmatpush1.bf16.msra.mxu0 %v4327_v52  ;;  %v883_v26 = vld [vmem:[#allocation2 + $0x8a0] sm:$0xff]  ;;  %v4281_v22 = vpack.c.bf16 %v725_v20, %v723_v36 }
 0x238   :  { %4330 = vmatprep.subr.bf16.mxu0 %v4329_v53  ;;  %v4355_v32 = vpack.c.bf16 %v885_v27, %v883_v26  ;;  %v729_v26 = vld [vmem:[#allocation2 + $0x698] sm:$0xff]  ;;  %v891_v20 = vld [vmem:[#allocation2 + $0x8e0] sm:$0xff] }
 0x23b   :  { %4332 = vmatpush1.bf16.msra.mxu0 %v4331_v58  ;;  %v549_v58 = vrot.slane %v544_v57, %v5762_v38 }
 0x23c   :  { %4334 = vmatprep.subr.bf16.mxu0 %v4333_v59  ;;  %v553_v59 = vrot.slane %v544_v57, %v5759_v35 }
 0x23f   :  { %4336 = vmatpush1.bf16.msra.mxu0 %v4335_v0 }
 0x240   :  { %4338 = vmatprep.subr.bf16.mxu0 %v4337_v1 }
 0x243   :  { %4340 = vmatpush1.bf16.msra.mxu0 %v4339_v6  ;;  %v715_v6 = vld [vmem:[#allocation2 + $0x628] sm:$0xff] }
 0x244   :  { %4342 = vmatprep.subr.bf16.mxu0 %v4341_v7  ;;  %v717_v7 = vld [vmem:[#allocation2 + $0x638] sm:$0xff] }
 0x245   :  { %v4273_v11 = vpack.c.bf16 %v717_v7, %v715_v6  ;;  %v750_v6 = vld [vmem:[#allocation2 + $0x740] sm:$0xff]  ;;  %v752_v7 = vld [vmem:[#allocation2 + $0x750] sm:$0xff] }
 0x247   :  { %4344 = vmatpush1.bf16.msra.mxu0 %v4343_v12  ;;  %v714_v12 = vld [vmem:[#allocation2 + $0x620] sm:$0xff] }
 0x248   :  { %4346 = vmatprep.subr.bf16.mxu0 %v4345_v13  ;;  %v716_v13 = vld [vmem:[#allocation2 + $0x630] sm:$0xff] }
 0x249   :  { %v4275_v16 = vpack.c.bf16 %v716_v13, %v714_v12  ;;  %v754_v12 = vld [vmem:[#allocation2 + $0x760] sm:$0xff]  ;;  %v756_v13 = vld [vmem:[#allocation2 + $0x770] sm:$0xff] }
 0x24a   :  { %v4315_v14 = vpack.c.bf16 %v756_v13, %v754_v12  ;;  %v1067_v12 = vld [vmem:[#allocation2 + $0x9d8] sm:$0xff] }
 0x24b   :  { %4348 = vmatpush1.bf16.msra.mxu0 %v4347_v18  ;;  %v718_v18 = vld [vmem:[#allocation2 + $0x640] sm:$0xff] }
 0x24c   :  { %4350 = vmatprep.subr.bf16.mxu0 %v4349_v19  ;;  %v720_v19 = vld [vmem:[#allocation2 + $0x650] sm:$0xff] }
 0x24d   :  { %v4279_v21 = vpack.c.bf16 %v720_v19, %v718_v18  ;;  %v892_v18 = vld [vmem:[#allocation2 + $0x8e8] sm:$0xff]  ;;  %v894_v19 = vld [vmem:[#allocation2 + $0x8f8] sm:$0xff] }
 0x24e   :  { %v4361_v36 = vpack.c.bf16 %v894_v19, %v892_v18  ;;  %v1071_v18 = vld [vmem:[#allocation2 + $0x9f8] sm:$0xff] }
 0x24f   :  { %4352 = vmatpush1.bf16.msra.mxu0 %v4351_v23  ;;  %v722_v23 = vld [vmem:[#allocation2 + $0x660] sm:$0xff] }
 0x250   :  { %4354 = vmatprep.subr.bf16.mxu0 %v4353_v25  ;;  %v727_v25 = vld [vmem:[#allocation2 + $0x688] sm:$0xff]  ;;  %v4283_v27 = vpack.c.bf16 %v724_v24, %v722_v23  ;;  %v1043_v24 = vld [vmem:[#allocation2 + $0x918] sm:$0xff] }
 0x251   :  { %v4285_v28 = vpack.c.bf16 %v729_v26, %v727_v25  ;;  %v1041_v23 = vld [vmem:[#allocation2 + $0x908] sm:$0xff] }
 0x252   :  { %v4365_v25 = vpack.c.bf16 %v1043_v24, %v1041_v23  ;;  %v623_v26 = vld [vmem:[#allocation4 + $0xe] sm:$0x3]  ;;  %v1075_v23 = vld [vmem:[#allocation2 + $0xa18] sm:$0xff] }
 0x253   :  { %4356 = vmatpush1.bf16.msra.mxu0 %v4355_v32 }
 0x254   :  { %4358 = vmatprep.subr.bf16.mxu0 %v4357_v33  ;;  %v4289_v33 = vpack.c.bf16 %v733_v31, %v731_v30 }
 0x2fe   :  { %v511_v41 = vpop.f32.mrb[2].mxu0 }
 0x2ff   :  { %v512_v45 = vadd.f32 %v511_v41, %v435_v37  ;;  %v513_v46 = vpop.f32.mrb[3].mxu0  ;;  %v730_v37 = vld [vmem:[#allocation2 + $0x6a0] sm:$0xff]  ;;  %v737_v41 = vld [vmem:[#allocation2 + $0x6d8] sm:$0xff] }
 0x300   :  { %v514_v47 = vadd.f32 %v513_v46, %v439_v39  ;;  %v732_v39 = vld [vmem:[#allocation2 + $0x6b0] sm:$0xff]  ;;  %v734_v46 = vld [vmem:[#allocation2 + $0x6c0] sm:$0xff] }
 0x301   :  { %v532_v48 = vmul.f32 %v525_v40, %v512_v45  ;;  %v735_v40 = vld [vmem:[#allocation2 + $0x6c8] sm:$0xff] }
 0x302   :  { %v533_v49 = vmul.f32 %v529_v42, %v514_v47  ;;  %v4291_v42 = vpack.c.bf16 %v732_v39, %v730_v37  ;;  %v1042_v37 = vld [vmem:[#allocation2 + $0x910] sm:$0xff] }
 0x303   :  { %v534_v50 = vmul.f32 1.442695, %v532_v48  ;;  %v739_v48 = vld [vmem:[#allocation2 + $0x6e8] sm:$0xff] }
 0x304   :  { %v536_v51 = vmul.f32 1.442695, %v533_v49  ;;  %v741_v49 = vld [vmem:[#allocation2 + $0x6f8] sm:$0xff] }
 0x305   :  { %5588 = vpow2.f32 %v534_v50 }
 0x306   :  { %5590 = vpow2.f32 %v536_v51  ;;  %v4297_v51 = vpack.c.bf16 %v741_v49, %v739_v48  ;;  %v1044_v48 = vld [vmem:[#allocation2 + $0x920] sm:$0xff]  ;;  %v1046_v49 = vld [vmem:[#allocation2 + $0x930] sm:$0xff] }
 0x30f   :  { %v5589_v52 = vpop.eup %5588 }
 0x310   :  { %v5591_v53 = vpop.eup %5590  ;;  %v538_v54 = vadd.f32 1.0, %v5589_v52  ;;  %v738_v52 = vld [vmem:[#allocation2 + $0x6e0] sm:$0xff] }
 0x311   :  { %v539_v55 = vadd.f32 1.0, %v5591_v53  ;;  %v740_v53 = vld [vmem:[#allocation2 + $0x6f0] sm:$0xff] }
 0x312   :  { %5592 = vrcp.f32 %v538_v54  ;;  %v743_v54 = vld [vmem:[#allocation2 + $0x708] sm:$0xff]  ;;  %v4299_v56 = vpack.c.bf16 %v740_v53, %v738_v52  ;;  %v4371_v52 = vpack.c.bf16 %v1046_v49, %v1044_v48  ;;  %v1084_v49 = vld [vmem:[#allocation2 + $0xa60] sm:$0xff] }
 0x313   :  { %5594 = vrcp.f32 %v539_v55  ;;  %v745_v55 = vld [vmem:[#allocation2 + $0x718] sm:$0xff] }
 0x314   :  { %v4301_v57 = vpack.c.bf16 %v745_v55, %v743_v54  ;;  %v1048_v54 = vld [vmem:[#allocation2 + $0x940] sm:$0xff]  ;;  %v1050_v55 = vld [vmem:[#allocation2 + $0x950] sm:$0xff] }
 0x31c   :  { %v5593_v61 = vpop.eup %5592 }
 0x31d   :  { %v5595_v63 = vpop.eup %5594  ;;  %v556_v0 = vmul.f32 %v5593_v61, %v549_v58  ;;  %v742_v58 = vld [vmem:[#allocation2 + $0x700] sm:$0xff]  ;;  %v749_v61 = vld [vmem:[#allocation2 + $0x738] sm:$0xff] }
 0x31e   :  { %v557_v1 = vmul.f32 %v5595_v63, %v553_v59  ;;  %v744_v59 = vld [vmem:[#allocation2 + $0x710] sm:$0xff] }
 0x31f   :  { %v569_v2 = vadd.f32 %v562_v60, %v556_v0  ;;  %v747_v60 = vld [vmem:[#allocation2 + $0x728] sm:$0xff]  ;;  %v746_v0 = vld [vmem:[#allocation2 + $0x720] sm:$0xff] }
 0x320   :  { %v570_v5 = vadd.f32 %v566_v62, %v557_v1  ;;  %v4303_v62 = vpack.c.bf16 %v744_v59, %v742_v58  ;;  %v4305_v63 = vpack.c.bf16 %v749_v61, %v747_v60  ;;  %v748_v1 = vld [vmem:[#allocation2 + $0x730] sm:$0xff]  ;;  %v1055_v58 = vld [vmem:[#allocation2 + $0x978] sm:$0xff]  ;;  %v1052_v60 = vld [vmem:[#allocation2 + $0x960] sm:$0xff] }
 0x321   :  { %v571_v10 = vmul.f32 %v569_v2, %v512_v45  ;;  %v4293_v45 = vpack.c.bf16 %v737_v41, %v735_v40  ;;  %v751_v2 = vld [vmem:[#allocation2 + $0x748] sm:$0xff]  ;;  %v4307_v4 = vpack.c.bf16 %v748_v1, %v746_v0  ;;  %v1047_v41 = vld [vmem:[#allocation2 + $0x938] sm:$0xff]  ;;  %v1054_v61 = vld [vmem:[#allocation2 + $0x970] sm:$0xff] }
 0x322   :  { %v572_v8 = vmul.f32 %v570_v5, %v514_v47  ;;  %v736_v47 = vld [vmem:[#allocation2 + $0x6d0] sm:$0xff]  ;;  %v4309_v5 = vpack.c.bf16 %v753_v3, %v751_v2  ;;  %v1045_v40 = vld [vmem:[#allocation2 + $0x928] sm:$0xff]  ;;  %v1059_v0 = vld [vmem:[#allocation2 + $0x998] sm:$0xff] }
 0x323   :  { %v4295_v50 = vpack.c.bf16 %v736_v47, %v734_v46  ;;  %v4369_v47 = vpack.c.bf16 %v1047_v41, %v1045_v40  ;;  %v1056_v2 = vld [vmem:[#allocation2 + $0x980] sm:$0xff]  ;;  %v1058_v3 = vld [vmem:[#allocation2 + $0x990] sm:$0xff] }
 0x324   :  { %4049 = vmatprep.mubr.msk.f32.mxu1 %vm113_vm0, %v572_v8  ;;  %v755_v8 = vld [vmem:[#allocation2 + $0x768] sm:$0xff]  ;;  %v1082_v40 = vld [vmem:[#allocation2 + $0xa50] sm:$0xff] }
 0x325   :  { %703 = vmatmul.mubr.f32.vlgmr.msra.gmra.mrb[2].mxu1 %v571_v10  ;;  %v4311_v10 = vpack.c.bf16 %v752_v7, %v750_v6  ;;  %v1063_v6 = vld [vmem:[#allocation2 + $0x9b8] sm:$0xff] }
 0x326   :  { %4272 = vmatpush1.bf16.msra.mxu1 %v4271_v9  ;;  %4050 = vmatprep.mubr.msk.f32.mxu1 %vm113_vm0, %v5766_v43  ;;  %v726_v43 = vld [vmem:[#allocation2 + $0x680] sm:$0xff]  ;;  %v757_v9 = vld [vmem:[#allocation2 + $0x778] sm:$0xff] }
 0x327   :  { %4274 = vmatprep.subr.bf16.mxu1 %v4273_v11  ;;  %v4287_v32 = vpack.c.bf16 %v728_v29, %v726_v43  ;;  %v4313_v11 = vpack.c.bf16 %v757_v9, %v755_v8  ;;  %v1060_v8 = vld [vmem:[#allocation2 + $0x9a0] sm:$0xff]  ;;  %v1062_v9 = vld [vmem:[#allocation2 + $0x9b0] sm:$0xff] }
 0x32a   :  { %4276 = vmatpush1.bf16.msra.mxu1 %v4275_v16  ;;  %v889_v16 = vld [vmem:[#allocation2 + $0x8d0] sm:$0xff] }
 0x32b   :  { %4278 = vmatprep.subr.bf16.mxu1 %v4277_v17  ;;  %v4359_v17 = vpack.c.bf16 %v889_v16, %v887_v15  ;;  %v1066_v15 = vld [vmem:[#allocation2 + $0x9d0] sm:$0xff] }
 0x32d   :  { %4360 = vmatpush1.bf16.msra.mxu0 %v4359_v17  ;;  %v1069_v17 = vld [vmem:[#allocation2 + $0x9e8] sm:$0xff] }
 0x32e   :  { %4280 = vmatpush1.bf16.msra.mxu1 %v4279_v21  ;;  %v893_v21 = vld [vmem:[#allocation2 + $0x8f0] sm:$0xff]  ;;  %4362 = vmatprep.subr.bf16.mxu0 %v4361_v36  ;;  %v4393_v19 = vpack.c.bf16 %v1071_v18, %v1069_v17  ;;  %v1068_v36 = vld [vmem:[#allocation2 + $0x9e0] sm:$0xff] }
 0x32f   :  { %4282 = vmatprep.subr.bf16.mxu1 %v4281_v22  ;;  %v4363_v22 = vpack.c.bf16 %v893_v21, %v891_v20  ;;  %v1070_v20 = vld [vmem:[#allocation2 + $0x9f0] sm:$0xff] }
 0x330   :  { %v4395_v21 = vpack.c.bf16 %v1070_v20, %v1068_v36 }
 0x331   :  { %4364 = vmatpush1.bf16.msra.mxu0 %v4363_v22  ;;  %v1073_v22 = vld [vmem:[#allocation2 + $0xa08] sm:$0xff] }
 0x332   :  { %4284 = vmatpush1.bf16.msra.mxu1 %v4283_v27  ;;  %4366 = vmatprep.subr.bf16.mxu0 %v4365_v25  ;;  %v628_v27 = vrot.slane %v623_v26, %v5762_v38  ;;  %v4397_v24 = vpack.c.bf16 %v1075_v23, %v1073_v22  ;;  %v1072_v25 = vld [vmem:[#allocation2 + $0xa00] sm:$0xff] }
 0x333   :  { %4286 = vmatprep.subr.bf16.mxu1 %v4285_v28  ;;  %v632_v28 = vrot.slane %v623_v26, %v5759_v35  ;;  %v1074_v26 = vld [vmem:[#allocation2 + $0xa10] sm:$0xff] }
 0x336   :  { %4288 = vmatpush1.bf16.msra.mxu1 %v4287_v32 }
 0x337   :  { %4290 = vmatprep.subr.bf16.mxu1 %v4289_v33  ;;  %v1040_v33 = vld [vmem:[#allocation2 + $0x900] sm:$0xff] }
 0x33a   :  { %4292 = vmatpush1.bf16.msra.mxu1 %v4291_v42 }
 0x33b   :  { %4294 = vmatprep.subr.bf16.mxu1 %v4293_v45  ;;  %v4367_v45 = vpack.c.bf16 %v1042_v37, %v1040_v33  ;;  %v1083_v33 = vld [vmem:[#allocation2 + $0xa58] sm:$0xff] }
 0x33e   :  { %4296 = vmatpush1.bf16.msra.mxu1 %v4295_v50  ;;  %v1049_v50 = vld [vmem:[#allocation2 + $0x948] sm:$0xff] }
 0x33f   :  { %4298 = vmatprep.subr.bf16.mxu1 %v4297_v51  ;;  %v1051_v51 = vld [vmem:[#allocation2 + $0x958] sm:$0xff] }
 0x340   :  { %v4373_v53 = vpack.c.bf16 %v1051_v51, %v1049_v50  ;;  %v1086_v50 = vld [vmem:[#allocation2 + $0xa70] sm:$0xff] }
 0x341   :  { %v4411_v51 = vpack.c.bf16 %v1086_v50, %v1084_v49  ;;  %v1250_v50 = vld [vmem:[#allocation2 + $0xb08] sm:$0xff] }
 0x342   :  { %4300 = vmatpush1.bf16.msra.mxu1 %v4299_v56  ;;  %v4375_v56 = vpack.c.bf16 %v1050_v55, %v1048_v54  ;;  %v1233_v54 = vld [vmem:[#allocation2 + $0xa80] sm:$0xff] }
 0x343   :  { %4302 = vmatprep.subr.bf16.mxu1 %v4301_v57  ;;  %v1053_v57 = vld [vmem:[#allocation2 + $0x968] sm:$0xff] }
 0x344   :  { %v4377_v59 = vpack.c.bf16 %v1055_v58, %v1053_v57  ;;  %v1238_v57 = vld [vmem:[#allocation2 + $0xaa8] sm:$0xff]  ;;  %v1240_v58 = vld [vmem:[#allocation2 + $0xab8] sm:$0xff] }
 0x346   :  { %4304 = vmatpush1.bf16.msra.mxu1 %v4303_v62  ;;  %v4379_v62 = vpack.c.bf16 %v1054_v61, %v1052_v60  ;;  %v4417_v60 = vpack.c.bf16 %v1240_v58, %v1238_v57  ;;  %v1237_v61 = vld [vmem:[#allocation2 + $0xaa0] sm:$0xff]  ;;  %v1256_v57 = vld [vmem:[#allocation2 + $0xb38] sm:$0xff] }
 0x347   :  { %4306 = vmatprep.subr.bf16.mxu1 %v4305_v63  ;;  %v1057_v63 = vld [vmem:[#allocation2 + $0x988] sm:$0xff] }
 0x348   :  { %v4381_v1 = vpack.c.bf16 %v1059_v0, %v1057_v63  ;;  %v1242_v63 = vld [vmem:[#allocation2 + $0xac8] sm:$0xff]  ;;  %v1244_v0 = vld [vmem:[#allocation2 + $0xad8] sm:$0xff] }
 0x34a   :  { %4308 = vmatpush1.bf16.msra.mxu1 %v4307_v4  ;;  %v4383_v4 = vpack.c.bf16 %v1058_v3, %v1056_v2  ;;  %v4421_v2 = vpack.c.bf16 %v1244_v0, %v1242_v63  ;;  %v1241_v3 = vld [vmem:[#allocation2 + $0xac0] sm:$0xff]  ;;  %v1260_v63 = vld [vmem:[#allocation2 + $0xb58] sm:$0xff] }
 0x34b   :  { %4310 = vmatprep.subr.bf16.mxu1 %v4309_v5  ;;  %v1061_v5 = vld [vmem:[#allocation2 + $0x9a8] sm:$0xff] }
 0x34c   :  { %v4385_v7 = vpack.c.bf16 %v1063_v6, %v1061_v5  ;;  %v983_v6 = vld [vmem:[#allocation4 + $0x14] sm:$0x3] }
 0x34e   :  { %4312 = vmatpush1.bf16.msra.mxu1 %v4311_v10  ;;  %v4387_v10 = vpack.c.bf16 %v1062_v9, %v1060_v8  ;;  %v986_v8 = vsub.f32 0.0, %v983_v6 }
 0x34f   :  { %4314 = vmatprep.subr.bf16.mxu1 %v4313_v11  ;;  %v1065_v11 = vld [vmem:[#allocation2 + $0x9c8] sm:$0xff] }
 0x350   :  { %v4389_v13 = vpack.c.bf16 %v1067_v12, %v1065_v11  ;;  %v991_v11 = vrot.slane %v986_v8, %v5762_v38 }
 0x352   :  { %4316 = vmatpush1.bf16.msra.mxu1 %v4315_v14  ;;  %v1064_v14 = vld [vmem:[#allocation2 + $0x9c0] sm:$0xff] }
 0x353   :  { %v4391_v16 = vpack.c.bf16 %v1066_v15, %v1064_v14 }
 0x355   :  { %823 = vmatmul.mubr.f32.vlgmr.msra.gmra.mrb[2].mxu1 %v5768_v44  ;;  %v832_v44 = vld [vmem:[#allocation4 + $0x10] sm:$0x3] }
 0x356   :  { %v841_v29 = vrot.slane %v832_v44, %v5759_v35  ;;  %v837_v31 = vrot.slane %v832_v44, %v5762_v38  ;;  %v1077_v44 = vld [vmem:[#allocation2 + $0xa28] sm:$0xff] }
 0x428   :  { %v824_v43 = vpop.f32.mrb[2].mxu1 }
 0x429   :  { %v5565_v30 = vadd.f32 %v824_v43, %v628_v27  ;;  %v826_v32 = vpop.f32.mrb[3].mxu1  ;;  %v4399_v27 = vpack.c.bf16 %v1074_v26, %v1072_v25 }
 0x42a   :  { %v5566_v39 = vadd.f32 %v826_v32, %v632_v28  ;;  %v1079_v28 = vld [vmem:[#allocation2 + $0xa38] sm:$0xff]  ;;  %v1081_v32 = vld [vmem:[#allocation2 + $0xa48] sm:$0xff] }
 0x42b   :  { %v5800_v46 = vadd.f32 %v5565_v30, %v837_v31  ;;  %v4401_v43 = vpack.c.bf16 %v1079_v28, %v1077_v44  ;;  %v1078_v30 = vld [vmem:[#allocation2 + $0xa30] sm:$0xff]  ;;  %v4405_v37 = vpack.c.bf16 %v1083_v33, %v1081_v32 }
 0x42c   :  { %v5798_v42 = vadd.f32 %v5566_v39, %v841_v29  ;;  %v1076_v29 = vld [vmem:[#allocation2 + $0xa20] sm:$0xff] }
 0x42d   :  { %v4403_v31 = vpack.c.bf16 %v1078_v30, %v1076_v29  ;;  %v1080_v39 = vld [vmem:[#allocation2 + $0xa40] sm:$0xff] }
 0x42e   :  { %4051 = vmatprep.mubr.msk.f32.mxu0 %vm113_vm0, %v5798_v42  ;;  %v4407_v41 = vpack.c.bf16 %v1082_v40, %v1080_v39  ;;  %v1246_v40 = vld [vmem:[#allocation2 + $0xae8] sm:$0xff] }
 0x42f   :  { %976 = vmatmul.mubr.f32.vlgmr.msra.gmra.mrb[4].mxu0 %v5800_v46 }
 0x430   :  { %4368 = vmatpush1.bf16.msra.mxu0 %v4367_v45  ;;  %v1085_v45 = vld [vmem:[#allocation2 + $0xa68] sm:$0xff] }
 0x431   :  { %4370 = vmatprep.subr.bf16.mxu0 %v4369_v47  ;;  %v1087_v47 = vld [vmem:[#allocation2 + $0xa78] sm:$0xff] }
 0x432   :  { %v4409_v48 = vpack.c.bf16 %v1087_v47, %v1085_v45  ;;  %v1245_v47 = vld [vmem:[#allocation2 + $0xae0] sm:$0xff] }
 0x434   :  { %4372 = vmatpush1.bf16.msra.mxu0 %v4371_v52  ;;  %v1234_v52 = vld [vmem:[#allocation2 + $0xa88] sm:$0xff] }
 0x435   :  { %4374 = vmatprep.subr.bf16.mxu0 %v4373_v53  ;;  %v1236_v53 = vld [vmem:[#allocation2 + $0xa98] sm:$0xff] }
 0x436   :  { %v4413_v55 = vpack.c.bf16 %v1236_v53, %v1234_v52  ;;  %v1249_v53 = vld [vmem:[#allocation2 + $0xb00] sm:$0xff] }
 0x438   :  { %4376 = vmatpush1.bf16.msra.mxu0 %v4375_v56  ;;  %v1235_v56 = vld [vmem:[#allocation2 + $0xa90] sm:$0xff]  ;;  %4414 = vmatprep.subr.bf16.mxu1 %v4413_v55 }
 0x439   :  { %4378 = vmatprep.subr.bf16.mxu0 %v4377_v59  ;;  %v4415_v59 = vpack.c.bf16 %v1235_v56, %v1233_v54  ;;  %v1251_v54 = vld [vmem:[#allocation2 + $0xb10] sm:$0xff]  ;;  %v1254_v56 = vld [vmem:[#allocation2 + $0xb28] sm:$0xff] }
 0x43a   :  { %v4431_v55 = vpack.c.bf16 %v1251_v54, %v1249_v53  ;;  %v4433_v58 = vpack.c.bf16 %v1256_v57, %v1254_v56  ;;  %v1515_v53 = vld [vmem:[#allocation2 + $0xdc8] sm:$0xff]  ;;  %v1517_v54 = vld [vmem:[#allocation2 + $0xdd8] sm:$0xff]  ;;  %v1514_v57 = vld [vmem:[#allocation2 + $0xdc0] sm:$0xff] }
 0x43b   :  { %4416 = vmatpush1.bf16.msra.mxu1 %v4415_v59  ;;  %v1253_v59 = vld [vmem:[#allocation2 + $0xb20] sm:$0xff]  ;;  %v4517_v56 = vpack.c.bf16 %v1517_v54, %v1515_v53 }
 0x43c   :  { %4380 = vmatpush1.bf16.msra.mxu0 %v4379_v62  ;;  %v1239_v62 = vld [vmem:[#allocation2 + $0xab0] sm:$0xff]  ;;  %4418 = vmatprep.subr.bf16.mxu1 %v4417_v60 }
 0x43d   :  { %4382 = vmatprep.subr.bf16.mxu0 %v4381_v1  ;;  %v4419_v1 = vpack.c.bf16 %v1239_v62, %v1237_v61  ;;  %v1255_v60 = vld [vmem:[#allocation2 + $0xb30] sm:$0xff]  ;;  %v1258_v62 = vld [vmem:[#allocation2 + $0xb48] sm:$0xff] }
 0x43e   :  { %v4435_v61 = vpack.c.bf16 %v1255_v60, %v1253_v59  ;;  %v4437_v0 = vpack.c.bf16 %v1260_v63, %v1258_v62  ;;  %v1519_v59 = vld [vmem:[#allocation2 + $0xde8] sm:$0xff]  ;;  %v1521_v60 = vld [vmem:[#allocation2 + $0xdf8] sm:$0xff]  ;;  %v1518_v63 = vld [vmem:[#allocation2 + $0xde0] sm:$0xff] }
 0x43f   :  { %4420 = vmatpush1.bf16.msra.mxu1 %v4419_v1  ;;  %v1257_v1 = vld [vmem:[#allocation2 + $0xb40] sm:$0xff]  ;;  %v4521_v62 = vpack.c.bf16 %v1521_v60, %v1519_v59 }
 0x440   :  { %4384 = vmatpush1.bf16.msra.mxu0 %v4383_v4  ;;  %v1243_v4 = vld [vmem:[#allocation2 + $0xad0] sm:$0xff]  ;;  %4422 = vmatprep.subr.bf16.mxu1 %v4421_v2 }
 0x441   :  { %4386 = vmatprep.subr.bf16.mxu0 %v4385_v7  ;;  %v4423_v5 = vpack.c.bf16 %v1243_v4, %v1241_v3  ;;  %v896_v7 = vld [vmem:[#allocation4 + $0x12] sm:$0x3]  ;;  %v1262_v4 = vld [vmem:[#allocation2 + $0xb68] sm:$0xff] }
 0x442   :  { %v901_v9 = vrot.slane %v896_v7, %v5762_v38  ;;  %v1259_v2 = vld [vmem:[#allocation2 + $0xb50] sm:$0xff] }
 0x443   :  { %4424 = vmatpush1.bf16.msra.mxu1 %v4423_v5  ;;  %v4439_v3 = vpack.c.bf16 %v1259_v2, %v1257_v1  ;;  %v1264_v5 = vld [vmem:[#allocation2 + $0xb78] sm:$0xff]  ;;  %v1523_v1 = vld [vmem:[#allocation2 + $0xe08] sm:$0xff] }
 0x444   :  { %4388 = vmatpush1.bf16.msra.mxu0 %v4387_v10  ;;  %v905_v10 = vrot.slane %v896_v7, %v5759_v35  ;;  %v4441_v6 = vpack.c.bf16 %v1264_v5, %v1262_v4  ;;  %v1261_v7 = vld [vmem:[#allocation2 + $0xb60] sm:$0xff]  ;;  %v1525_v2 = vld [vmem:[#allocation2 + $0xe18] sm:$0xff] }
 0x445   :  { %4390 = vmatprep.subr.bf16.mxu0 %v4389_v13  ;;  %v995_v13 = vrot.slane %v986_v8, %v5759_v35  ;;  %v1263_v8 = vld [vmem:[#allocation2 + $0xb70] sm:$0xff]  ;;  %v4525_v4 = vpack.c.bf16 %v1525_v2, %v1523_v1  ;;  %v1522_v5 = vld [vmem:[#allocation2 + $0xe00] sm:$0xff]  ;;  %v1178_v1 = vld [vmem:[#allocation4 + $0x1c] sm:$0x3] }
 0x446   :  { %v1203_v2 = vsub.f32 1.0, %v1178_v1 }
 0x448   :  { %4392 = vmatpush1.bf16.msra.mxu0 %v4391_v16 }
 0x449   :  { %4394 = vmatprep.subr.bf16.mxu0 %v4393_v19 }
 0x44c   :  { %4396 = vmatpush1.bf16.msra.mxu0 %v4395_v21 }
 0x44d   :  { %4398 = vmatprep.subr.bf16.mxu0 %v4397_v24  ;;  %v985_v24 = vld [vmem:[#allocation4 + $0x16] sm:$0x3] }
 0x44e   :  { %v1010_v25 = vsub.f32 1.0, %v985_v24  ;;  %v1028_v44 = vrot.slane %v985_v24, %v5762_v38 }
 0x450   :  { %4400 = vmatpush1.bf16.msra.mxu0 %v4399_v27  ;;  %v1015_v26 = vrot.slane %v1010_v25, %v5762_v38  ;;  %v1019_v27 = vrot.slane %v1010_v25, %v5759_v35  ;;  %v1275_v25 = vld [vmem:[#allocation2 + $0xbd0] sm:$0xff] }
 0x451   :  { %4402 = vmatprep.subr.bf16.mxu0 %v4401_v43  ;;  %v1032_v43 = vrot.slane %v985_v24, %v5759_v35  ;;  %v1273_v24 = vld [vmem:[#allocation2 + $0xbc0] sm:$0xff] }
 0x454   :  { %4404 = vmatpush1.bf16.msra.mxu0 %v4403_v31 }
 0x455   :  { %4406 = vmatprep.subr.bf16.mxu0 %v4405_v37 }
 0x458   :  { %4408 = vmatpush1.bf16.msra.mxu0 %v4407_v41  ;;  %v1248_v41 = vld [vmem:[#allocation2 + $0xaf8] sm:$0xff] }
 0x459   :  { %4410 = vmatprep.subr.bf16.mxu0 %v4409_v48  ;;  %v4425_v45 = vpack.c.bf16 %v1248_v41, %v1246_v40  ;;  %v1247_v48 = vld [vmem:[#allocation2 + $0xaf0] sm:$0xff]  ;;  %v1506_v40 = vld [vmem:[#allocation2 + $0xd80] sm:$0xff] }
 0x45a   :  { %v4427_v49 = vpack.c.bf16 %v1247_v48, %v1245_v47  ;;  %v1511_v47 = vld [vmem:[#allocation2 + $0xda8] sm:$0xff]  ;;  %v1513_v48 = vld [vmem:[#allocation2 + $0xdb8] sm:$0xff] }
 0x45b   :  { %4426 = vmatprep.subr.bf16.mxu1 %v4425_v45  ;;  %v1508_v45 = vld [vmem:[#allocation2 + $0xd90] sm:$0xff] }
 0x45c   :  { %4412 = vmatpush1.bf16.msra.mxu0 %v4411_v51  ;;  %4428 = vmatpush1.bf16.msra.mxu1 %v4427_v49  ;;  %v1252_v51 = vld [vmem:[#allocation2 + $0xb18] sm:$0xff]  ;;  %v4511_v49 = vpack.c.bf16 %v1508_v45, %v1506_v40 }
 0x45d   :  { %v4429_v52 = vpack.c.bf16 %v1252_v51, %v1250_v50  ;;  %v4513_v50 = vpack.c.bf16 %v1513_v48, %v1511_v47  ;;  %v1510_v51 = vld [vmem:[#allocation2 + $0xda0] sm:$0xff]  ;;  %v1549_v40 = vld [vmem:[#allocation2 + $0xed8] sm:$0xff] }
 0x45f   :  { %4430 = vmatprep.subr.bf16.mxu1 %v4429_v52  ;;  %v1512_v52 = vld [vmem:[#allocation2 + $0xdb0] sm:$0xff] }
 0x460   :  { %4432 = vmatpush1.bf16.msra.mxu1 %v4431_v55  ;;  %v4515_v55 = vpack.c.bf16 %v1512_v52, %v1510_v51 }
 0x461   :  { %4434 = vmatprep.subr.bf16.mxu1 %v4433_v58  ;;  %v1516_v58 = vld [vmem:[#allocation2 + $0xdd0] sm:$0xff] }
 0x464   :  { %4436 = vmatpush1.bf16.msra.mxu1 %v4435_v61  ;;  %v4519_v61 = vpack.c.bf16 %v1516_v58, %v1514_v57 }
 0x465   :  { %4438 = vmatprep.subr.bf16.mxu1 %v4437_v0  ;;  %v1520_v0 = vld [vmem:[#allocation2 + $0xdf0] sm:$0xff] }
 0x468   :  { %4440 = vmatpush1.bf16.msra.mxu1 %v4439_v3  ;;  %v4523_v3 = vpack.c.bf16 %v1520_v0, %v1518_v63 }
 0x469   :  { %4442 = vmatprep.subr.bf16.mxu1 %v4441_v6  ;;  %v1524_v6 = vld [vmem:[#allocation2 + $0xe10] sm:$0xff] }
 0x502   :  { %v977_v12 = vpop.f32.mrb[4].mxu0 }
 0x503   :  { %v978_v14 = vadd.f32 %v977_v12, %v901_v9  ;;  %v979_v15 = vpop.f32.mrb[5].mxu0  ;;  %v4443_v9 = vpack.c.bf16 %v1263_v8, %v1261_v7  ;;  %v1527_v7 = vld [vmem:[#allocation2 + $0xe28] sm:$0xff]  ;;  %v1529_v8 = vld [vmem:[#allocation2 + $0xe38] sm:$0xff] }
 0x504   :  { %v980_v16 = vadd.f32 %v979_v15, %v905_v10  ;;  %v1266_v10 = vld [vmem:[#allocation2 + $0xb88] sm:$0xff] }
 0x505   :  { %v998_v17 = vmul.f32 %v991_v11, %v978_v14  ;;  %4444 = vmatpush1.bf16.msra.mxu1 %v4443_v9  ;;  %v1268_v11 = vld [vmem:[#allocation2 + $0xb98] sm:$0xff]  ;;  %v4527_v9 = vpack.c.bf16 %v1524_v6, %v1522_v5  ;;  %v1221_v5 = vrot.slane %v1178_v1, %v5762_v38 }
 0x506   :  { %v999_v18 = vmul.f32 %v995_v13, %v980_v16  ;;  %v4445_v12 = vpack.c.bf16 %v1268_v11, %v1266_v10  ;;  %v1265_v13 = vld [vmem:[#allocation2 + $0xb80] sm:$0xff]  ;;  %v4529_v10 = vpack.c.bf16 %v1529_v8, %v1527_v7  ;;  %v1225_v7 = vrot.slane %v1178_v1, %v5759_v35 }
 0x507   :  { %v1000_v19 = vmul.f32 1.442695, %v998_v17  ;;  %v1272_v17 = vld [vmem:[#allocation2 + $0xbb8] sm:$0xff]  ;;  %v1526_v11 = vld [vmem:[#allocation2 + $0xe20] sm:$0xff] }
 0x508   :  { %v1002_v36 = vmul.f32 1.442695, %v999_v18  ;;  %4446 = vmatprep.subr.bf16.mxu1 %v4445_v12  ;;  %v1528_v12 = vld [vmem:[#allocation2 + $0xe30] sm:$0xff] }
 0x509   :  { %5596 = vpow2.f32 %v1000_v19  ;;  %v1269_v19 = vld [vmem:[#allocation2 + $0xba0] sm:$0xff] }
 0x50a   :  { %5598 = vpow2.f32 %v1002_v36  ;;  %v1271_v36 = vld [vmem:[#allocation2 + $0xbb0] sm:$0xff] }
 0x513   :  { %v5597_v20 = vpop.eup %5596 }
 0x514   :  { %v5599_v21 = vpop.eup %5598  ;;  %v1004_v22 = vadd.f32 1.0, %v5597_v20  ;;  %v4451_v20 = vpack.c.bf16 %v1271_v36, %v1269_v19  ;;  %v1535_v19 = vld [vmem:[#allocation2 + $0xe68] sm:$0xff]  ;;  %v1537_v36 = vld [vmem:[#allocation2 + $0xe78] sm:$0xff] }
 0x515   :  { %v1005_v23 = vadd.f32 1.0, %v5599_v21  ;;  %v1274_v21 = vld [vmem:[#allocation2 + $0xbc8] sm:$0xff] }
 0x516   :  { %5600 = vrcp.f32 %v1004_v22  ;;  %v1276_v22 = vld [vmem:[#allocation2 + $0xbd8] sm:$0xff] }
 0x517   :  { %5602 = vrcp.f32 %v1005_v23  ;;  %v4453_v23 = vpack.c.bf16 %v1276_v22, %v1274_v21  ;;  %v4537_v21 = vpack.c.bf16 %v1537_v36, %v1535_v19  ;;  %v1534_v22 = vld [vmem:[#allocation2 + $0xe60] sm:$0xff] }
 0x520   :  { %v5601_v28 = vpop.eup %5600 }
 0x521   :  { %v5603_v29 = vpop.eup %5602  ;;  %v1022_v30 = vmul.f32 %v5601_v28, %v1015_v26  ;;  %v4455_v26 = vpack.c.bf16 %v1275_v25, %v1273_v24  ;;  %v1539_v24 = vld [vmem:[#allocation2 + $0xe88] sm:$0xff]  ;;  %v1541_v25 = vld [vmem:[#allocation2 + $0xe98] sm:$0xff] }
 0x522   :  { %v1023_v31 = vmul.f32 %v5603_v29, %v1019_v27  ;;  %v1278_v27 = vld [vmem:[#allocation2 + $0xbe8] sm:$0xff]  ;;  %v1279_v29 = vld [vmem:[#allocation2 + $0xbf0] sm:$0xff] }
 0x523   :  { %v1035_v32 = vadd.f32 %v1028_v44, %v1022_v30  ;;  %v1280_v44 = vld [vmem:[#allocation2 + $0xbf8] sm:$0xff] }
 0x524   :  { %v1036_v33 = vadd.f32 %v1032_v43, %v1023_v31  ;;  %v4457_v28 = vpack.c.bf16 %v1280_v44, %v1278_v27  ;;  %v1277_v43 = vld [vmem:[#allocation2 + $0xbe0] sm:$0xff]  ;;  %v1370_v31 = vld [vmem:[#allocation2 + $0xc08] sm:$0xff]  ;;  %v4541_v27 = vpack.c.bf16 %v1541_v25, %v1539_v24 }
 0x525   :  { %v1037_v39 = vmul.f32 %v1035_v32, %v978_v14  ;;  %v1267_v14 = vld [vmem:[#allocation2 + $0xb90] sm:$0xff]  ;;  %v4459_v30 = vpack.c.bf16 %v1279_v29, %v1277_v43  ;;  %v1372_v32 = vld [vmem:[#allocation2 + $0xc18] sm:$0xff]  ;;  %v1538_v44 = vld [vmem:[#allocation2 + $0xe80] sm:$0xff] }
 0x526   :  { %v1038_v37 = vmul.f32 %v1036_v33, %v980_v16  ;;  %v4447_v15 = vpack.c.bf16 %v1267_v14, %v1265_v13  ;;  %v1270_v16 = vld [vmem:[#allocation2 + $0xba8] sm:$0xff]  ;;  %v4461_v33 = vpack.c.bf16 %v1372_v32, %v1370_v31  ;;  %v1533_v14 = vld [vmem:[#allocation2 + $0xe58] sm:$0xff] }
 0x527   :  { %v4449_v18 = vpack.c.bf16 %v1272_v17, %v1270_v16  ;;  %v1531_v13 = vld [vmem:[#allocation2 + $0xe48] sm:$0xff]  ;;  %v1530_v17 = vld [vmem:[#allocation2 + $0xe40] sm:$0xff]  ;;  %v1545_v29 = vld [vmem:[#allocation2 + $0xeb8] sm:$0xff] }
 0x528   :  { %4052 = vmatprep.mubr.msk.f32.mxu0 %vm113_vm0, %v1038_v37  ;;  %4448 = vmatpush1.bf16.msra.mxu1 %v4447_v15  ;;  %v1507_v37 = vld [vmem:[#allocation2 + $0xd88] sm:$0xff]  ;;  %v4531_v15 = vpack.c.bf16 %v1528_v12, %v1526_v11  ;;  %v4533_v16 = vpack.c.bf16 %v1533_v14, %v1531_v13  ;;  %v1176_v31 = vld [vmem:[#allocation4 + $0x1a] sm:$0x3]  ;;  %v1369_v12 = vld [vmem:[#allocation2 + $0xc00] sm:$0xff] }
 0x529   :  { %1169 = vmatmul.mubr.f32.vlgmr.msra.gmra.mrb[6].mxu0 %v1037_v39  ;;  %4450 = vmatprep.subr.bf16.mxu1 %v4449_v18  ;;  %v1509_v39 = vld [vmem:[#allocation2 + $0xd98] sm:$0xff]  ;;  %v1532_v18 = vld [vmem:[#allocation2 + $0xe50] sm:$0xff]  ;;  %v1543_v43 = vld [vmem:[#allocation2 + $0xea8] sm:$0xff]  ;;  %v1179_v45 = vsub.f32 0.0, %v1176_v31 }
 0x52a   :  { %v4509_v41 = vpack.c.bf16 %v1509_v39, %v1507_v37  ;;  %v4545_v32 = vpack.c.bf16 %v1545_v29, %v1543_v43  ;;  %v1544_v37 = vld [vmem:[#allocation2 + $0xeb0] sm:$0xff]  ;;  %v1547_v39 = vld [vmem:[#allocation2 + $0xec8] sm:$0xff] }
 0x52b   :  { %v4549_v48 = vpack.c.bf16 %v1549_v40, %v1547_v39  ;;  %v1184_v51 = vrot.slane %v1179_v45, %v5762_v38  ;;  %v1188_v53 = vrot.slane %v1179_v45, %v5759_v35  ;;  %v1371_v13 = vld [vmem:[#allocation2 + $0xc10] sm:$0xff]  ;;  %v1392_v45 = vld [vmem:[#allocation2 + $0xcb8] sm:$0xff] }
 0x52c   :  { %4452 = vmatpush1.bf16.msra.mxu1 %v4451_v20  ;;  %4510 = vmatprep.subr.bf16.mxu0 %v4509_v41  ;;  %v4535_v20 = vpack.c.bf16 %v1532_v18, %v1530_v17  ;;  %v1089_v41 = vld [vmem:[#allocation4 + $0x18] sm:$0x3]  ;;  %v4463_v18 = vpack.c.bf16 %v1371_v13, %v1369_v12  ;;  %v1383_v31 = vld [vmem:[#allocation2 + $0xc70] sm:$0xff] }
 0x52d   :  { %4454 = vmatprep.subr.bf16.mxu1 %v4453_v23  ;;  %4512 = vmatpush1.bf16.msra.mxu0 %v4511_v49  ;;  %v1536_v23 = vld [vmem:[#allocation2 + $0xe70] sm:$0xff]  ;;  %v1094_v49 = vrot.slane %v1089_v41, %v5762_v38  ;;  %v1412_v12 = vld [vmem:[#allocation2 + $0xd58] sm:$0xff] }
 0x52e   :  { %4514 = vmatprep.subr.bf16.mxu0 %v4513_v50  ;;  %v1098_v50 = vrot.slane %v1089_v41, %v5759_v35  ;;  %v1387_v40 = vld [vmem:[#allocation2 + $0xc90] sm:$0xff]  ;;  %v1390_v41 = vld [vmem:[#allocation2 + $0xca8] sm:$0xff] }
 0x530   :  { %4456 = vmatpush1.bf16.msra.mxu1 %v4455_v26  ;;  %v4539_v26 = vpack.c.bf16 %v1536_v23, %v1534_v22  ;;  %v1378_v22 = vld [vmem:[#allocation2 + $0xc48] sm:$0xff]  ;;  %v1380_v23 = vld [vmem:[#allocation2 + $0xc58] sm:$0xff] }
 0x531   :  { %4458 = vmatprep.subr.bf16.mxu1 %v4457_v28  ;;  %4516 = vmatpush1.bf16.msra.mxu0 %v4515_v55  ;;  %v1540_v28 = vld [vmem:[#allocation2 + $0xe90] sm:$0xff]  ;;  %v4469_v25 = vpack.c.bf16 %v1380_v23, %v1378_v22  ;;  %v1546_v23 = vld [vmem:[#allocation2 + $0xec0] sm:$0xff] }
 0x532   :  { %4518 = vmatprep.subr.bf16.mxu0 %v4517_v56 }
 0x534   :  { %4460 = vmatpush1.bf16.msra.mxu1 %v4459_v30  ;;  %v4543_v30 = vpack.c.bf16 %v1540_v28, %v1538_v44  ;;  %v1382_v44 = vld [vmem:[#allocation2 + $0xc68] sm:$0xff]  ;;  %v1384_v28 = vld [vmem:[#allocation2 + $0xc78] sm:$0xff] }
 0x535   :  { %4462 = vmatprep.subr.bf16.mxu1 %v4461_v33  ;;  %4520 = vmatpush1.bf16.msra.mxu0 %v4519_v61  ;;  %v1542_v33 = vld [vmem:[#allocation2 + $0xea0] sm:$0xff]  ;;  %v4473_v29 = vpack.c.bf16 %v1384_v28, %v1382_v44 }
 0x536   :  { %4522 = vmatprep.subr.bf16.mxu0 %v4521_v62  ;;  %v4547_v47 = vpack.c.bf16 %v1544_v37, %v1542_v33  ;;  %v1388_v33 = vld [vmem:[#allocation2 + $0xc98] sm:$0xff]  ;;  %v1550_v28 = vld [vmem:[#allocation2 + $0xee0] sm:$0xff] }
 0x539   :  { %4524 = vmatpush1.bf16.msra.mxu0 %v4523_v3  ;;  %v1208_v3 = vrot.slane %v1203_v2, %v5762_v38 }
 0x53a   :  { %4526 = vmatprep.subr.bf16.mxu0 %v4525_v4  ;;  %v1212_v4 = vrot.slane %v1203_v2, %v5759_v35 }
 0x53d   :  { %4528 = vmatpush1.bf16.msra.mxu0 %v4527_v9 }
 0x53e   :  { %4530 = vmatprep.subr.bf16.mxu0 %v4529_v10 }
 0x541   :  { %4532 = vmatpush1.bf16.msra.mxu0 %v4531_v15  ;;  %v1374_v15 = vld [vmem:[#allocation2 + $0xc28] sm:$0xff] }
 0x542   :  { %4534 = vmatprep.subr.bf16.mxu0 %v4533_v16  ;;  %v1376_v16 = vld [vmem:[#allocation2 + $0xc38] sm:$0xff] }
 0x543   :  { %v4465_v36 = vpack.c.bf16 %v1376_v16, %v1374_v15  ;;  %v1409_v15 = vld [vmem:[#allocation2 + $0xd40] sm:$0xff]  ;;  %v1411_v16 = vld [vmem:[#allocation2 + $0xd50] sm:$0xff] }
 0x545   :  { %4536 = vmatpush1.bf16.msra.mxu0 %v4535_v20  ;;  %v1373_v20 = vld [vmem:[#allocation2 + $0xc20] sm:$0xff] }
 0x546   :  { %4538 = vmatprep.subr.bf16.mxu0 %v4537_v21  ;;  %v1375_v21 = vld [vmem:[#allocation2 + $0xc30] sm:$0xff] }
 0x547   :  { %v4467_v24 = vpack.c.bf16 %v1375_v21, %v1373_v20  ;;  %v1413_v20 = vld [vmem:[#allocation2 + $0xd60] sm:$0xff]  ;;  %v1415_v21 = vld [vmem:[#allocation2 + $0xd70] sm:$0xff] }
 0x548   :  { %v4507_v22 = vpack.c.bf16 %v1415_v21, %v1413_v20  ;;  %v1857_v20 = vld [vmem:[#allocation2 + $0x1170] sm:$0xff] }
 0x549   :  { %4540 = vmatpush1.bf16.msra.mxu0 %v4539_v26  ;;  %v1377_v26 = vld [vmem:[#allocation2 + $0xc40] sm:$0xff] }
 0x54a   :  { %4542 = vmatprep.subr.bf16.mxu0 %v4541_v27  ;;  %v1379_v27 = vld [vmem:[#allocation2 + $0xc50] sm:$0xff] }
 0x54b   :  { %v4471_v43 = vpack.c.bf16 %v1379_v27, %v1377_v26  ;;  %v1551_v26 = vld [vmem:[#allocation2 + $0xee8] sm:$0xff]  ;;  %v1553_v27 = vld [vmem:[#allocation2 + $0xef8] sm:$0xff] }
 0x54c   :  { %v4553_v44 = vpack.c.bf16 %v1553_v27, %v1551_v26  ;;  %v1861_v26 = vld [vmem:[#allocation2 + $0x1190] sm:$0xff] }
 0x54d   :  { %4544 = vmatpush1.bf16.msra.mxu0 %v4543_v30  ;;  %v1381_v30 = vld [vmem:[#allocation2 + $0xc60] sm:$0xff] }
 0x54e   :  { %4546 = vmatprep.subr.bf16.mxu0 %v4545_v32  ;;  %v1386_v32 = vld [vmem:[#allocation2 + $0xc88] sm:$0xff]  ;;  %v4475_v37 = vpack.c.bf16 %v1383_v31, %v1381_v30  ;;  %v1694_v31 = vld [vmem:[#allocation2 + $0xf18] sm:$0xff] }
 0x54f   :  { %v4477_v39 = vpack.c.bf16 %v1388_v33, %v1386_v32  ;;  %v1692_v30 = vld [vmem:[#allocation2 + $0xf08] sm:$0xff] }
 0x550   :  { %v4557_v32 = vpack.c.bf16 %v1694_v31, %v1692_v30  ;;  %v1828_v33 = vld [vmem:[#allocation2 + $0x1088] sm:$0xff]  ;;  %v1865_v30 = vld [vmem:[#allocation2 + $0x11b0] sm:$0xff] }
 0x551   :  { %4548 = vmatpush1.bf16.msra.mxu0 %v4547_v47 }
 0x552   :  { %4550 = vmatprep.subr.bf16.mxu0 %v4549_v48  ;;  %v4481_v48 = vpack.c.bf16 %v1392_v45, %v1390_v41  ;;  %v1832_v41 = vld [vmem:[#allocation2 + $0x10a8] sm:$0xff]  ;;  %v1834_v45 = vld [vmem:[#allocation2 + $0x10b8] sm:$0xff] }
 0x5fc   :  { %v1170_v52 = vpop.f32.mrb[6].mxu0 }
 0x5fd   :  { %v1171_v54 = vadd.f32 %v1170_v52, %v1094_v49  ;;  %v1172_v55 = vpop.f32.mrb[7].mxu0  ;;  %v1389_v49 = vld [vmem:[#allocation2 + $0xca0] sm:$0xff]  ;;  %v1396_v52 = vld [vmem:[#allocation2 + $0xcd8] sm:$0xff] }
 0x5fe   :  { %v1173_v56 = vadd.f32 %v1172_v55, %v1098_v50  ;;  %v1391_v50 = vld [vmem:[#allocation2 + $0xcb0] sm:$0xff]  ;;  %v1393_v55 = vld [vmem:[#allocation2 + $0xcc0] sm:$0xff] }
 0x5ff   :  { %v1191_v57 = vmul.f32 %v1184_v51, %v1171_v54  ;;  %v1394_v51 = vld [vmem:[#allocation2 + $0xcc8] sm:$0xff] }
 0x600   :  { %v1192_v58 = vmul.f32 %v1188_v53, %v1173_v56  ;;  %v4483_v53 = vpack.c.bf16 %v1391_v50, %v1389_v49  ;;  %v1833_v49 = vld [vmem:[#allocation2 + $0x10b0] sm:$0xff] }
 0x601   :  { %v1193_v59 = vmul.f32 1.442695, %v1191_v57  ;;  %v1398_v57 = vld [vmem:[#allocation2 + $0xce8] sm:$0xff] }
 0x602   :  { %v1195_v60 = vmul.f32 1.442695, %v1192_v58  ;;  %v1400_v58 = vld [vmem:[#allocation2 + $0xcf8] sm:$0xff] }
 0x603   :  { %5604 = vpow2.f32 %v1193_v59 }
 0x604   :  { %5606 = vpow2.f32 %v1195_v60  ;;  %v4489_v60 = vpack.c.bf16 %v1400_v58, %v1398_v57  ;;  %v1840_v57 = vld [vmem:[#allocation2 + $0x10e8] sm:$0xff]  ;;  %v1842_v58 = vld [vmem:[#allocation2 + $0x10f8] sm:$0xff] }
 0x60d   :  { %v5605_v61 = vpop.eup %5604 }
 0x60e   :  { %v5607_v62 = vpop.eup %5606  ;;  %v1197_v63 = vadd.f32 1.0, %v5605_v61  ;;  %v1397_v61 = vld [vmem:[#allocation2 + $0xce0] sm:$0xff] }
 0x60f   :  { %v1198_v0 = vadd.f32 1.0, %v5607_v62  ;;  %v1399_v62 = vld [vmem:[#allocation2 + $0xcf0] sm:$0xff] }
 0x610   :  { %5608 = vrcp.f32 %v1197_v63  ;;  %v1402_v63 = vld [vmem:[#allocation2 + $0xd08] sm:$0xff]  ;;  %v4491_v1 = vpack.c.bf16 %v1399_v62, %v1397_v61  ;;  %v1841_v61 = vld [vmem:[#allocation2 + $0x10f0] sm:$0xff] }
 0x611   :  { %5610 = vrcp.f32 %v1198_v0  ;;  %v1404_v0 = vld [vmem:[#allocation2 + $0xd18] sm:$0xff] }
 0x612   :  { %v4493_v2 = vpack.c.bf16 %v1404_v0, %v1402_v63  ;;  %v1844_v63 = vld [vmem:[#allocation2 + $0x1108] sm:$0xff]  ;;  %v1846_v0 = vld [vmem:[#allocation2 + $0x1118] sm:$0xff] }
 0x61a   :  { %v5609_v6 = vpop.eup %5608 }
 0x61b   :  { %v5611_v8 = vpop.eup %5610  ;;  %v1215_v9 = vmul.f32 %v5609_v6, %v1208_v3  ;;  %v1401_v3 = vld [vmem:[#allocation2 + $0xd00] sm:$0xff]  ;;  %v1408_v6 = vld [vmem:[#allocation2 + $0xd38] sm:$0xff] }
 0x61c   :  { %v1216_v10 = vmul.f32 %v5611_v8, %v1212_v4  ;;  %v1403_v4 = vld [vmem:[#allocation2 + $0xd10] sm:$0xff] }
 0x61d   :  { %v1228_v11 = vadd.f32 %v1221_v5, %v1215_v9  ;;  %v1406_v5 = vld [vmem:[#allocation2 + $0xd28] sm:$0xff]  ;;  %v1405_v9 = vld [vmem:[#allocation2 + $0xd20] sm:$0xff] }
 0x61e   :  { %v1229_v14 = vadd.f32 %v1225_v7, %v1216_v10  ;;  %v4495_v7 = vpack.c.bf16 %v1403_v4, %v1401_v3  ;;  %v4497_v8 = vpack.c.bf16 %v1408_v6, %v1406_v5  ;;  %v1407_v10 = vld [vmem:[#allocation2 + $0xd30] sm:$0xff]  ;;  %v1848_v5 = vld [vmem:[#allocation2 + $0x1128] sm:$0xff]  ;;  %v1850_v6 = vld [vmem:[#allocation2 + $0x1138] sm:$0xff] }
 0x61f   :  { %v1230_v19 = vmul.f32 %v1228_v11, %v1171_v54  ;;  %v4485_v54 = vpack.c.bf16 %v1396_v52, %v1394_v51  ;;  %v1410_v11 = vld [vmem:[#allocation2 + $0xd48] sm:$0xff]  ;;  %v4499_v13 = vpack.c.bf16 %v1407_v10, %v1405_v9  ;;  %v1838_v52 = vld [vmem:[#allocation2 + $0x10d8] sm:$0xff]  ;;  %v1845_v3 = vld [vmem:[#allocation2 + $0x1110] sm:$0xff] }
 0x620   :  { %v1231_v17 = vmul.f32 %v1229_v14, %v1173_v56  ;;  %v1395_v56 = vld [vmem:[#allocation2 + $0xcd0] sm:$0xff]  ;;  %v4501_v14 = vpack.c.bf16 %v1412_v12, %v1410_v11  ;;  %v1836_v51 = vld [vmem:[#allocation2 + $0x10c8] sm:$0xff]  ;;  %v1854_v12 = vld [vmem:[#allocation2 + $0x1158] sm:$0xff] }
 0x621   :  { %v4487_v59 = vpack.c.bf16 %v1395_v56, %v1393_v55  ;;  %v1837_v55 = vld [vmem:[#allocation2 + $0x10d0] sm:$0xff]  ;;  %v1852_v11 = vld [vmem:[#allocation2 + $0x1148] sm:$0xff] }
 0x622   :  { %4053 = vmatprep.mubr.msk.f32.mxu1 %vm113_vm0, %v1231_v17  ;;  %v1414_v17 = vld [vmem:[#allocation2 + $0xd68] sm:$0xff]  ;;  %v1849_v9 = vld [vmem:[#allocation2 + $0x1130] sm:$0xff] }
 0x623   :  { %1362 = vmatmul.mubr.f32.vlgmr.msra.gmra.mrb[4].mxu1 %v1230_v19  ;;  %v4503_v19 = vpack.c.bf16 %v1411_v16, %v1409_v15  ;;  %v1853_v15 = vld [vmem:[#allocation2 + $0x1150] sm:$0xff] }
 0x624   :  { %4464 = vmatpush1.bf16.msra.mxu1 %v4463_v18  ;;  %4054 = vmatprep.mubr.msk.f32.mxu1 %vm113_vm0, %v5798_v42  ;;  %v1385_v42 = vld [vmem:[#allocation2 + $0xc80] sm:$0xff]  ;;  %v1416_v18 = vld [vmem:[#allocation2 + $0xd78] sm:$0xff] }
 0x625   :  { %4466 = vmatprep.subr.bf16.mxu1 %v4465_v36  ;;  %v4479_v47 = vpack.c.bf16 %v1387_v40, %v1385_v42  ;;  %v4505_v36 = vpack.c.bf16 %v1416_v18, %v1414_v17  ;;  %v1827_v42 = vld [vmem:[#allocation2 + $0x1080] sm:$0xff]  ;;  %v1856_v17 = vld [vmem:[#allocation2 + $0x1168] sm:$0xff]  ;;  %v1858_v18 = vld [vmem:[#allocation2 + $0x1178] sm:$0xff] }
 0x628   :  { %4468 = vmatpush1.bf16.msra.mxu1 %v4467_v24  ;;  %v1548_v24 = vld [vmem:[#allocation2 + $0xed0] sm:$0xff] }
 0x629   :  { %4470 = vmatprep.subr.bf16.mxu1 %v4469_v25  ;;  %v4551_v25 = vpack.c.bf16 %v1548_v24, %v1546_v23  ;;  %v1862_v23 = vld [vmem:[#allocation2 + $0x1198] sm:$0xff]  ;;  %v1859_v24 = vld [vmem:[#allocation2 + $0x1180] sm:$0xff] }
 0x62a   :  { %v4639_v27 = vpack.c.bf16 %v1861_v26, %v1859_v24  ;;  %v1718_v24 = vld [vmem:[#allocation2 + $0xfd8] sm:$0xff] }
 0x62b   :  { %4552 = vmatpush1.bf16.msra.mxu0 %v4551_v25 }
 0x62c   :  { %4472 = vmatpush1.bf16.msra.mxu1 %v4471_v43  ;;  %v1552_v43 = vld [vmem:[#allocation2 + $0xef0] sm:$0xff]  ;;  %4554 = vmatprep.subr.bf16.mxu0 %v4553_v44  ;;  %v1864_v44 = vld [vmem:[#allocation2 + $0x11a8] sm:$0xff] }
 0x62d   :  { %4474 = vmatprep.subr.bf16.mxu1 %v4473_v29  ;;  %v4555_v29 = vpack.c.bf16 %v1552_v43, %v1550_v28  ;;  %v1866_v28 = vld [vmem:[#allocation2 + $0x11b8] sm:$0xff]  ;;  %v1863_v43 = vld [vmem:[#allocation2 + $0x11a0] sm:$0xff] }
 0x62e   :  { %v4643_v31 = vpack.c.bf16 %v1865_v30, %v1863_v43  ;;  %v1722_v43 = vld [vmem:[#allocation2 + $0xff8] sm:$0xff] }
 0x62f   :  { %4556 = vmatpush1.bf16.msra.mxu0 %v4555_v29  ;;  %v4641_v29 = vpack.c.bf16 %v1866_v28, %v1864_v44  ;;  %v1717_v44 = vld [vmem:[#allocation2 + $0xfd0] sm:$0xff]  ;;  %v1720_v28 = vld [vmem:[#allocation2 + $0xfe8] sm:$0xff] }
 0x630   :  { %4476 = vmatpush1.bf16.msra.mxu1 %v4475_v37  ;;  %v1830_v37 = vld [vmem:[#allocation2 + $0x1098] sm:$0xff]  ;;  %4558 = vmatprep.subr.bf16.mxu0 %v4557_v32  ;;  %v1868_v32 = vld [vmem:[#allocation2 + $0x11c8] sm:$0xff]  ;;  %v4585_v30 = vpack.c.bf16 %v1722_v43, %v1720_v28  ;;  %v1966_v28 = vld [vmem:[#allocation2 + $0x1230] sm:$0xff] }
 0x631   :  { %4478 = vmatprep.subr.bf16.mxu1 %v4477_v39  ;;  %v4605_v39 = vpack.c.bf16 %v1830_v37, %v1828_v33  ;;  %v1870_v33 = vld [vmem:[#allocation2 + $0x11d8] sm:$0xff]  ;;  %v1867_v37 = vld [vmem:[#allocation2 + $0x11c0] sm:$0xff]  ;;  %v1969_v43 = vld [vmem:[#allocation2 + $0x1248] sm:$0xff] }
 0x634   :  { %4480 = vmatpush1.bf16.msra.mxu1 %v4479_v47  ;;  %v1831_v47 = vld [vmem:[#allocation2 + $0x10a0] sm:$0xff] }
 0x635   :  { %4482 = vmatprep.subr.bf16.mxu1 %v4481_v48  ;;  %v4609_v48 = vpack.c.bf16 %v1834_v45, %v1832_v41  ;;  %v4611_v50 = vpack.c.bf16 %v1833_v49, %v1831_v47  ;;  %v1491_v45 = vld [vmem:[#allocation4 + $0x20] sm:$0x3] }
 0x636   :  { %v1500_v49 = vrot.slane %v1491_v45, %v5759_v35 }
 0x638   :  { %4484 = vmatpush1.bf16.msra.mxu1 %v4483_v53  ;;  %v1835_v53 = vld [vmem:[#allocation2 + $0x10c0] sm:$0xff] }
 0x639   :  { %4486 = vmatprep.subr.bf16.mxu1 %v4485_v54  ;;  %v4613_v54 = vpack.c.bf16 %v1838_v52, %v1836_v51  ;;  %v4615_v56 = vpack.c.bf16 %v1837_v55, %v1835_v53  ;;  %v1496_v51 = vrot.slane %v1491_v45, %v5762_v38  ;;  %v1691_v53 = vld [vmem:[#allocation2 + $0xf00] sm:$0xff]  ;;  %v1730_v45 = vld [vmem:[#allocation2 + $0x1038] sm:$0xff] }
 0x63c   :  { %4488 = vmatpush1.bf16.msra.mxu1 %v4487_v59  ;;  %v1839_v59 = vld [vmem:[#allocation2 + $0x10e0] sm:$0xff] }
 0x63d   :  { %4490 = vmatprep.subr.bf16.mxu1 %v4489_v60  ;;  %v4617_v60 = vpack.c.bf16 %v1842_v58, %v1840_v57  ;;  %v4619_v62 = vpack.c.bf16 %v1841_v61, %v1839_v59  ;;  %v1698_v57 = vld [vmem:[#allocation2 + $0xf38] sm:$0xff] }
 0x640   :  { %4492 = vmatpush1.bf16.msra.mxu1 %v4491_v1  ;;  %v1843_v1 = vld [vmem:[#allocation2 + $0x1100] sm:$0xff] }
 0x641   :  { %4494 = vmatprep.subr.bf16.mxu1 %v4493_v2  ;;  %v4621_v2 = vpack.c.bf16 %v1846_v0, %v1844_v63  ;;  %v4623_v4 = vpack.c.bf16 %v1845_v3, %v1843_v1  ;;  %v1697_v63 = vld [vmem:[#allocation2 + $0xf30] sm:$0xff]  ;;  %v1700_v0 = vld [vmem:[#allocation2 + $0xf48] sm:$0xff]  ;;  %v1702_v1 = vld [vmem:[#allocation2 + $0xf58] sm:$0xff] }
 0x642   :  { %v4565_v3 = vpack.c.bf16 %v1702_v1, %v1700_v0  ;;  %v1874_v1 = vld [vmem:[#allocation2 + $0x11f8] sm:$0xff] }
 0x644   :  { %4496 = vmatpush1.bf16.msra.mxu1 %v4495_v7  ;;  %v1847_v7 = vld [vmem:[#allocation2 + $0x1120] sm:$0xff] }
 0x645   :  { %4498 = vmatprep.subr.bf16.mxu1 %v4497_v8  ;;  %v4625_v8 = vpack.c.bf16 %v1850_v6, %v1848_v5  ;;  %v4627_v10 = vpack.c.bf16 %v1849_v9, %v1847_v7  ;;  %v1701_v5 = vld [vmem:[#allocation2 + $0xf50] sm:$0xff]  ;;  %v1704_v6 = vld [vmem:[#allocation2 + $0xf68] sm:$0xff]  ;;  %v1706_v7 = vld [vmem:[#allocation2 + $0xf78] sm:$0xff] }
 0x646   :  { %v4569_v9 = vpack.c.bf16 %v1706_v7, %v1704_v6  ;;  %v1961_v6 = vld [vmem:[#allocation2 + $0x1208] sm:$0xff]  ;;  %v1963_v7 = vld [vmem:[#allocation2 + $0x1218] sm:$0xff] }
 0x648   :  { %4500 = vmatpush1.bf16.msra.mxu1 %v4499_v13  ;;  %v1851_v13 = vld [vmem:[#allocation2 + $0x1140] sm:$0xff] }
 0x649   :  { %4502 = vmatprep.subr.bf16.mxu1 %v4501_v14  ;;  %v4629_v14 = vpack.c.bf16 %v1854_v12, %v1852_v11  ;;  %v4631_v16 = vpack.c.bf16 %v1853_v15, %v1851_v13  ;;  %v1705_v11 = vld [vmem:[#allocation2 + $0xf70] sm:$0xff]  ;;  %v1708_v12 = vld [vmem:[#allocation2 + $0xf88] sm:$0xff]  ;;  %v1710_v13 = vld [vmem:[#allocation2 + $0xf98] sm:$0xff] }
 0x64a   :  { %v4573_v15 = vpack.c.bf16 %v1710_v13, %v1708_v12  ;;  %v1555_v12 = vld [vmem:[#allocation4 + $0x22] sm:$0x3] }
 0x64b   :  { %v1564_v13 = vrot.slane %v1555_v12, %v5759_v35 }
 0x64c   :  { %4504 = vmatpush1.bf16.msra.mxu1 %v4503_v19  ;;  %v1855_v19 = vld [vmem:[#allocation2 + $0x1160] sm:$0xff] }
 0x64d   :  { %4506 = vmatprep.subr.bf16.mxu1 %v4505_v36  ;;  %v4633_v36 = vpack.c.bf16 %v1858_v18, %v1856_v17  ;;  %v4635_v21 = vpack.c.bf16 %v1857_v20, %v1855_v19  ;;  %v1709_v17 = vld [vmem:[#allocation2 + $0xf90] sm:$0xff]  ;;  %v1712_v18 = vld [vmem:[#allocation2 + $0xfa8] sm:$0xff]  ;;  %v1714_v19 = vld [vmem:[#allocation2 + $0xfb8] sm:$0xff] }
 0x64e   :  { %v4577_v20 = vpack.c.bf16 %v1714_v19, %v1712_v18  ;;  %v1967_v19 = vld [vmem:[#allocation2 + $0x1238] sm:$0xff] }
 0x650   :  { %4508 = vmatpush1.bf16.msra.mxu1 %v4507_v22  ;;  %v1860_v22 = vld [vmem:[#allocation2 + $0x1188] sm:$0xff] }
 0x651   :  { %4606 = vmatprep.subr.bf16.mxu1 %v4605_v39  ;;  %v4637_v25 = vpack.c.bf16 %v1862_v23, %v1860_v22  ;;  %v4645_v39 = vpack.c.bf16 %v1870_v33, %v1868_v32  ;;  %v1713_v22 = vld [vmem:[#allocation2 + $0xfb0] sm:$0xff]  ;;  %v1716_v23 = vld [vmem:[#allocation2 + $0xfc8] sm:$0xff] }
 0x652   :  { %v4581_v26 = vpack.c.bf16 %v1718_v24, %v1716_v23  ;;  %v1721_v32 = vld [vmem:[#allocation2 + $0xff0] sm:$0xff]  ;;  %v1724_v33 = vld [vmem:[#allocation2 + $0x1008] sm:$0xff]  ;;  %v2100_v23 = vld [vmem:[#allocation2 + $0x1b38] sm:$0xff] }
 0x653   :  { %1482 = vmatmul.mubr.f32.vlgmr.msra.gmra.mrb[4].mxu1 %v5800_v46  ;;  %v1829_v46 = vld [vmem:[#allocation2 + $0x1090] sm:$0xff] }
 0x654   :  { %v4607_v40 = vpack.c.bf16 %v1829_v46, %v1827_v42  ;;  %v1869_v42 = vld [vmem:[#allocation2 + $0x11d0] sm:$0xff] }
 0x655   :  { %v4647_v46 = vpack.c.bf16 %v1869_v42, %v1867_v37  ;;  %v1726_v37 = vld [vmem:[#allocation2 + $0x1018] sm:$0xff] }
 0x656   :  { %4608 = vmatpush1.bf16.msra.mxu1 %v4607_v40  ;;  %v1282_v40 = vld [vmem:[#allocation4 + $0x1e] sm:$0x3]  ;;  %v4589_v42 = vpack.c.bf16 %v1726_v37, %v1724_v33  ;;  %v2099_v33 = vld [vmem:[#allocation2 + $0x1b30] sm:$0xff]  ;;  %v2102_v37 = vld [vmem:[#allocation2 + $0x1b48] sm:$0xff] }
 0x657   :  { %4610 = vmatprep.subr.bf16.mxu1 %v4609_v48  ;;  %v1287_v41 = vrot.slane %v1282_v40, %v5762_v38  ;;  %v1291_v47 = vrot.slane %v1282_v40, %v5759_v35  ;;  %v1725_v40 = vld [vmem:[#allocation2 + $0x1010] sm:$0xff] }
 0x65a   :  { %4612 = vmatpush1.bf16.msra.mxu1 %v4611_v50 }
 0x65b   :  { %4614 = vmatprep.subr.bf16.mxu1 %v4613_v54  ;;  %v1693_v54 = vld [vmem:[#allocation2 + $0xf10] sm:$0xff] }
 0x65c   :  { %v4559_v59 = vpack.c.bf16 %v1693_v54, %v1691_v53 }
 0x65e   :  { %4616 = vmatpush1.bf16.msra.mxu1 %v4615_v56  ;;  %v1696_v56 = vld [vmem:[#allocation2 + $0xf28] sm:$0xff] }
 0x65f   :  { %4618 = vmatprep.subr.bf16.mxu1 %v4617_v60  ;;  %v4561_v61 = vpack.c.bf16 %v1698_v57, %v1696_v56  ;;  %v1733_v56 = vld [vmem:[#allocation2 + $0x1050] sm:$0xff] }
 0x662   :  { %4620 = vmatpush1.bf16.msra.mxu1 %v4619_v62  ;;  %v1695_v62 = vld [vmem:[#allocation2 + $0xf20] sm:$0xff] }
 0x663   :  { %4622 = vmatprep.subr.bf16.mxu1 %v4621_v2  ;;  %v4563_v2 = vpack.c.bf16 %v1697_v63, %v1695_v62  ;;  %v1737_v62 = vld [vmem:[#allocation2 + $0x1070] sm:$0xff]  ;;  %v1872_v63 = vld [vmem:[#allocation2 + $0x11e8] sm:$0xff] }
 0x666   :  { %4624 = vmatpush1.bf16.msra.mxu1 %v4623_v4  ;;  %v1699_v4 = vld [vmem:[#allocation2 + $0xf40] sm:$0xff] }
 0x667   :  { %4626 = vmatprep.subr.bf16.mxu1 %v4625_v8  ;;  %v4567_v8 = vpack.c.bf16 %v1701_v5, %v1699_v4  ;;  %v4649_v4 = vpack.c.bf16 %v1874_v1, %v1872_v63  ;;  %v2107_v63 = vld [vmem:[#allocation2 + $0x1b70] sm:$0xff]  ;;  %v2112_v1 = vld [vmem:[#allocation2 + $0x1b98] sm:$0xff] }
 0x66a   :  { %4628 = vmatpush1.bf16.msra.mxu1 %v4627_v10  ;;  %v1703_v10 = vld [vmem:[#allocation2 + $0xf60] sm:$0xff] }
 0x66b   :  { %4630 = vmatprep.subr.bf16.mxu1 %v4629_v14  ;;  %v4571_v14 = vpack.c.bf16 %v1705_v11, %v1703_v10  ;;  %v2096_v10 = vld [vmem:[#allocation2 + $0x1b18] sm:$0xff] }
 0x66e   :  { %4632 = vmatpush1.bf16.msra.mxu1 %v4631_v16  ;;  %v1707_v16 = vld [vmem:[#allocation2 + $0xf80] sm:$0xff] }
 0x66f   :  { %4634 = vmatprep.subr.bf16.mxu1 %v4633_v36  ;;  %v4575_v36 = vpack.c.bf16 %v1709_v17, %v1707_v16  ;;  %v1962_v16 = vld [vmem:[#allocation2 + $0x1210] sm:$0xff]  ;;  %v1965_v17 = vld [vmem:[#allocation2 + $0x1228] sm:$0xff] }
 0x672   :  { %4636 = vmatpush1.bf16.msra.mxu1 %v4635_v21  ;;  %v1711_v21 = vld [vmem:[#allocation2 + $0xfa0] sm:$0xff] }
 0x673   :  { %4638 = vmatprep.subr.bf16.mxu1 %v4637_v25  ;;  %v4579_v25 = vpack.c.bf16 %v1713_v22, %v1711_v21  ;;  %v2098_v22 = vld [vmem:[#allocation2 + $0x1b28] sm:$0xff] }
 0x676   :  { %4640 = vmatpush1.bf16.msra.mxu1 %v4639_v27  ;;  %v1715_v27 = vld [vmem:[#allocation2 + $0xfc0] sm:$0xff] }
 0x677   :  { %4642 = vmatprep.subr.bf16.mxu1 %v4641_v29  ;;  %v4583_v29 = vpack.c.bf16 %v1717_v44, %v1715_v27  ;;  %v4657_v27 = vpack.c.bf16 %v1967_v19, %v1965_v17  ;;  %v1964_v44 = vld [vmem:[#allocation2 + $0x1220] sm:$0xff]  ;;  %v1985_v19 = vld [vmem:[#allocation2 + $0x12c8] sm:$0xff] }
 0x678   :  { %v1980_v17 = vld [vmem:[#allocation2 + $0x12a0] sm:$0xff] }
 0x67a   :  { %4644 = vmatpush1.bf16.msra.mxu1 %v4643_v31  ;;  %v1719_v31 = vld [vmem:[#allocation2 + $0xfe0] sm:$0xff] }
 0x67b   :  { %4646 = vmatprep.subr.bf16.mxu1 %v4645_v39  ;;  %v4587_v39 = vpack.c.bf16 %v1721_v32, %v1719_v31  ;;  %v5846_v31 = vpack.c.bf16 %v2100_v23, %v2098_v22  ;;  %v2097_v32 = vld [vmem:[#allocation2 + $0x1b20] sm:$0xff]  ;;  %v2115_v23 = vld [vmem:[#allocation2 + $0x1bb0] sm:$0xff] }
 0x67c   :  { %v2113_v22 = vld [vmem:[#allocation2 + $0x1ba0] sm:$0xff] }
 0x67e   :  { %4648 = vmatpush1.bf16.msra.mxu1 %v4647_v46  ;;  %v1723_v46 = vld [vmem:[#allocation2 + $0x1000] sm:$0xff] }
 0x67f   :  { %4650 = vmatprep.subr.bf16.mxu1 %v4649_v4  ;;  %v1976_v4 = vld [vmem:[#allocation2 + $0x1280] sm:$0xff] }
 0x726   :  { %v1483_v48 = vpop.f32.mrb[4].mxu1 }
 0x727   :  { %v5567_v50 = vadd.f32 %v1483_v48, %v1287_v41  ;;  %v1485_v52 = vpop.f32.mrb[5].mxu1  ;;  %v1728_v41 = vld [vmem:[#allocation2 + $0x1028] sm:$0xff] }
 0x728   :  { %v5568_v55 = vadd.f32 %v1485_v52, %v1291_v47  ;;  %v4591_v47 = vpack.c.bf16 %v1725_v40, %v1723_v46  ;;  %v4593_v48 = vpack.c.bf16 %v1730_v45, %v1728_v41  ;;  %v1734_v52 = vld [vmem:[#allocation2 + $0x1058] sm:$0xff]  ;;  %v1968_v40 = vld [vmem:[#allocation2 + $0x1240] sm:$0xff]  ;;  %v1970_v41 = vld [vmem:[#allocation2 + $0x1250] sm:$0xff] }
 0x729   :  { %v1503_v60 = vadd.f32 %v5567_v50, %v1496_v51  ;;  %v1729_v50 = vld [vmem:[#allocation2 + $0x1030] sm:$0xff]  ;;  %v1732_v51 = vld [vmem:[#allocation2 + $0x1048] sm:$0xff] }
 0x72a   :  { %v1504_v58 = vadd.f32 %v5568_v55, %v1500_v49  ;;  %v1727_v49 = vld [vmem:[#allocation2 + $0x1020] sm:$0xff]  ;;  %v4597_v54 = vpack.c.bf16 %v1734_v52, %v1732_v51  ;;  %v1973_v45 = vld [vmem:[#allocation2 + $0x1268] sm:$0xff]  ;;  %v2103_v51 = vld [vmem:[#allocation2 + $0x1b50] sm:$0xff] }
 0x72b   :  { %v4595_v53 = vpack.c.bf16 %v1729_v50, %v1727_v49  ;;  %v1731_v55 = vld [vmem:[#allocation2 + $0x1040] sm:$0xff]  ;;  %v2106_v52 = vld [vmem:[#allocation2 + $0x1b68] sm:$0xff] }
 0x72c   :  { %4055 = vmatprep.mubr.msk.f32.mxu0 %vm113_vm0, %v1504_v58  ;;  %v4599_v57 = vpack.c.bf16 %v1733_v56, %v1731_v55  ;;  %v1736_v58 = vld [vmem:[#allocation2 + $0x1068] sm:$0xff]  ;;  %v2101_v50 = vld [vmem:[#allocation2 + $0x1b40] sm:$0xff] }
 0x72d   :  { %1635 = vmatmul.mubr.f32.vlgmr.msra.gmra.mrb[8].mxu0 %v1503_v60  ;;  %v1972_v56 = vld [vmem:[#allocation2 + $0x1260] sm:$0xff] }
 0x72e   :  { %4560 = vmatpush1.bf16.msra.mxu0 %v4559_v59  ;;  %v1738_v59 = vld [vmem:[#allocation2 + $0x1078] sm:$0xff] }
 0x72f   :  { %4562 = vmatprep.subr.bf16.mxu0 %v4561_v61  ;;  %v4601_v60 = vpack.c.bf16 %v1738_v59, %v1736_v58  ;;  %v1735_v61 = vld [vmem:[#allocation2 + $0x1060] sm:$0xff]  ;;  %v1977_v58 = vld [vmem:[#allocation2 + $0x1288] sm:$0xff]  ;;  %v5859_v59 = vpack.c.bf16 %v2103_v51, %v2101_v50  ;;  %v1990_v51 = vld [vmem:[#allocation2 + $0x12f0] sm:$0xff] }
 0x730   :  { %v4603_v0 = vpack.c.bf16 %v1737_v62, %v1735_v61  ;;  %v2105_v62 = vld [vmem:[#allocation2 + $0x1b60] sm:$0xff] }
 0x731   :  { %v1988_v50 = vld [vmem:[#allocation2 + $0x12e0] sm:$0xff] }
 0x732   :  { %4564 = vmatpush1.bf16.msra.mxu0 %v4563_v2  ;;  %v1871_v2 = vld [vmem:[#allocation2 + $0x11e0] sm:$0xff] }
 0x733   :  { %4566 = vmatprep.subr.bf16.mxu0 %v4565_v3  ;;  %v1873_v3 = vld [vmem:[#allocation2 + $0x11f0] sm:$0xff] }
 0x734   :  { %v4651_v5 = vpack.c.bf16 %v1873_v3, %v1871_v2 }
 0x736   :  { %4568 = vmatpush1.bf16.msra.mxu0 %v4567_v8  ;;  %v4653_v8 = vpack.c.bf16 %v1963_v7, %v1961_v6  ;;  %4652 = vmatpush1.bf16.msra.mxu1 %v4651_v5  ;;  %v1978_v5 = vld [vmem:[#allocation2 + $0x1290] sm:$0xff]  ;;  %v1981_v6 = vld [vmem:[#allocation2 + $0x12a8] sm:$0xff]  ;;  %v5865_v7 = vpack.c.bf16 %v2107_v63, %v2105_v62  ;;  %v4683_v62 = vpack.c.bf16 %v1990_v51, %v1988_v50  ;;  %v2004_v50 = vld [vmem:[#allocation2 + $0x1360] sm:$0xff] }
 0x737   :  { %4570 = vmatprep.subr.bf16.mxu0 %v4569_v9  ;;  %v2094_v9 = vld [vmem:[#allocation2 + $0x1b08] sm:$0xff]  ;;  %v2006_v51 = vld [vmem:[#allocation2 + $0x1370] sm:$0xff] }
 0x738   :  { %v5831_v11 = vpack.c.bf16 %v2096_v10, %v2094_v9  ;;  %v2109_v10 = vld [vmem:[#allocation2 + $0x1b80] sm:$0xff] }
 0x73a   :  { %4572 = vmatpush1.bf16.msra.mxu0 %v4571_v14  ;;  %4702 = vmatprep.subr.bf16.mxu1 %v5831_v11  ;;  %v1560_v14 = vrot.slane %v1555_v12, %v5762_v38  ;;  %v2111_v12 = vld [vmem:[#allocation2 + $0x1b90] sm:$0xff] }
 0x73b   :  { %4574 = vmatprep.subr.bf16.mxu0 %v4573_v15  ;;  %v1960_v15 = vld [vmem:[#allocation2 + $0x1200] sm:$0xff] }
 0x73e   :  { %4576 = vmatpush1.bf16.msra.mxu0 %v4575_v36  ;;  %v2093_v36 = vld [vmem:[#allocation2 + $0x1b00] sm:$0xff] }
 0x73f   :  { %4578 = vmatprep.subr.bf16.mxu0 %v4577_v20  ;;  %v2095_v20 = vld [vmem:[#allocation2 + $0x1b10] sm:$0xff] }
 0x742   :  { %4580 = vmatpush1.bf16.msra.mxu0 %v4579_v25  ;;  %v4655_v25 = vpack.c.bf16 %v1962_v16, %v1960_v15  ;;  %v4671_v15 = vpack.c.bf16 %v1978_v5, %v1976_v4  ;;  %v1999_v4 = vld [vmem:[#allocation2 + $0x1338] sm:$0xff] }
 0x743   :  { %4582 = vmatprep.subr.bf16.mxu0 %v4581_v26 }
 0x746   :  { %4584 = vmatpush1.bf16.msra.mxu0 %v4583_v29  ;;  %v5840_v29 = vpack.c.bf16 %v2095_v20, %v2093_v36  ;;  %v5871_v36 = vpack.c.bf16 %v2111_v12, %v2109_v10  ;;  %v1987_v20 = vld [vmem:[#allocation2 + $0x12d8] sm:$0xff]  ;;  %v2130_v10 = vld [vmem:[#allocation2 + $0x1c28] sm:$0xff] }
 0x747   :  { %4586 = vmatprep.subr.bf16.mxu0 %v4585_v30  ;;  %v1971_v30 = vld [vmem:[#allocation2 + $0x1258] sm:$0xff] }
 0x748   :  { %v4661_v46 = vpack.c.bf16 %v1971_v30, %v1969_v43  ;;  %v1984_v43 = vld [vmem:[#allocation2 + $0x12c0] sm:$0xff]  ;;  %v1986_v30 = vld [vmem:[#allocation2 + $0x12d0] sm:$0xff]  ;;  %v2132_v12 = vld [vmem:[#allocation2 + $0x1c38] sm:$0xff] }
 0x74a   :  { %4588 = vmatpush1.bf16.msra.mxu0 %v4587_v39  ;;  %v2104_v39 = vld [vmem:[#allocation2 + $0x1b58] sm:$0xff] }
 0x74b   :  { %4590 = vmatprep.subr.bf16.mxu0 %v4589_v42  ;;  %v4659_v42 = vpack.c.bf16 %v1966_v28, %v1964_v44  ;;  %v5856_v49 = vpack.c.bf16 %v2104_v39, %v2102_v37  ;;  %v4677_v28 = vpack.c.bf16 %v1987_v20, %v1985_v19  ;;  %v1991_v37 = vld [vmem:[#allocation2 + $0x12f8] sm:$0xff]  ;;  %v5898_v20 = vpack.c.bf16 %v2132_v12, %v2130_v10 }
 0x74c   :  { %v2003_v19 = vld [vmem:[#allocation2 + $0x1358] sm:$0xff] }
 0x74d   :  { %v2227_v10 = vld [vmem:[#allocation2 + $0x1cd8] sm:$0xff] }
 0x74e   :  { %4592 = vmatpush1.bf16.msra.mxu0 %v4591_v47  ;;  %v5853_v47 = vpack.c.bf16 %v2099_v33, %v2097_v32  ;;  %v1989_v32 = vld [vmem:[#allocation2 + $0x12e8] sm:$0xff]  ;;  %v5877_v33 = vpack.c.bf16 %v2115_v23, %v2113_v22  ;;  %v2129_v22 = vld [vmem:[#allocation2 + $0x1c20] sm:$0xff]  ;;  %v2131_v23 = vld [vmem:[#allocation2 + $0x1c30] sm:$0xff] }
 0x74f   :  { %4594 = vmatprep.subr.bf16.mxu0 %v4593_v48  ;;  %v1975_v48 = vld [vmem:[#allocation2 + $0x1278] sm:$0xff] }
 0x750   :  { %v4665_v55 = vpack.c.bf16 %v1975_v48, %v1973_v45  ;;  %v4679_v45 = vpack.c.bf16 %v1986_v30, %v1984_v43  ;;  %v4681_v48 = vpack.c.bf16 %v1991_v37, %v1989_v32  ;;  %v2000_v43 = vld [vmem:[#allocation2 + $0x1340] sm:$0xff]  ;;  %v2002_v30 = vld [vmem:[#allocation2 + $0x1350] sm:$0xff]  ;;  %v2005_v32 = vld [vmem:[#allocation2 + $0x1368] sm:$0xff]  ;;  %v5901_v37 = vpack.c.bf16 %v2131_v23, %v2129_v22 }
 0x751   :  { %v2228_v23 = vld [vmem:[#allocation2 + $0x1ce0] sm:$0xff] }
 0x752   :  { %4596 = vmatpush1.bf16.msra.mxu0 %v4595_v53  ;;  %v2108_v53 = vld [vmem:[#allocation2 + $0x1b78] sm:$0xff] }
 0x753   :  { %4598 = vmatprep.subr.bf16.mxu0 %v4597_v54  ;;  %v4663_v54 = vpack.c.bf16 %v1970_v41, %v1968_v40  ;;  %v5862_v61 = vpack.c.bf16 %v2108_v53, %v2106_v52  ;;  %v2122_v40 = vld [vmem:[#allocation2 + $0x1be8] sm:$0xff]  ;;  %v2124_v41 = vld [vmem:[#allocation2 + $0x1bf8] sm:$0xff] }
 0x754   :  { %v1993_v52 = vld [vmem:[#allocation2 + $0x1308] sm:$0xff] }
 0x756   :  { %4600 = vmatpush1.bf16.msra.mxu0 %v4599_v57  ;;  %v1974_v57 = vld [vmem:[#allocation2 + $0x1270] sm:$0xff] }
 0x757   :  { %4602 = vmatprep.subr.bf16.mxu0 %v4601_v60  ;;  %v1979_v60 = vld [vmem:[#allocation2 + $0x1298] sm:$0xff]  ;;  %v4667_v2 = vpack.c.bf16 %v1974_v57, %v1972_v56  ;;  %v2121_v56 = vld [vmem:[#allocation2 + $0x1be0] sm:$0xff]  ;;  %v2123_v57 = vld [vmem:[#allocation2 + $0x1bf0] sm:$0xff] }
 0x758   :  { %v4669_v3 = vpack.c.bf16 %v1979_v60, %v1977_v58  ;;  %v2126_v58 = vld [vmem:[#allocation2 + $0x1c08] sm:$0xff]  ;;  %v2128_v60 = vld [vmem:[#allocation2 + $0x1c18] sm:$0xff] }
 0x759   :  { %v5892_v5 = vpack.c.bf16 %v2128_v60, %v2126_v58  ;;  %v2216_v60 = vld [vmem:[#allocation2 + $0x1c80] sm:$0xff] }
 0x75a   :  { %4604 = vmatpush1.bf16.msra.mxu0 %v4603_v0  ;;  %v2110_v0 = vld [vmem:[#allocation2 + $0x1b88] sm:$0xff] }
 0x75b   :  { %4654 = vmatprep.subr.bf16.mxu0 %v4653_v8  ;;  %v1983_v8 = vld [vmem:[#allocation2 + $0x12b8] sm:$0xff]  ;;  %v5868_v9 = vpack.c.bf16 %v2112_v1, %v2110_v0  ;;  %v1992_v0 = vld [vmem:[#allocation2 + $0x1300] sm:$0xff]  ;;  %v1994_v1 = vld [vmem:[#allocation2 + $0x1310] sm:$0xff] }
 0x75c   :  { %v4673_v16 = vpack.c.bf16 %v1983_v8, %v1981_v6  ;;  %v2125_v6 = vld [vmem:[#allocation2 + $0x1c00] sm:$0xff]  ;;  %v2127_v8 = vld [vmem:[#allocation2 + $0x1c10] sm:$0xff] }
 0x800   :  { %v1636_v18 = vpop.f32.mrb[8].mxu0 }
 0x801   :  { %v1638_v21 = vpop.f32.mrb[9].mxu0  ;;  %v5838_v26 = vadd.f32 %v1636_v18, %v1560_v14  ;;  %v2116_v14 = vld [vmem:[#allocation2 + $0x1bb8] sm:$0xff]  ;;  %v1982_v18 = vld [vmem:[#allocation2 + $0x12b0] sm:$0xff] }
 0x802   :  { %v5836_v24 = vadd.f32 %v1638_v21, %v1564_v13  ;;  %v2114_v13 = vld [vmem:[#allocation2 + $0x1ba8] sm:$0xff]  ;;  %v4675_v44 = vpack.c.bf16 %v1982_v18, %v1980_v17  ;;  %v5895_v18 = vpack.c.bf16 %v2127_v8, %v2125_v6  ;;  %v2222_v6 = vld [vmem:[#allocation2 + $0x1cb0] sm:$0xff] }
 0x803   :  { %6540 = vst [vmem:[#allocation10_spill] sm:$0xff] %v5838_v26  ;;  %v5874_v21 = vpack.c.bf16 %v2116_v14, %v2114_v13  ;;  %v4687_v13 = vpack.c.bf16 %v1994_v1, %v1992_v0  ;;  %v2001_v17 = vld [vmem:[#allocation2 + $0x1348] sm:$0xff]  ;;  %v2223_v0 = vld [vmem:[#allocation2 + $0x1cb8] sm:$0xff] }
 0x804   :  { %6539 = vst [vmem:[#allocation9_spill] sm:$0xff] %v5836_v24  ;;  %4056 = vmatprep.mubr.msk.f32.mxu0 %vm113_vm0, %v5836_v24  ;;  %4057 = vmatprep.mubr.msk.f32.mxu1 %vm113_vm0, %v5836_v24  ;;  %v2225_v8 = vld [vmem:[#allocation2 + $0x1cc8] sm:$0xff] }
 0x805   :  { %1820 = vmatmul.mubr.f32.vlgmr.msra.gmra.mrb[10].mxu0 %v5838_v26  ;;  %1953 = vmatmul.mubr.f32.vlgmr.msra.gmra.mrb[6].mxu1 %v5838_v26 }
 0x806   :  { %4656 = vmatpush1.bf16.msra.mxu0 %v4655_v25  ;;  %4058 = vmatprep.mubr.msk.f32.mxu0 %vm113_vm0, %v5836_v24  ;;  %v2118_v25 = vld [vmem:[#allocation2 + $0x1bc8] sm:$0xff] }
 0x807   :  { %4658 = vmatprep.subr.bf16.mxu0 %v4657_v27  ;;  %4704 = vmatpush1.bf16.msra.mxu1 %v5840_v29  ;;  %v2120_v27 = vld [vmem:[#allocation2 + $0x1bd8] sm:$0xff] }
 0x808   :  { %4706 = vmatprep.subr.bf16.mxu1 %v5846_v31  ;;  %v5880_v39 = vpack.c.bf16 %v2120_v27, %v2118_v25  ;;  %v2134_v25 = vld [vmem:[#allocation2 + $0x1c48] sm:$0xff]  ;;  %v2136_v27 = vld [vmem:[#allocation2 + $0x1c58] sm:$0xff] }
 0x80a   :  { %4660 = vmatpush1.bf16.msra.mxu0 %v4659_v42  ;;  %v2117_v42 = vld [vmem:[#allocation2 + $0x1bc0] sm:$0xff] }
 0x80b   :  { %4662 = vmatprep.subr.bf16.mxu0 %v4661_v46  ;;  %4708 = vmatpush1.bf16.msra.mxu1 %v5853_v47  ;;  %v2119_v46 = vld [vmem:[#allocation2 + $0x1bd0] sm:$0xff] }
 0x80c   :  { %4710 = vmatprep.subr.bf16.mxu1 %v5856_v49  ;;  %v5883_v53 = vpack.c.bf16 %v2119_v46, %v2117_v42  ;;  %v2007_v42 = vld [vmem:[#allocation2 + $0x1378] sm:$0xff]  ;;  %v5904_v46 = vpack.c.bf16 %v2136_v27, %v2134_v25  ;;  %v2230_v25 = vld [vmem:[#allocation2 + $0x1cf0] sm:$0xff]  ;;  %v2233_v27 = vld [vmem:[#allocation2 + $0x1d08] sm:$0xff] }
 0x80e   :  { %4664 = vmatpush1.bf16.msra.mxu0 %v4663_v54  ;;  %v1995_v54 = vld [vmem:[#allocation2 + $0x1318] sm:$0xff] }
 0x80f   :  { %4666 = vmatprep.subr.bf16.mxu0 %v4665_v55  ;;  %4712 = vmatpush1.bf16.msra.mxu1 %v5859_v59  ;;  %v5886_v55 = vpack.c.bf16 %v2124_v41, %v2122_v40  ;;  %v4685_v63 = vpack.c.bf16 %v1995_v54, %v1993_v52  ;;  %v2133_v40 = vld [vmem:[#allocation2 + $0x1c40] sm:$0xff]  ;;  %v2135_v41 = vld [vmem:[#allocation2 + $0x1c50] sm:$0xff]  ;;  %v2217_v54 = vld [vmem:[#allocation2 + $0x1c88] sm:$0xff] }
 0x810   :  { %4714 = vmatprep.subr.bf16.mxu1 %v5862_v61  ;;  %v5907_v52 = vpack.c.bf16 %v2135_v41, %v2133_v40  ;;  %v2239_v40 = vld [vmem:[#allocation2 + $0x1d38] sm:$0xff] }
 0x812   :  { %4668 = vmatpush1.bf16.msra.mxu0 %v4667_v2  ;;  %v1997_v2 = vld [vmem:[#allocation2 + $0x1328] sm:$0xff] }
 0x813   :  { %4670 = vmatprep.subr.bf16.mxu0 %v4669_v3  ;;  %4716 = vmatpush1.bf16.msra.mxu1 %v5865_v7  ;;  %v5889_v3 = vpack.c.bf16 %v2123_v57, %v2121_v56  ;;  %v4689_v14 = vpack.c.bf16 %v1999_v4, %v1997_v2  ;;  %v2219_v56 = vld [vmem:[#allocation2 + $0x1c98] sm:$0xff]  ;;  %v4699_v57 = vpack.c.bf16 %v2006_v51, %v2004_v50  ;;  %v2220_v4 = vld [vmem:[#allocation2 + $0x1ca0] sm:$0xff]  ;;  %v2238_v50 = vld [vmem:[#allocation2 + $0x1d30] sm:$0xff] }
 0x814   :  { %4718 = vmatprep.subr.bf16.mxu1 %v5868_v9  ;;  %v5910_v58 = vpack.c.bf16 %v2219_v56, %v2217_v54  ;;  %v5920_v12 = vpack.c.bf16 %v2222_v6, %v2220_v4  ;;  %v2241_v51 = vld [vmem:[#allocation2 + $0x1d48] sm:$0xff]  ;;  %v2243_v54 = vld [vmem:[#allocation2 + $0x1d58] sm:$0xff] }
 0x816   :  { %4672 = vmatpush1.bf16.msra.mxu0 %v4671_v15  ;;  %v1996_v15 = vld [vmem:[#allocation2 + $0x1320] sm:$0xff] }
 0x817   :  { %4674 = vmatprep.subr.bf16.mxu0 %v4673_v16  ;;  %4720 = vmatpush1.bf16.msra.mxu1 %v5871_v36  ;;  %v1998_v16 = vld [vmem:[#allocation2 + $0x1330] sm:$0xff] }
 0x818   :  { %4722 = vmatprep.subr.bf16.mxu1 %v5874_v21 }
 0x81a   :  { %4676 = vmatpush1.bf16.msra.mxu0 %v4675_v44  ;;  %v4691_v44 = vpack.c.bf16 %v1998_v16, %v1996_v15  ;;  %v2226_v15 = vld [vmem:[#allocation2 + $0x1cd0] sm:$0xff]  ;;  %v2229_v16 = vld [vmem:[#allocation2 + $0x1ce8] sm:$0xff] }
 0x81b   :  { %4678 = vmatprep.subr.bf16.mxu0 %v4677_v28  ;;  %4724 = vmatpush1.bf16.msra.mxu1 %v5877_v33  ;;  %v4693_v28 = vpack.c.bf16 %v2003_v19, %v2001_v17  ;;  %v2231_v17 = vld [vmem:[#allocation2 + $0x1cf8] sm:$0xff] }
 0x81c   :  { %4726 = vmatprep.subr.bf16.mxu1 %v5880_v39  ;;  %v5929_v22 = vpack.c.bf16 %v2231_v17, %v2229_v16 }
 0x81e   :  { %4680 = vmatpush1.bf16.msra.mxu0 %v4679_v45  ;;  %v4695_v45 = vpack.c.bf16 %v2002_v30, %v2000_v43  ;;  %v2232_v30 = vld [vmem:[#allocation2 + $0x1d00] sm:$0xff] }
 0x81f   :  { %4682 = vmatprep.subr.bf16.mxu0 %v4681_v48  ;;  %4728 = vmatpush1.bf16.msra.mxu1 %v5883_v53  ;;  %v4697_v48 = vpack.c.bf16 %v2007_v42, %v2005_v32  ;;  %v2234_v32 = vld [vmem:[#allocation2 + $0x1d10] sm:$0xff]  ;;  %v2237_v42 = vld [vmem:[#allocation2 + $0x1d28] sm:$0xff] }
 0x820   :  { %4730 = vmatprep.subr.bf16.mxu1 %v5886_v55  ;;  %v5938_v41 = vpack.c.bf16 %v2234_v32, %v2232_v30 }
 0x822   :  { %4684 = vmatpush1.bf16.msra.mxu0 %v4683_v62  ;;  %v2218_v62 = vld [vmem:[#allocation2 + $0x1c90] sm:$0xff] }
 0x823   :  { %4686 = vmatprep.subr.bf16.mxu0 %v4685_v63  ;;  %4732 = vmatpush1.bf16.msra.mxu1 %v5889_v3  ;;  %v2221_v63 = vld [vmem:[#allocation2 + $0x1ca8] sm:$0xff]  ;;  %v5913_v1 = vpack.c.bf16 %v2218_v62, %v2216_v60  ;;  %v2240_v60 = vld [vmem:[#allocation2 + $0x1d40] sm:$0xff]  ;;  %v2242_v62 = vld [vmem:[#allocation2 + $0x1d50] sm:$0xff] }
 0x824   :  { %4734 = vmatprep.subr.bf16.mxu1 %v5892_v5  ;;  %v5916_v2 = vpack.c.bf16 %v2223_v0, %v2221_v63  ;;  %v2245_v63 = vld [vmem:[#allocation2 + $0x1d68] sm:$0xff]  ;;  %v2247_v0 = vld [vmem:[#allocation2 + $0x1d78] sm:$0xff]  ;;  %v5950_v4 = vpack.c.bf16 %v2242_v62, %v2240_v60 }
 0x825   :  { %v5953_v6 = vpack.c.bf16 %v2247_v0, %v2245_v63  ;;  %v2140_v60 = vld [vmem:[#allocation2 + $0x1c78] sm:$0xff]  ;;  %v2256_v63 = vld [vmem:[#allocation2 + $0x1dc0] sm:$0xff]  ;;  %v2258_v0 = vld [vmem:[#allocation2 + $0x1dd0] sm:$0xff] }
 0x826   :  { %4688 = vmatpush1.bf16.msra.mxu0 %v4687_v13  ;;  %v5923_v13 = vpack.c.bf16 %v2227_v10, %v2225_v8  ;;  %v2244_v8 = vld [vmem:[#allocation2 + $0x1d60] sm:$0xff]  ;;  %v2246_v10 = vld [vmem:[#allocation2 + $0x1d70] sm:$0xff] }
 0x827   :  { %4690 = vmatprep.subr.bf16.mxu0 %v4689_v14  ;;  %4736 = vmatpush1.bf16.msra.mxu1 %v5895_v18  ;;  %v2224_v14 = vld [vmem:[#allocation2 + $0x1cc0] sm:$0xff]  ;;  %v5956_v16 = vpack.c.bf16 %v2246_v10, %v2244_v8 }
 0x828   :  { %4738 = vmatprep.subr.bf16.mxu1 %v5898_v20  ;;  %v5926_v19 = vpack.c.bf16 %v2226_v15, %v2224_v14  ;;  %v2249_v14 = vld [vmem:[#allocation2 + $0x1d88] sm:$0xff]  ;;  %v2251_v15 = vld [vmem:[#allocation2 + $0x1d98] sm:$0xff]  ;;  %v2137_v10 = vld [vmem:[#allocation2 + $0x1c60] sm:$0xff] }
 0x829   :  { %v5959_v17 = vpack.c.bf16 %v2251_v15, %v2249_v14  ;;  %v2261_v14 = vld [vmem:[#allocation2 + $0x1de8] sm:$0xff]  ;;  %v2263_v15 = vld [vmem:[#allocation2 + $0x1df8] sm:$0xff] }
 0x82a   :  { %4692 = vmatpush1.bf16.msra.mxu0 %v4691_v44  ;;  %v2235_v44 = vld [vmem:[#allocation2 + $0x1d18] sm:$0xff] }
 0x82b   :  { %4694 = vmatprep.subr.bf16.mxu0 %v4693_v28  ;;  %4740 = vmatpush1.bf16.msra.mxu1 %v5901_v37  ;;  %v5932_v28 = vpack.c.bf16 %v2230_v25, %v2228_v23  ;;  %v5935_v43 = vpack.c.bf16 %v2235_v44, %v2233_v27  ;;  %v2248_v23 = vld [vmem:[#allocation2 + $0x1d80] sm:$0xff]  ;;  %v2250_v25 = vld [vmem:[#allocation2 + $0x1d90] sm:$0xff]  ;;  %v2253_v27 = vld [vmem:[#allocation2 + $0x1da8] sm:$0xff] }
 0x82c   :  { %4742 = vmatprep.subr.bf16.mxu1 %v5904_v46  ;;  %v2255_v44 = vld [vmem:[#allocation2 + $0x1db8] sm:$0xff]  ;;  %v5962_v30 = vpack.c.bf16 %v2250_v25, %v2248_v23  ;;  %v2139_v23 = vld [vmem:[#allocation2 + $0x1c70] sm:$0xff] }
 0x82d   :  { %v5965_v32 = vpack.c.bf16 %v2255_v44, %v2253_v27  ;;  %v5976_v25 = vpack.c.bf16 %v2139_v23, %v2137_v10  ;;  %v5979_v27 = vpack.c.bf16 %v2258_v0, %v2256_v63  ;;  %v2337_v44 = vld [vmem:[#allocation2 + $0x1e08] sm:$0xff]  ;;  %v1876_v63 = vld [vmem:[#allocation4 + $0x26] sm:$0x3] }
 0x82e   :  { %4696 = vmatpush1.bf16.msra.mxu0 %v4695_v45  ;;  %v5941_v45 = vpack.c.bf16 %v2239_v40, %v2237_v42  ;;  %v2252_v42 = vld [vmem:[#allocation2 + $0x1da0] sm:$0xff]  ;;  %v2254_v40 = vld [vmem:[#allocation2 + $0x1db0] sm:$0xff]  ;;  %v1885_v0 = vrot.slane %v1876_v63, %v5759_v35  ;;  %v1881_v10 = vrot.slane %v1876_v63, %v5762_v38 }
 0x82f   :  { %4698 = vmatprep.subr.bf16.mxu0 %v4697_v48  ;;  %4744 = vmatpush1.bf16.msra.mxu1 %v5907_v52  ;;  %v2236_v48 = vld [vmem:[#allocation2 + $0x1d20] sm:$0xff]  ;;  %6541 = vst [vmem:[#allocation11_spill] sm:$0xff] %v5979_v27  ;;  %v2342_v63 = vld [vmem:[#allocation2 + $0x1e30] sm:$0xff] }
 0x830   :  { %v5944_v56 = vpack.c.bf16 %v2238_v50, %v2236_v48  ;;  %v2257_v48 = vld [vmem:[#allocation2 + $0x1dc8] sm:$0xff]  ;;  %v2259_v50 = vld [vmem:[#allocation2 + $0x1dd8] sm:$0xff] }
 0x831   :  { %v5971_v62 = vpack.c.bf16 %v2259_v50, %v2257_v48  ;;  %v2260_v48 = vld [vmem:[#allocation2 + $0x1de0] sm:$0xff]  ;;  %v2262_v50 = vld [vmem:[#allocation2 + $0x1df0] sm:$0xff] }
 0x832   :  { %4700 = vmatpush1.bf16.msra.mxu0 %v4699_v57  ;;  %v5947_v57 = vpack.c.bf16 %v2243_v54, %v2241_v51  ;;  %v5968_v51 = vpack.c.bf16 %v2254_v40, %v2252_v42  ;;  %v2138_v54 = vld [vmem:[#allocation2 + $0x1c68] sm:$0xff]  ;;  %v2339_v42 = vld [vmem:[#allocation2 + $0x1e18] sm:$0xff]  ;;  %v5982_v40 = vpack.c.bf16 %v2263_v15, %v2261_v14  ;;  %v2336_v14 = vld [vmem:[#allocation2 + $0x1e00] sm:$0xff] }
 0x833   :  { %4750 = vmatprep.subr.bf16.mxu0 %v5910_v58  ;;  %v5973_v8 = vpack.c.bf16 %v2140_v60, %v2138_v54  ;;  %v5985_v54 = vpack.c.bf16 %v2339_v42, %v2337_v44  ;;  %v5989_v60 = vpack.c.bf16 %v2262_v50, %v2260_v48  ;;  %v2338_v15 = vld [vmem:[#allocation2 + $0x1e10] sm:$0xff]  ;;  %v2341_v42 = vld [vmem:[#allocation2 + $0x1e28] sm:$0xff] }
 0x834   :  { %6542 = vst [vmem:[#allocation12_spill] sm:$0xff] %v5982_v40  ;;  %v6002_v24 = vpack.c.bf16 %v2338_v15, %v2336_v14  ;;  %v2346_v14 = vld [vmem:[#allocation2 + $0x1e50] sm:$0xff]  ;;  %v2349_v15 = vld [vmem:[#allocation2 + $0x1e68] sm:$0xff] }
 0x835   :  { %2086 = vmatmul.mubr.f32.vlgmr.msra.gmra.mrb[12].mxu0 %v5838_v26  ;;  %4746 = vmatprep.subr.bf16.mxu1 %v5973_v8  ;;  %6543 = vst [vmem:[#allocation13_spill] sm:$0xff] %v5989_v60 }
 0x836   :  { %4752 = vmatpush1.bf16.msra.mxu0 %v5913_v1  ;;  %4748 = vmatpush1.bf16.msra.mxu1 %v5976_v25 }
 0x837   :  { %4754 = vmatprep.subr.bf16.mxu0 %v5916_v2  ;;  %4798 = vmatprep.subr.bf16.mxu1 %v5985_v54 }
 0x83a   :  { %4756 = vmatpush1.bf16.msra.mxu0 %v5920_v12 }
 0x83b   :  { %4758 = vmatprep.subr.bf16.mxu0 %v5923_v13 }
 0x83e   :  { %4760 = vmatpush1.bf16.msra.mxu0 %v5926_v19 }
 0x83f   :  { %4762 = vmatprep.subr.bf16.mxu0 %v5929_v22 }
 0x842   :  { %4764 = vmatpush1.bf16.msra.mxu0 %v5932_v28 }
 0x843   :  { %4766 = vmatprep.subr.bf16.mxu0 %v5935_v43 }
 0x846   :  { %4768 = vmatpush1.bf16.msra.mxu0 %v5938_v41 }
 0x847   :  { %4770 = vmatprep.subr.bf16.mxu0 %v5941_v45 }
 0x84a   :  { %4772 = vmatpush1.bf16.msra.mxu0 %v5944_v56 }
 0x84b   :  { %4774 = vmatprep.subr.bf16.mxu0 %v5947_v57 }
 0x84e   :  { %4776 = vmatpush1.bf16.msra.mxu0 %v5950_v4 }
 0x84f   :  { %4778 = vmatprep.subr.bf16.mxu0 %v5953_v6 }
 0x852   :  { %4780 = vmatpush1.bf16.msra.mxu0 %v5956_v16 }
 0x853   :  { %4782 = vmatprep.subr.bf16.mxu0 %v5959_v17 }
 0x856   :  { %4784 = vmatpush1.bf16.msra.mxu0 %v5962_v30 }
 0x857   :  { %4786 = vmatprep.subr.bf16.mxu0 %v5965_v32 }
 0x85a   :  { %4788 = vmatpush1.bf16.msra.mxu0 %v5968_v51 }
 0x85b   :  { %4790 = vmatprep.subr.bf16.mxu0 %v5971_v62 }
 0x85e   :  { %4792 = vmatpush1.bf16.msra.mxu0 %v5979_v27  ;;  %v2347_v27 = vld [vmem:[#allocation2 + $0x1e58] sm:$0xff] }
 0x85f   :  { %4794 = vmatprep.subr.bf16.mxu0 %v5982_v40  ;;  %v2340_v40 = vld [vmem:[#allocation2 + $0x1e20] sm:$0xff] }
 0x862   :  { %4796 = vmatpush1.bf16.msra.mxu0 %v5989_v60  ;;  %v6006_v60 = vpack.c.bf16 %v2343_v34, %v2341_v42  ;;  %v6016_v34 = vpack.c.bf16 %v2342_v63, %v2340_v40  ;;  %v2353_v42 = vld [vmem:[#allocation2 + $0x1e88] sm:$0xff]  ;;  %v2352_v63 = vld [vmem:[#allocation2 + $0x1e80] sm:$0xff] }
 0x863   :  { %4846 = vmatprep.subr.bf16.mxu0 %v5831_v11 }
 0x8d8   :  { %v5996_v23 = vpop.f32.mrb[10].mxu0  ;;  %v1954_v44 = vpop.f32.mrb[6].mxu1 }
 0x8d9   :  { %6544 = vst [vmem:[#allocation14_spill] sm:$0xff] %v5996_v23  ;;  %v5998_v48 = vpop.f32.mrb[11].mxu0  ;;  %v1956_v50 = vpop.f32.mrb[7].mxu1  ;;  %v6004_v11 = vadd.f32 %v1954_v44, %v1881_v10  ;;  %v2345_v23 = vld [vmem:[#allocation2 + $0x1e48] sm:$0xff]  ;;  %v2344_v10 = vld [vmem:[#allocation2 + $0x1e40] sm:$0xff]  ;;  %v2351_v44 = vld [vmem:[#allocation2 + $0x1e78] sm:$0xff] }
 0x8da   :  { %v6000_v26 = vadd.f32 %v1956_v50, %v1885_v0  ;;  %v6021_v0 = vpack.c.bf16 %v2347_v27, %v2345_v23  ;;  %v6030_v40 = vpack.c.bf16 %v2351_v44, %v2349_v15  ;;  %v2348_v27 = vld [vmem:[#allocation2 + $0x1e60] sm:$0xff]  ;;  %v2350_v23 = vld [vmem:[#allocation2 + $0x1e70] sm:$0xff]  ;;  %v2355_v50 = vld [vmem:[#allocation2 + $0x1e98] sm:$0xff] }
 0x8db   :  { %v2356_v44 = vld [vmem:[#allocation2 + $0x1ea0] sm:$0xff] }
 0x8dc   :  { %4059 = vmatprep.mubr.msk.f32.mxu1 %vm113_vm0, %v6000_v26  ;;  %4060 = vmatprep.mubr.msk.f32.mxu0 %vm113_vm0, %v6000_v26 }
 0x8dd   :  { %2209 = vmatmul.mubr.f32.vlgmr.msra.gmra.mrb[8].mxu1 %v6004_v11  ;;  %2329 = vmatmul.mubr.f32.vlgmr.msra.gmra.mrb[14].mxu0 %v6004_v11 }
 0x8de   :  { %4800 = vmatpush1.bf16.msra.mxu1 %v6002_v24  ;;  %4848 = vmatpush1.bf16.msra.mxu0 %v5840_v29  ;;  %v6026_v29 = vpack.c.bf16 %v2346_v14, %v2344_v10  ;;  %v2357_v10 = vld [vmem:[#allocation2 + $0x1ea8] sm:$0xff]  ;;  %v2359_v14 = vld [vmem:[#allocation2 + $0x1eb8] sm:$0xff] }
 0x8df   :  { %4061 = vmatprep.mubr.msk.f32.mxu1 %vm113_vm0, %v6000_v26  ;;  %4802 = vmatprep.subr.bf16.mxu1 %v6006_v60 }
 0x8e0   :  { %4850 = vmatprep.subr.bf16.mxu0 %v5846_v31  ;;  %v6034_v31 = vpack.c.bf16 %v2350_v23, %v2348_v27  ;;  %v2361_v27 = vld [vmem:[#allocation2 + $0x1ec8] sm:$0xff]  ;;  %v2363_v23 = vld [vmem:[#allocation2 + $0x1ed8] sm:$0xff] }
 0x8e2   :  { %4804 = vmatpush1.bf16.msra.mxu1 %v6016_v34  ;;  %4852 = vmatpush1.bf16.msra.mxu0 %v5853_v47  ;;  %v6038_v47 = vpack.c.bf16 %v2355_v50, %v2353_v42  ;;  %v2360_v50 = vld [vmem:[#allocation2 + $0x1ec0] sm:$0xff] }
 0x8e3   :  { %4806 = vmatprep.subr.bf16.mxu1 %v6021_v0  ;;  %4854 = vmatprep.subr.bf16.mxu0 %v5856_v49  ;;  %v2354_v49 = vld [vmem:[#allocation2 + $0x1e90] sm:$0xff] }
 0x8e4   :  { %v6042_v15 = vpack.c.bf16 %v2354_v49, %v2352_v63  ;;  %v2365_v63 = vld [vmem:[#allocation2 + $0x1ee8] sm:$0xff]  ;;  %v2367_v49 = vld [vmem:[#allocation2 + $0x1ef8] sm:$0xff] }
 0x8e6   :  { %4808 = vmatpush1.bf16.msra.mxu1 %v6026_v29  ;;  %4856 = vmatpush1.bf16.msra.mxu0 %v5859_v59  ;;  %v6046_v59 = vpack.c.bf16 %v2359_v14, %v2357_v10  ;;  %v2364_v14 = vld [vmem:[#allocation2 + $0x1ee0] sm:$0xff] }
 0x8e7   :  { %4810 = vmatprep.subr.bf16.mxu1 %v6030_v40  ;;  %4858 = vmatprep.subr.bf16.mxu0 %v5862_v61  ;;  %v2358_v61 = vld [vmem:[#allocation2 + $0x1eb0] sm:$0xff] }
 0x8e8   :  { %v6050_v42 = vpack.c.bf16 %v2358_v61, %v2356_v44  ;;  %v2369_v44 = vld [vmem:[#allocation2 + $0x1f08] sm:$0xff]  ;;  %v2371_v61 = vld [vmem:[#allocation2 + $0x1f18] sm:$0xff] }
 0x8ea   :  { %4812 = vmatpush1.bf16.msra.mxu1 %v6034_v31  ;;  %4860 = vmatpush1.bf16.msra.mxu0 %v5865_v7  ;;  %v6054_v7 = vpack.c.bf16 %v2363_v23, %v2361_v27  ;;  %v2368_v23 = vld [vmem:[#allocation2 + $0x1f00] sm:$0xff] }
 0x8eb   :  { %4814 = vmatprep.subr.bf16.mxu1 %v6038_v47  ;;  %4862 = vmatprep.subr.bf16.mxu0 %v5868_v9  ;;  %v2362_v9 = vld [vmem:[#allocation2 + $0x1ed0] sm:$0xff] }
 0x8ec   :  { %v6058_v10 = vpack.c.bf16 %v2362_v9, %v2360_v50  ;;  %v2373_v50 = vld [vmem:[#allocation2 + $0x1f28] sm:$0xff]  ;;  %v2375_v9 = vld [vmem:[#allocation2 + $0x1f38] sm:$0xff] }
 0x8ee   :  { %4816 = vmatpush1.bf16.msra.mxu1 %v6042_v15  ;;  %4864 = vmatpush1.bf16.msra.mxu0 %v5871_v36  ;;  %v6062_v36 = vpack.c.bf16 %v2367_v49, %v2365_v63  ;;  %v2372_v49 = vld [vmem:[#allocation2 + $0x1f20] sm:$0xff] }
 0x8ef   :  { %4818 = vmatprep.subr.bf16.mxu1 %v6046_v59  ;;  %4866 = vmatprep.subr.bf16.mxu0 %v5874_v21  ;;  %v2366_v21 = vld [vmem:[#allocation2 + $0x1ef0] sm:$0xff] }
 0x8f0   :  { %v6066_v27 = vpack.c.bf16 %v2366_v21, %v2364_v14  ;;  %v2377_v14 = vld [vmem:[#allocation2 + $0x1f48] sm:$0xff]  ;;  %v2379_v21 = vld [vmem:[#allocation2 + $0x1f58] sm:$0xff] }
 0x8f2   :  { %4820 = vmatpush1.bf16.msra.mxu1 %v6050_v42  ;;  %4868 = vmatpush1.bf16.msra.mxu0 %v5877_v33  ;;  %v6070_v33 = vpack.c.bf16 %v2371_v61, %v2369_v44  ;;  %v2376_v61 = vld [vmem:[#allocation2 + $0x1f40] sm:$0xff] }
 0x8f3   :  { %4822 = vmatprep.subr.bf16.mxu1 %v6054_v7  ;;  %4870 = vmatprep.subr.bf16.mxu0 %v5880_v39  ;;  %v2370_v39 = vld [vmem:[#allocation2 + $0x1f10] sm:$0xff] }
 0x8f4   :  { %v6074_v63 = vpack.c.bf16 %v2370_v39, %v2368_v23  ;;  %v2381_v23 = vld [vmem:[#allocation2 + $0x1f68] sm:$0xff]  ;;  %v2383_v39 = vld [vmem:[#allocation2 + $0x1f78] sm:$0xff] }
 0x8f6   :  { %4824 = vmatpush1.bf16.msra.mxu1 %v6058_v10  ;;  %4872 = vmatpush1.bf16.msra.mxu0 %v5883_v53  ;;  %v6078_v53 = vpack.c.bf16 %v2375_v9, %v2373_v50  ;;  %v6094_v9 = vpack.c.bf16 %v2383_v39, %v2381_v23  ;;  %v1668_v23 = vld [vmem:[#allocation2 + $0x1a50] sm:$0xff]  ;;  %v1671_v39 = vld [vmem:[#allocation2 + $0x1a68] sm:$0xff] }
 0x8f7   :  { %4826 = vmatprep.subr.bf16.mxu1 %v6062_v36  ;;  %4874 = vmatprep.subr.bf16.mxu0 %v5886_v55  ;;  %v2374_v55 = vld [vmem:[#allocation2 + $0x1f30] sm:$0xff] }
 0x8f8   :  { %v6082_v44 = vpack.c.bf16 %v2374_v55, %v2372_v49  ;;  %v2382_v49 = vld [vmem:[#allocation2 + $0x1f70] sm:$0xff] }
 0x8fa   :  { %4828 = vmatpush1.bf16.msra.mxu1 %v6066_v27  ;;  %4876 = vmatpush1.bf16.msra.mxu0 %v5889_v3  ;;  %v6086_v3 = vpack.c.bf16 %v2379_v21, %v2377_v14 }
 0x8fb   :  { %4830 = vmatprep.subr.bf16.mxu1 %v6070_v33  ;;  %4878 = vmatprep.subr.bf16.mxu0 %v5892_v5  ;;  %v2378_v5 = vld [vmem:[#allocation2 + $0x1f50] sm:$0xff] }
 0x8fc   :  { %v6090_v50 = vpack.c.bf16 %v2378_v5, %v2376_v61 }
 0x8fe   :  { %4832 = vmatpush1.bf16.msra.mxu1 %v6074_v63  ;;  %4880 = vmatpush1.bf16.msra.mxu0 %v5895_v18  ;;  %v2009_v18 = vld [vmem:[#allocation4 + $0x28] sm:$0x3] }
 0x8ff   :  { %4834 = vmatprep.subr.bf16.mxu1 %v6078_v53  ;;  %4882 = vmatprep.subr.bf16.mxu0 %v5898_v20  ;;  %v2380_v20 = vld [vmem:[#allocation2 + $0x1f60] sm:$0xff]  ;;  %v2018_v55 = vrot.slane %v2009_v18, %v5759_v35 }
 0x900   :  { %v6099_v14 = vpack.c.bf16 %v2382_v49, %v2380_v20  ;;  %v1670_v20 = vld [vmem:[#allocation2 + $0x1a60] sm:$0xff]  ;;  %v1672_v49 = vld [vmem:[#allocation2 + $0x1a70] sm:$0xff] }
 0x902   :  { %4836 = vmatpush1.bf16.msra.mxu1 %v6082_v44  ;;  %4884 = vmatpush1.bf16.msra.mxu0 %v5901_v37  ;;  %v2014_v37 = vrot.slane %v2009_v18, %v5762_v38 }
 0x903   :  { %4838 = vmatprep.subr.bf16.mxu1 %v6086_v3  ;;  %4886 = vmatprep.subr.bf16.mxu0 %v5904_v46 }
 0x906   :  { %4840 = vmatpush1.bf16.msra.mxu1 %v6090_v50  ;;  %4888 = vmatpush1.bf16.msra.mxu0 %v5907_v52  ;;  %v1643_v52 = vld [vmem:[#allocation2 + $0x1988] sm:$0xff] }
 0x907   :  { %4842 = vmatprep.subr.bf16.mxu1 %v6094_v9  ;;  %4890 = vmatprep.subr.bf16.mxu0 %v5973_v8  ;;  %v1652_v8 = vld [vmem:[#allocation2 + $0x19d0] sm:$0xff] }
 0x908   :  { %v2087_v46 = vpop.f32.mrb[12].mxu0 }
 0x909   :  { %v2089_v21 = vpop.f32.mrb[13].mxu0  ;;  %v6108_v5 = vadd.f32 %v2087_v46, %v2014_v37  ;;  %v6235_v37 = vpack.c.bf16 %v1672_v49, %v1670_v20 }
 0x90a   :  { %v6104_v61 = vadd.f32 %v2089_v21, %v2018_v55  ;;  %4844 = vmatpush1.bf16.msra.mxu1 %v6099_v14  ;;  %4892 = vmatpush1.bf16.msra.mxu0 %v5976_v25  ;;  %v1655_v25 = vld [vmem:[#allocation2 + $0x19e8] sm:$0xff]  ;;  %v1674_v21 = vld [vmem:[#allocation2 + $0x1a80] sm:$0xff] }
 0x90b   :  { %4894 = vmatprep.subr.bf16.mxu1 %v5910_v58  ;;  %4942 = vmatprep.subr.bf16.mxu0 %v5985_v54  ;;  %v1645_v58 = vld [vmem:[#allocation2 + $0x1998] sm:$0xff]  ;;  %v1675_v55 = vld [vmem:[#allocation2 + $0x1a88] sm:$0xff] }
 0x90c   :  { %4062 = vmatprep.mubr.msk.f32.mxu0 %vm113_vm0, %v6104_v61  ;;  %v1657_v54 = vld [vmem:[#allocation2 + $0x19f8] sm:$0xff] }
 0x90d   :  { %2449 = vmatmul.mubr.f32.vlgmr.msra.gmra.mrb[10].mxu1 %v6004_v11  ;;  %2523 = vmatmul.mubr.f32.vlgmr.msra.gmra.mrb[16].mxu0 %v6108_v5 }
 0x90e   :  { %4896 = vmatpush1.bf16.msra.mxu1 %v5913_v1  ;;  %4063 = vmatprep.mubr.msk.f32.mxu1 %vm113_vm0, %v6104_v61 }
 0x90f   :  { %4944 = vmatpush1.bf16.msra.mxu0 %v6002_v24  ;;  %4064 = vmatprep.mubr.msk.f32.mxu0 %vm113_vm0, %v6104_v61  ;;  %v6156_v24 = vld [vmem:[#allocation4 + $0x24] sm:$0x3] }
 0x910   :  { %4898 = vmatprep.subr.bf16.mxu1 %v5916_v2  ;;  %4946 = vmatprep.subr.bf16.mxu0 %v6006_v60  ;;  %v1749_v1 = vrot.slane %v6156_v24, %v5759_v35  ;;  %v6545_v2 = vld [vmem:[#allocation11_spill] sm:$0xff]  ;;  %v6198_v60 = vpack.c.bf16 %v1657_v54, %v1655_v25  ;;  %v1686_v54 = vld [vmem:[#allocation2 + $0x1ae0] sm:$0xff] }
 0x912   :  { %4900 = vmatpush1.bf16.msra.mxu1 %v5920_v12  ;;  %v6546_v12 = vld [vmem:[#allocation12_spill] sm:$0xff] }
 0x913   :  { %4948 = vmatpush1.bf16.msra.mxu0 %v6016_v34  ;;  %4902 = vmatprep.subr.bf16.mxu1 %v5923_v13  ;;  %v6167_v13 = vpack.c.bf16 %v1645_v58, %v1643_v52  ;;  %v1656_v34 = vld [vmem:[#allocation2 + $0x19f0] sm:$0xff]  ;;  %v1679_v58 = vld [vmem:[#allocation2 + $0x1aa8] sm:$0xff] }
 0x914   :  { %4950 = vmatprep.subr.bf16.mxu0 %v6021_v0  ;;  %v1659_v0 = vld [vmem:[#allocation2 + $0x1a08] sm:$0xff]  ;;  %v1676_v52 = vld [vmem:[#allocation2 + $0x1a90] sm:$0xff] }
 0x916   :  { %4904 = vmatpush1.bf16.msra.mxu1 %v5926_v19  ;;  %v1642_v19 = vld [vmem:[#allocation2 + $0x1980] sm:$0xff] }
 0x917   :  { %4952 = vmatpush1.bf16.msra.mxu0 %v6026_v29  ;;  %4906 = vmatprep.subr.bf16.mxu1 %v5929_v22  ;;  %v1644_v22 = vld [vmem:[#allocation2 + $0x1990] sm:$0xff]  ;;  %v1661_v29 = vld [vmem:[#allocation2 + $0x1a18] sm:$0xff] }
 0x918   :  { %4954 = vmatprep.subr.bf16.mxu0 %v6030_v40 }
 0x91a   :  { %4908 = vmatpush1.bf16.msra.mxu1 %v5932_v28  ;;  %v1647_v28 = vld [vmem:[#allocation2 + $0x19a8] sm:$0xff] }
 0x91b   :  { %4956 = vmatpush1.bf16.msra.mxu0 %v6034_v31  ;;  %4910 = vmatprep.subr.bf16.mxu1 %v5935_v43  ;;  %v1649_v43 = vld [vmem:[#allocation2 + $0x19b8] sm:$0xff]  ;;  %v6206_v31 = vpack.c.bf16 %v1661_v29, %v1659_v0  ;;  %v6548_v0 = vld [vmem:[#allocation14_spill] sm:$0xff] }
 0x91c   :  { %4958 = vmatprep.subr.bf16.mxu0 %v6038_v47  ;;  %v1658_v47 = vld [vmem:[#allocation2 + $0x1a00] sm:$0xff] }
 0x91e   :  { %4912 = vmatpush1.bf16.msra.mxu1 %v5938_v41  ;;  %v6171_v41 = vadd.f32 %v5998_v48, %v1749_v1  ;;  %v1654_v48 = vld [vmem:[#allocation2 + $0x19e0] sm:$0xff]  ;;  %v1681_v1 = vld [vmem:[#allocation2 + $0x1ab8] sm:$0xff] }
 0x91f   :  { %4960 = vmatpush1.bf16.msra.mxu0 %v6042_v15  ;;  %4914 = vmatprep.subr.bf16.mxu1 %v5941_v45  ;;  %v6547_v45 = vld [vmem:[#allocation13_spill] sm:$0xff]  ;;  %v6203_v40 = vpack.c.bf16 %v1656_v34, %v1654_v48  ;;  %v1660_v15 = vld [vmem:[#allocation2 + $0x1a10] sm:$0xff] }
 0x920   :  { %4962 = vmatprep.subr.bf16.mxu0 %v6046_v59  ;;  %v1663_v59 = vld [vmem:[#allocation2 + $0x1a28] sm:$0xff]  ;;  %v1688_v48 = vld [vmem:[#allocation2 + $0x1af0] sm:$0xff] }
 0x921   :  { %v6269_v34 = vpack.c.bf16 %v1688_v48, %v1686_v54  ;;  %v3055_v48 = vld [vmem:[#allocation2 + $0x13c8] sm:$0xff] }
 0x922   :  { %4916 = vmatpush1.bf16.msra.mxu1 %v5944_v56  ;;  %v6174_v56 = vpack.c.bf16 %v1644_v22, %v1642_v19  ;;  %v1678_v19 = vld [vmem:[#allocation2 + $0x1aa0] sm:$0xff]  ;;  %v1680_v22 = vld [vmem:[#allocation2 + $0x1ab0] sm:$0xff] }
 0x923   :  { %4964 = vmatpush1.bf16.msra.mxu0 %v6050_v42  ;;  %4918 = vmatprep.subr.bf16.mxu1 %v5947_v57  ;;  %v6178_v57 = vpack.c.bf16 %v1649_v43, %v1647_v28  ;;  %v1665_v42 = vld [vmem:[#allocation2 + $0x1a38] sm:$0xff]  ;;  %v1683_v28 = vld [vmem:[#allocation2 + $0x1ac8] sm:$0xff] }
 0x924   :  { %4966 = vmatprep.subr.bf16.mxu0 %v6054_v7  ;;  %v6211_v7 = vpack.c.bf16 %v1660_v15, %v1658_v47  ;;  %v1685_v43 = vld [vmem:[#allocation2 + $0x1ad8] sm:$0xff] }
 0x926   :  { %4920 = vmatpush1.bf16.msra.mxu1 %v5950_v4  ;;  %v1646_v4 = vld [vmem:[#allocation2 + $0x19a0] sm:$0xff] }
 0x927   :  { %4968 = vmatpush1.bf16.msra.mxu0 %v6058_v10  ;;  %4922 = vmatprep.subr.bf16.mxu1 %v5953_v6  ;;  %v1648_v6 = vld [vmem:[#allocation2 + $0x19b0] sm:$0xff]  ;;  %v6214_v10 = vpack.c.bf16 %v1665_v42, %v1663_v59 }
 0x928   :  { %4970 = vmatprep.subr.bf16.mxu0 %v6062_v36  ;;  %v1662_v36 = vld [vmem:[#allocation2 + $0x1a20] sm:$0xff] }
 0x92a   :  { %4924 = vmatpush1.bf16.msra.mxu1 %v5956_v16  ;;  %v1651_v16 = vld [vmem:[#allocation2 + $0x19c8] sm:$0xff] }
 0x92b   :  { %4972 = vmatpush1.bf16.msra.mxu0 %v6066_v27  ;;  %4926 = vmatprep.subr.bf16.mxu1 %v5959_v17  ;;  %v1653_v17 = vld [vmem:[#allocation2 + $0x19d8] sm:$0xff]  ;;  %v1664_v27 = vld [vmem:[#allocation2 + $0x1a30] sm:$0xff] }
 0x92c   :  { %4974 = vmatprep.subr.bf16.mxu0 %v6070_v33  ;;  %v1667_v33 = vld [vmem:[#allocation2 + $0x1a48] sm:$0xff] }
 0x92e   :  { %4928 = vmatpush1.bf16.msra.mxu1 %v5962_v30  ;;  %v2672_v30 = vmul.f32 %v6000_v26, %v6171_v41 }
 0x92f   :  { %4976 = vmatpush1.bf16.msra.mxu0 %v6074_v63  ;;  %4930 = vmatprep.subr.bf16.mxu1 %v5965_v32  ;;  %v6186_v32 = vpack.c.bf16 %v1648_v6, %v1646_v4  ;;  %v1669_v63 = vld [vmem:[#allocation2 + $0x1a58] sm:$0xff]  ;;  %v6254_v4 = vpack.c.bf16 %v1685_v43, %v1683_v28  ;;  %v1682_v6 = vld [vmem:[#allocation2 + $0x1ac0] sm:$0xff]  ;;  %v3051_v43 = vld [vmem:[#allocation2 + $0x13a8] sm:$0xff] }
 0x930   :  { %4978 = vmatprep.subr.bf16.mxu0 %v6078_v53  ;;  %v6219_v53 = vpack.c.bf16 %v1664_v27, %v1662_v36 }
 0x932   :  { %4932 = vmatpush1.bf16.msra.mxu1 %v5968_v51  ;;  %v6190_v51 = vpack.c.bf16 %v1653_v17, %v1651_v16  ;;  %v1684_v16 = vld [vmem:[#allocation2 + $0x1ad0] sm:$0xff]  ;;  %v1687_v17 = vld [vmem:[#allocation2 + $0x1ae8] sm:$0xff] }
 0x933   :  { %4980 = vmatpush1.bf16.msra.mxu0 %v6082_v44  ;;  %4934 = vmatprep.subr.bf16.mxu1 %v5971_v62  ;;  %v1650_v62 = vld [vmem:[#allocation2 + $0x19c0] sm:$0xff]  ;;  %v6222_v44 = vpack.c.bf16 %v1669_v63, %v1667_v33 }
 0x934   :  { %4982 = vmatprep.subr.bf16.mxu0 %v6086_v3  ;;  %v6195_v26 = vpack.c.bf16 %v1652_v8, %v1650_v62  ;;  %v1666_v3 = vld [vmem:[#allocation2 + $0x1a40] sm:$0xff]  ;;  %v6259_v62 = vpack.c.bf16 %v1684_v16, %v1682_v6  ;;  %v1745_v8 = vrot.slane %v6156_v24, %v5762_v38  ;;  %v3053_v6 = vld [vmem:[#allocation2 + $0x13b8] sm:$0xff] }
 0x935   :  { %v6227_v18 = vpack.c.bf16 %v1668_v23, %v1666_v3 }
 0x936   :  { %4936 = vmatpush1.bf16.msra.mxu1 %v6545_v2  ;;  %v6243_v2 = vpack.c.bf16 %v1676_v52, %v1674_v21  ;;  %v6272_v29 = vadd.f32 %v6548_v0, %v1745_v8  ;;  %v3047_v21 = vld [vmem:[#allocation2 + $0x1388] sm:$0xff]  ;;  %v3049_v52 = vld [vmem:[#allocation2 + $0x1398] sm:$0xff]  ;;  %v3052_v8 = vld [vmem:[#allocation2 + $0x13b0] sm:$0xff] }
 0x937   :  { %4984 = vmatpush1.bf16.msra.mxu0 %v6090_v50  ;;  %4938 = vmatprep.subr.bf16.mxu1 %v6546_v12  ;;  %v1673_v50 = vld [vmem:[#allocation2 + $0x1a78] sm:$0xff]  ;;  %v6246_v12 = vpack.c.bf16 %v1681_v1, %v1679_v58  ;;  %v5181_v58 = vpack.c.bf16 %v3049_v52, %v3047_v21  ;;  %v3046_v1 = vld [vmem:[#allocation2 + $0x1380] sm:$0xff]  ;;  %v3064_v21 = vld [vmem:[#allocation2 + $0x1410] sm:$0xff] }
 0x938   :  { %4986 = vmatprep.subr.bf16.mxu0 %v6094_v9  ;;  %v6230_v9 = vpack.c.bf16 %v1673_v50, %v1671_v39  ;;  %v2671_v24 = vmul.f32 %v6004_v11, %v6272_v29  ;;  %v3057_v0 = vld [vmem:[#allocation2 + $0x13d8] sm:$0xff] }
 0x93a   :  { %4940 = vmatpush1.bf16.msra.mxu1 %v6547_v45  ;;  %v6251_v45 = vpack.c.bf16 %v1680_v22, %v1678_v19  ;;  %v3048_v19 = vld [vmem:[#allocation2 + $0x1390] sm:$0xff] }
 0x93b   :  { %4988 = vmatpush1.bf16.msra.mxu0 %v6099_v14  ;;  %4990 = vmatprep.subr.bf16.mxu1 %v6167_v13  ;;  %v1677_v14 = vld [vmem:[#allocation2 + $0x1a98] sm:$0xff]  ;;  %v5183_v22 = vpack.c.bf16 %v3048_v19, %v3046_v1 }
 0x93c   :  { %5038 = vmatprep.subr.bf16.mxu0 %v6167_v13  ;;  %v6238_v46 = vpack.c.bf16 %v1677_v14, %v1675_v55  ;;  %v3069_v1 = vld [vmem:[#allocation2 + $0x1438] sm:$0xff] }
 0x93d   :  { %2594 = vmatmul.mubr.f32.vlgmr.msra.gmra.mrb[12].mxu1 %v6108_v5 }
 0x93e   :  { %2665 = vmatmul.mubr.f32.vlgmr.msra.gmra.mrb[18].mxu0 %v6108_v5  ;;  %4992 = vmatpush1.bf16.msra.mxu1 %v6174_v56 }
 0x93f   :  { %4065 = vmatprep.mubr.msk.f32.mxu1 %vm113_vm0, %v2672_v30  ;;  %4994 = vmatprep.subr.bf16.mxu1 %v6178_v57  ;;  %v1689_v30 = vld [vmem:[#allocation2 + $0x1af8] sm:$0xff] }
 0x940   :  { %5040 = vmatpush1.bf16.msra.mxu0 %v6174_v56  ;;  %v6264_v25 = vpack.c.bf16 %v1689_v30, %v1687_v17  ;;  %v5185_v17 = vpack.c.bf16 %v3053_v6, %v3051_v43  ;;  %v3050_v30 = vld [vmem:[#allocation2 + $0x13a0] sm:$0xff]  ;;  %v3068_v43 = vld [vmem:[#allocation2 + $0x1430] sm:$0xff] }
 0x941   :  { %5042 = vmatprep.subr.bf16.mxu0 %v6178_v57  ;;  %v5187_v54 = vpack.c.bf16 %v3052_v8, %v3050_v30  ;;  %v3073_v30 = vld [vmem:[#allocation2 + $0x1458] sm:$0xff] }
 0x942   :  { %4996 = vmatpush1.bf16.msra.mxu1 %v6186_v32 }
 0x943   :  { %4998 = vmatprep.subr.bf16.mxu1 %v6190_v51 }
 0x944   :  { %5044 = vmatpush1.bf16.msra.mxu0 %v6186_v32 }
 0x945   :  { %5046 = vmatprep.subr.bf16.mxu0 %v6190_v51 }
 0x946   :  { %5000 = vmatpush1.bf16.msra.mxu1 %v6195_v26 }
 0x947   :  { %5002 = vmatprep.subr.bf16.mxu1 %v6198_v60 }
 0x948   :  { %5048 = vmatpush1.bf16.msra.mxu0 %v6195_v26 }
 0x949   :  { %5050 = vmatprep.subr.bf16.mxu0 %v6198_v60 }
 0x94a   :  { %5004 = vmatpush1.bf16.msra.mxu1 %v6203_v40 }
 0x94b   :  { %5006 = vmatprep.subr.bf16.mxu1 %v6206_v31 }
 0x94c   :  { %5052 = vmatpush1.bf16.msra.mxu0 %v6203_v40 }
 0x94d   :  { %5054 = vmatprep.subr.bf16.mxu0 %v6206_v31 }
 0x94e   :  { %5008 = vmatpush1.bf16.msra.mxu1 %v6211_v7 }
 0x94f   :  { %5010 = vmatprep.subr.bf16.mxu1 %v6214_v10 }
 0x950   :  { %5056 = vmatpush1.bf16.msra.mxu0 %v6211_v7 }
 0x951   :  { %5058 = vmatprep.subr.bf16.mxu0 %v6214_v10 }
 0x952   :  { %5012 = vmatpush1.bf16.msra.mxu1 %v6219_v53 }
 0x953   :  { %5014 = vmatprep.subr.bf16.mxu1 %v6222_v44 }
 0x954   :  { %5060 = vmatpush1.bf16.msra.mxu0 %v6219_v53 }
 0x955   :  { %5062 = vmatprep.subr.bf16.mxu0 %v6222_v44 }
 0x956   :  { %5016 = vmatpush1.bf16.msra.mxu1 %v6227_v18 }
 0x957   :  { %5018 = vmatprep.subr.bf16.mxu1 %v6230_v9 }
 0x958   :  { %5064 = vmatpush1.bf16.msra.mxu0 %v6227_v18 }
 0x959   :  { %5066 = vmatprep.subr.bf16.mxu0 %v6230_v9 }
 0x95a   :  { %5020 = vmatpush1.bf16.msra.mxu1 %v6235_v37 }
 0x95b   :  { %5022 = vmatprep.subr.bf16.mxu1 %v6238_v46 }
 0x95c   :  { %5068 = vmatpush1.bf16.msra.mxu0 %v6235_v37 }
 0x95d   :  { %5070 = vmatprep.subr.bf16.mxu0 %v6238_v46 }
 0x95e   :  { %5024 = vmatpush1.bf16.msra.mxu1 %v6243_v2 }
 0x95f   :  { %5026 = vmatprep.subr.bf16.mxu1 %v6246_v12 }
 0x960   :  { %5072 = vmatpush1.bf16.msra.mxu0 %v6243_v2 }
 0x961   :  { %5074 = vmatprep.subr.bf16.mxu0 %v6246_v12 }
 0x962   :  { %5028 = vmatpush1.bf16.msra.mxu1 %v6251_v45 }
 0x963   :  { %5030 = vmatprep.subr.bf16.mxu1 %v6254_v4 }
 0x964   :  { %5076 = vmatpush1.bf16.msra.mxu0 %v6251_v45 }
 0x965   :  { %5078 = vmatprep.subr.bf16.mxu0 %v6254_v4 }
 0x966   :  { %5032 = vmatpush1.bf16.msra.mxu1 %v6259_v62 }
 0x967   :  { %5034 = vmatprep.subr.bf16.mxu1 %v6264_v25 }
 0x968   :  { %5080 = vmatpush1.bf16.msra.mxu0 %v6259_v62 }
 0x969   :  { %5082 = vmatprep.subr.bf16.mxu0 %v6264_v25 }
 0x96a   :  { %5036 = vmatpush1.bf16.msra.mxu1 %v6269_v34 }
 0x96b   :  { %5086 = vmatprep.subr.bf16.mxu1 %v6167_v13 }
 0x96c   :  { %5084 = vmatpush1.bf16.msra.mxu0 %v6269_v34 }
 0x96d   :  { %2741 = vmatmul.mubr.f32.vlgmr.msra.gmra.mrb[14].mxu1 %v2671_v24  ;;  %5134 = vmatprep.subr.bf16.mxu0 %v6167_v13  ;;  %v3054_v24 = vld [vmem:[#allocation2 + $0x13c0] sm:$0xff] }
 0x96e   :  { %5088 = vmatpush1.bf16.msra.mxu1 %v6174_v56 }
 0x96f   :  { %5090 = vmatprep.subr.bf16.mxu1 %v6178_v57 }
 0x972   :  { %5092 = vmatpush1.bf16.msra.mxu1 %v6186_v32 }
 0x973   :  { %5094 = vmatprep.subr.bf16.mxu1 %v6190_v51 }
 0x976   :  { %5096 = vmatpush1.bf16.msra.mxu1 %v6195_v26 }
 0x977   :  { %5098 = vmatprep.subr.bf16.mxu1 %v6198_v60 }
 0x97a   :  { %5100 = vmatpush1.bf16.msra.mxu1 %v6203_v40 }
 0x97b   :  { %5102 = vmatprep.subr.bf16.mxu1 %v6206_v31 }
 0x97e   :  { %5104 = vmatpush1.bf16.msra.mxu1 %v6211_v7 }
 0x97f   :  { %5106 = vmatprep.subr.bf16.mxu1 %v6214_v10 }
 0x982   :  { %5108 = vmatpush1.bf16.msra.mxu1 %v6219_v53 }
 0x983   :  { %5110 = vmatprep.subr.bf16.mxu1 %v6222_v44 }
 0x986   :  { %5112 = vmatpush1.bf16.msra.mxu1 %v6227_v18 }
 0x987   :  { %5114 = vmatprep.subr.bf16.mxu1 %v6230_v9 }
 0x98a   :  { %5116 = vmatpush1.bf16.msra.mxu1 %v6235_v37 }
 0x98b   :  { %5118 = vmatprep.subr.bf16.mxu1 %v6238_v46 }
 0x98e   :  { %5120 = vmatpush1.bf16.msra.mxu1 %v6243_v2 }
 0x98f   :  { %5122 = vmatprep.subr.bf16.mxu1 %v6246_v12 }
 0x992   :  { %5124 = vmatpush1.bf16.msra.mxu1 %v6251_v45 }
 0x993   :  { %5126 = vmatprep.subr.bf16.mxu1 %v6254_v4 }
 0x996   :  { %5128 = vmatpush1.bf16.msra.mxu1 %v6259_v62 }
 0x997   :  { %5130 = vmatprep.subr.bf16.mxu1 %v6264_v25 }
 0x99a   :  { %5132 = vmatpush1.bf16.msra.mxu1 %v6269_v34 }
 0x99b   :  { %5182 = vmatprep.subr.bf16.mxu1 %v5181_v58  ;;  %v3067_v58 = vld [vmem:[#allocation2 + $0x1428] sm:$0xff] }
 0x99c   :  { %v5201_v19 = vpack.c.bf16 %v3069_v1, %v3067_v58  ;;  %v3084_v58 = vld [vmem:[#allocation2 + $0x14b0] sm:$0xff]  ;;  %v3087_v1 = vld [vmem:[#allocation2 + $0x14c8] sm:$0xff] }
 0x9b0   :  { %v2210_v11 = vpop.f32.mrb[8].mxu1  ;;  %v2330_v47 = vpop.f32.mrb[14].mxu0 }
 0x9b1   :  { %v2212_v15 = vpop.f32.mrb[9].mxu1  ;;  %v2332_v59 = vpop.f32.mrb[15].mxu0  ;;  %v2749_v27 = vmul.f32 %v2210_v11, %v6272_v29  ;;  %v2827_v33 = vmul.f32 %v2330_v47, %v6272_v29  ;;  %v3056_v11 = vld [vmem:[#allocation2 + $0x13d0] sm:$0xff] }
 0x9b2   :  { %v2750_v42 = vmul.f32 %v2212_v15, %v6171_v41  ;;  %v2828_v36 = vmul.f32 %v2332_v59, %v6171_v41  ;;  %v5191_v47 = vpack.c.bf16 %v3056_v11, %v3054_v24  ;;  %v3059_v15 = vld [vmem:[#allocation2 + $0x13e8] sm:$0xff]  ;;  %v3061_v59 = vld [vmem:[#allocation2 + $0x13f8] sm:$0xff]  ;;  %v3074_v11 = vld [vmem:[#allocation2 + $0x1460] sm:$0xff] }
 0x9b3   :  { %v3077_v24 = vld [vmem:[#allocation2 + $0x1478] sm:$0xff] }
 0x9b4   :  { %4066 = vmatprep.mubr.msk.f32.mxu0 %vm113_vm0, %v2750_v42  ;;  %4067 = vmatprep.mubr.msk.f32.mxu1 %vm113_vm0, %v2828_v36  ;;  %v5193_v42 = vpack.c.bf16 %v3061_v59, %v3059_v15  ;;  %v3058_v36 = vld [vmem:[#allocation2 + $0x13e0] sm:$0xff]  ;;  %v3076_v15 = vld [vmem:[#allocation2 + $0x1470] sm:$0xff]  ;;  %v3079_v59 = vld [vmem:[#allocation2 + $0x1488] sm:$0xff] }
 0x9b5   :  { %2819 = vmatmul.mubr.f32.vlgmr.msra.gmra.mrb[20].mxu0 %v2749_v27  ;;  %2897 = vmatmul.mubr.f32.vlgmr.msra.gmra.mrb[16].mxu1 %v2827_v33  ;;  %v3060_v27 = vld [vmem:[#allocation2 + $0x13f0] sm:$0xff] }
 0x9b6   :  { %5136 = vmatpush1.bf16.msra.mxu0 %v6174_v56  ;;  %5184 = vmatpush1.bf16.msra.mxu1 %v5183_v22  ;;  %v5195_v33 = vpack.c.bf16 %v3060_v27, %v3058_v36  ;;  %v3066_v22 = vld [vmem:[#allocation2 + $0x1420] sm:$0xff]  ;;  %v5211_v36 = vpack.c.bf16 %v3076_v15, %v3074_v11 }
 0x9b7   :  { %5138 = vmatprep.subr.bf16.mxu0 %v6178_v57  ;;  %5186 = vmatprep.subr.bf16.mxu1 %v5185_v17  ;;  %v5203_v6 = vpack.c.bf16 %v3068_v43, %v3066_v22  ;;  %v3071_v17 = vld [vmem:[#allocation2 + $0x1448] sm:$0xff] }
 0x9b8   :  { %v5205_v8 = vpack.c.bf16 %v3073_v30, %v3071_v17  ;;  %v3088_v17 = vld [vmem:[#allocation2 + $0x14d0] sm:$0xff]  ;;  %v3091_v30 = vld [vmem:[#allocation2 + $0x14e8] sm:$0xff] }
 0x9ba   :  { %5140 = vmatpush1.bf16.msra.mxu0 %v6186_v32  ;;  %5188 = vmatpush1.bf16.msra.mxu1 %v5187_v54  ;;  %v3070_v54 = vld [vmem:[#allocation2 + $0x1440] sm:$0xff] }
 0x9bb   :  { %5142 = vmatprep.subr.bf16.mxu0 %v6190_v51 }
 0x9be   :  { %5144 = vmatpush1.bf16.msra.mxu0 %v6195_v26 }
 0x9bf   :  { %5146 = vmatprep.subr.bf16.mxu0 %v6198_v60 }
 0x9c2   :  { %5148 = vmatpush1.bf16.msra.mxu0 %v6203_v40 }
 0x9c3   :  { %5150 = vmatprep.subr.bf16.mxu0 %v6206_v31 }
 0x9c6   :  { %5152 = vmatpush1.bf16.msra.mxu0 %v6211_v7 }
 0x9c7   :  { %5154 = vmatprep.subr.bf16.mxu0 %v6214_v10 }
 0x9ca   :  { %5156 = vmatpush1.bf16.msra.mxu0 %v6219_v53 }
 0x9cb   :  { %5158 = vmatprep.subr.bf16.mxu0 %v6222_v44 }
 0x9ce   :  { %5160 = vmatpush1.bf16.msra.mxu0 %v6227_v18 }
 0x9cf   :  { %5162 = vmatprep.subr.bf16.mxu0 %v6230_v9 }
 0x9d2   :  { %5164 = vmatpush1.bf16.msra.mxu0 %v6235_v37 }
 0x9d3   :  { %5166 = vmatprep.subr.bf16.mxu0 %v6238_v46 }
 0x9d6   :  { %5168 = vmatpush1.bf16.msra.mxu0 %v6243_v2 }
 0x9d7   :  { %5170 = vmatprep.subr.bf16.mxu0 %v6246_v12 }
 0x9da   :  { %5172 = vmatpush1.bf16.msra.mxu0 %v6251_v45 }
 0x9db   :  { %5174 = vmatprep.subr.bf16.mxu0 %v6254_v4 }
 0x9de   :  { %5176 = vmatpush1.bf16.msra.mxu0 %v6259_v62 }
 0x9df   :  { %5178 = vmatprep.subr.bf16.mxu0 %v6264_v25 }
 0x9e0   :  { %v2450_v63 = vpop.f32.mrb[10].mxu1  ;;  %v6334_v3 = vpop.f32.mrb[16].mxu0 }
 0x9e1   :  { %v2452_v23 = vpop.f32.mrb[11].mxu1  ;;  %v6336_v39 = vpop.f32.mrb[17].mxu0  ;;  %v2905_v20 = vmul.f32 %v2450_v63, %v6272_v29  ;;  %v5189_v29 = vpack.c.bf16 %v3057_v0, %v3055_v48  ;;  %v3063_v63 = vld [vmem:[#allocation2 + $0x1408] sm:$0xff]  ;;  %v3072_v48 = vld [vmem:[#allocation2 + $0x1450] sm:$0xff] }
 0x9e2   :  { %v2906_v50 = vmul.f32 %v2452_v23, %v6171_v41  ;;  %5180 = vmatpush1.bf16.msra.mxu0 %v6269_v34  ;;  %v3065_v23 = vld [vmem:[#allocation2 + $0x1418] sm:$0xff]  ;;  %v5207_v0 = vpack.c.bf16 %v3072_v48, %v3070_v54 }
 0x9e3   :  { %5230 = vmatprep.subr.bf16.mxu0 %v6167_v13  ;;  %5190 = vmatprep.subr.bf16.mxu1 %v5189_v29  ;;  %v3075_v29 = vld [vmem:[#allocation2 + $0x1468] sm:$0xff] }
 0x9e4   :  { %4068 = vmatprep.mubr.msk.f32.mxu0 %vm113_vm0, %v2906_v50  ;;  %5192 = vmatpush1.bf16.msra.mxu1 %v5191_v47  ;;  %v5197_v50 = vpack.c.bf16 %v3065_v23, %v3063_v63  ;;  %v5209_v47 = vpack.c.bf16 %v3077_v24, %v3075_v29  ;;  %v3080_v63 = vld [vmem:[#allocation2 + $0x1490] sm:$0xff]  ;;  %v3083_v23 = vld [vmem:[#allocation2 + $0x14a8] sm:$0xff] }
 0x9e5   :  { %2975 = vmatmul.mubr.f32.vlgmr.msra.gmra.mrb[22].mxu0 %v2905_v20  ;;  %5194 = vmatprep.subr.bf16.mxu1 %v5193_v42  ;;  %v3062_v20 = vld [vmem:[#allocation2 + $0x1400] sm:$0xff]  ;;  %v3081_v42 = vld [vmem:[#allocation2 + $0x1498] sm:$0xff]  ;;  %v3092_v29 = vld [vmem:[#allocation2 + $0x14f0] sm:$0xff] }
 0x9e6   :  { %5232 = vmatpush1.bf16.msra.mxu0 %v6174_v56  ;;  %v5199_v52 = vpack.c.bf16 %v3064_v21, %v3062_v20  ;;  %v5213_v27 = vpack.c.bf16 %v3081_v42, %v3079_v59 }
 0x9e7   :  { %5234 = vmatprep.subr.bf16.mxu0 %v6178_v57 }
 0x9e8   :  { %5196 = vmatpush1.bf16.msra.mxu1 %v5195_v33  ;;  %v3078_v33 = vld [vmem:[#allocation2 + $0x1480] sm:$0xff] }
 0x9e9   :  { %5198 = vmatprep.subr.bf16.mxu1 %v5197_v50  ;;  %v3085_v50 = vld [vmem:[#allocation2 + $0x14b8] sm:$0xff]  ;;  %v5215_v20 = vpack.c.bf16 %v3080_v63, %v3078_v33 }
 0x9ea   :  { %5236 = vmatpush1.bf16.msra.mxu0 %v6186_v32  ;;  %v5217_v21 = vpack.c.bf16 %v3085_v50, %v3083_v23 }
 0x9eb   :  { %5238 = vmatprep.subr.bf16.mxu0 %v6190_v51 }
 0x9ec   :  { %5200 = vmatpush1.bf16.msra.mxu1 %v5199_v52  ;;  %v3082_v52 = vld [vmem:[#allocation2 + $0x14a0] sm:$0xff] }
 0x9ed   :  { %5202 = vmatprep.subr.bf16.mxu1 %v5201_v19  ;;  %v3089_v19 = vld [vmem:[#allocation2 + $0x14d8] sm:$0xff]  ;;  %v5219_v22 = vpack.c.bf16 %v3084_v58, %v3082_v52 }
 0x9ee   :  { %5240 = vmatpush1.bf16.msra.mxu0 %v6195_v26  ;;  %v5221_v43 = vpack.c.bf16 %v3089_v19, %v3087_v1 }
 0x9ef   :  { %5242 = vmatprep.subr.bf16.mxu0 %v6198_v60 }
 0x9f0   :  { %5204 = vmatpush1.bf16.msra.mxu1 %v5203_v6  ;;  %v3086_v6 = vld [vmem:[#allocation2 + $0x14c0] sm:$0xff] }
 0x9f1   :  { %5206 = vmatprep.subr.bf16.mxu1 %v5205_v8  ;;  %v3093_v8 = vld [vmem:[#allocation2 + $0x14f8] sm:$0xff]  ;;  %v5223_v54 = vpack.c.bf16 %v3088_v17, %v3086_v6 }
 0x9f2   :  { %5244 = vmatpush1.bf16.msra.mxu0 %v6203_v40  ;;  %v5225_v48 = vpack.c.bf16 %v3093_v8, %v3091_v30 }
 0x9f3   :  { %5246 = vmatprep.subr.bf16.mxu0 %v6206_v31 }
 0x9f4   :  { %5208 = vmatpush1.bf16.msra.mxu1 %v5207_v0  ;;  %v3090_v0 = vld [vmem:[#allocation2 + $0x14e0] sm:$0xff] }
 0x9f5   :  { %5210 = vmatprep.subr.bf16.mxu1 %v5209_v47  ;;  %v5227_v24 = vpack.c.bf16 %v3092_v29, %v3090_v0 }
 0x9f6   :  { %5248 = vmatpush1.bf16.msra.mxu0 %v6211_v7 }
 0x9f7   :  { %5250 = vmatprep.subr.bf16.mxu0 %v6214_v10 }
 0x9f8   :  { %5212 = vmatpush1.bf16.msra.mxu1 %v5211_v36 }
 0x9f9   :  { %5214 = vmatprep.subr.bf16.mxu1 %v5213_v27 }
 0x9fa   :  { %5252 = vmatpush1.bf16.msra.mxu0 %v6219_v53 }
 0x9fb   :  { %5254 = vmatprep.subr.bf16.mxu0 %v6222_v44 }
 0x9fc   :  { %5216 = vmatpush1.bf16.msra.mxu1 %v5215_v20 }
 0x9fd   :  { %5218 = vmatprep.subr.bf16.mxu1 %v5217_v21 }
 0x9fe   :  { %5256 = vmatpush1.bf16.msra.mxu0 %v6227_v18 }
 0x9ff   :  { %5258 = vmatprep.subr.bf16.mxu0 %v6230_v9 }
 0xa00   :  { %5220 = vmatpush1.bf16.msra.mxu1 %v5219_v22 }
 0xa01   :  { %5222 = vmatprep.subr.bf16.mxu1 %v5221_v43 }
 0xa02   :  { %5260 = vmatpush1.bf16.msra.mxu0 %v6235_v37 }
 0xa03   :  { %5262 = vmatprep.subr.bf16.mxu0 %v6238_v46 }
 0xa04   :  { %5224 = vmatpush1.bf16.msra.mxu1 %v5223_v54 }
 0xa05   :  { %5226 = vmatprep.subr.bf16.mxu1 %v5225_v48 }
 0xa06   :  { %5264 = vmatpush1.bf16.msra.mxu0 %v6243_v2 }
 0xa07   :  { %5266 = vmatprep.subr.bf16.mxu0 %v6246_v12 }
 0xa08   :  { %5228 = vmatpush1.bf16.msra.mxu1 %v5227_v24 }
 0xa09   :  { %5278 = vmatprep.subr.bf16.mxu1 %v6167_v13 }
 0xa0a   :  { %5268 = vmatpush1.bf16.msra.mxu0 %v6251_v45 }
 0xa0b   :  { %5270 = vmatprep.subr.bf16.mxu0 %v6254_v4 }
 0xa0e   :  { %5272 = vmatpush1.bf16.msra.mxu0 %v6259_v62 }
 0xa0f   :  { %5274 = vmatprep.subr.bf16.mxu0 %v6264_v25 }
 0xa10   :  { %v6365_v41 = vpop.f32.mrb[12].mxu1 }
 0xa11   :  { %v6367_v49 = vpop.f32.mrb[18].mxu0  ;;  %v6369_v55 = vpop.f32.mrb[13].mxu1 }
 0xa12   :  { %v6371_v14 = vpop.f32.mrb[19].mxu0  ;;  %5276 = vmatpush1.bf16.msra.mxu0 %v6269_v34 }
 0xa40   :  { %v6374_v28 = vpop.f32.mrb[14].mxu1 }
 0xa41   :  { %v6376_v16 = vpop.f32.mrb[15].mxu1  ;;  %v2747_v15 = vmul.f32 2.828427, %v6374_v28 }
 0xa42   :  { %v2748_v27 = vmul.f32 2.828427, %v6376_v16 }
 0xa88   :  { %v2820_v11 = vpop.f32.mrb[20].mxu0  ;;  %v2898_v47 = vpop.f32.mrb[16].mxu1 }
 0xa89   :  { %v2825_v59 = vmul.f32 2.828427, %v2820_v11  ;;  %v2822_v42 = vpop.f32.mrb[21].mxu0  ;;  %v2900_v36 = vpop.f32.mrb[17].mxu1  ;;  %v2903_v23 = vmul.f32 2.828427, %v2898_v47 }
 0xa8a   :  { %v2826_v33 = vmul.f32 2.828427, %v2822_v42  ;;  %v2904_v20 = vmul.f32 2.828427, %v2900_v36 }
 0xa8b   :  { %v2983_v63 = vmax.f32 %v2747_v15, %v2825_v59 }
 0xa8c   :  { %v2984_v50 = vmax.f32 %v2748_v27, %v2826_v33 }
 0xa8d   :  { %v2985_v21 = vmax.f32 %v2983_v63, %v2903_v23 }
 0xa8e   :  { %v2986_v52 = vmax.f32 %v2984_v50, %v2904_v20 }
 0xab8   :  { %v2976_v58 = vpop.f32.mrb[22].mxu0 }
 0xab9   :  { %v2981_v1 = vmul.f32 2.828427, %v2976_v58  ;;  %v2978_v19 = vpop.f32.mrb[23].mxu0 }
 0xaba   :  { %v2982_v22 = vmul.f32 2.828427, %v2978_v19 }
 0xabb   :  { %v2987_v43 = vmax.f32 %v2985_v21, %v2981_v1 }
 0xabc   :  { %v2988_v6 = vmax.f32 %v2986_v52, %v2982_v22 }
 0xabd   :  { %v2989_v17 = vsub.f32 %v2747_v15, %v2987_v43  ;;  %v2995_v28 = vsub.f32 %v2825_v59, %v2987_v43  ;;  %v3001_v30 = vsub.f32 %v2903_v23, %v2987_v43  ;;  %v3007_v8 = vsub.f32 %v2981_v1, %v2987_v43 }
 0xabe   :  { %v2990_v54 = vsub.f32 %v2748_v27, %v2988_v6  ;;  %v2996_v48 = vsub.f32 %v2826_v33, %v2988_v6  ;;  %v3002_v16 = vsub.f32 %v2904_v20, %v2988_v6  ;;  %v3008_v0 = vsub.f32 %v2982_v22, %v2988_v6 }
 0xabf   :  { %v2991_v29 = vmul.f32 1.442695, %v2989_v17  ;;  %v2997_v24 = vmul.f32 1.442695, %v2995_v28  ;;  %v3003_v11 = vmul.f32 1.442695, %v3001_v30 }
 0xac0   :  { %v3009_v47 = vmul.f32 1.442695, %v3007_v8  ;;  %v2993_v42 = vmul.f32 1.442695, %v2990_v54  ;;  %v2999_v36 = vmul.f32 1.442695, %v2996_v48 }
 0xac1   :  { %5612 = vpow2.f32 %v2991_v29  ;;  %v3005_v63 = vmul.f32 1.442695, %v3002_v16  ;;  %v3011_v15 = vmul.f32 1.442695, %v3008_v0 }
 0xac2   :  { %5614 = vpow2.f32 %v2997_v24 }
 0xac3   :  { %5616 = vpow2.f32 %v3003_v11 }
 0xac4   :  { %5618 = vpow2.f32 %v3009_v47 }
 0xac5   :  { %5620 = vpow2.f32 %v2993_v42 }
 0xac6   :  { %5622 = vpow2.f32 %v2999_v36 }
 0xac7   :  { %5624 = vpow2.f32 %v3005_v63 }
 0xac8   :  { %5626 = vpow2.f32 %v3011_v15 }
 0xacb   :  { %v5613_v59 = vpop.eup %5612 }
 0xacc   :  { %v5615_v27 = vpop.eup %5614 }
 0xacd   :  { %v5617_v33 = vpop.eup %5616  ;;  %v3013_v23 = vadd.f32 %v5615_v27, %v5613_v59 }
 0xace   :  { %v5619_v50 = vpop.eup %5618 }
 0xacf   :  { %v5621_v20 = vpop.eup %5620  ;;  %v3015_v21 = vadd.f32 %v5617_v33, %v3013_v23 }
 0xad0   :  { %v5623_v52 = vpop.eup %5622 }
 0xad1   :  { %v3017_v58 = vadd.f32 %v5619_v50, %v3015_v21  ;;  %v3014_v1 = vadd.f32 %v5623_v52, %v5621_v20  ;;  %v5625_v19 = vpop.eup %5624 }
 0xad2   :  { %v5627_v43 = vpop.eup %5626 }
 0xad3   :  { %5628 = vrcp.f32 %v3017_v58  ;;  %v3016_v22 = vadd.f32 %v5625_v19, %v3014_v1  ;;  %v6550_v1 = vld [vmem:[#allocation10_spill] sm:$0xff] }
 0xad5   :  { %v3018_v6 = vadd.f32 %v5627_v43, %v3016_v22  ;;  %v3371_v22 = vld [vmem:[#allocation2 + $0x1508] sm:$0xff] }
 0xad7   :  { %5630 = vrcp.f32 %v3018_v6  ;;  %v3370_v6 = vld [vmem:[#allocation2 + $0x1500] sm:$0xff] }
 0xadd   :  { %v5629_v17 = vpop.eup %5628 }
 0xade   :  { %v3023_v28 = vmul.f32 %v5629_v17, %v5613_v59  ;;  %v3027_v30 = vmul.f32 %v5629_v17, %v5615_v27  ;;  %v3033_v8 = vmul.f32 %v5629_v17, %v5617_v33  ;;  %v3039_v54 = vmul.f32 %v5629_v17, %v5619_v50 }
 0xae0   :  { %v3025_v48 = vmul.f32 %v3023_v28, %v6108_v5  ;;  %v3029_v16 = vmul.f32 %v3027_v30, %v6334_v3  ;;  %v3035_v0 = vmul.f32 %v3033_v8, %v6365_v41  ;;  %v3041_v29 = vmul.f32 %v3039_v54, %v6367_v49  ;;  %v3372_v28 = vld [vmem:[#allocation2 + $0x1510] sm:$0xff]  ;;  %v3375_v30 = vld [vmem:[#allocation2 + $0x1528] sm:$0xff]  ;;  %v3377_v8 = vld [vmem:[#allocation2 + $0x1538] sm:$0xff] }
 0xae1   :  { %v5631_v24 = vpop.eup %5630  ;;  %v5327_v54 = vpack.c.bf16 %v3372_v28, %v3370_v6  ;;  %v3396_v28 = vld [vmem:[#allocation2 + $0x15d0] sm:$0xff] }
 0xae2   :  { %v3024_v11 = vmul.f32 %v5631_v24, %v5621_v20  ;;  %v3028_v47 = vmul.f32 %v5631_v24, %v5623_v52  ;;  %v3034_v42 = vmul.f32 %v5631_v24, %v5625_v19  ;;  %v3040_v36 = vmul.f32 %v5631_v24, %v5627_v43  ;;  %v6549_v52 = vld [vmem:[#allocation9_spill] sm:$0xff]  ;;  %v3373_v43 = vld [vmem:[#allocation2 + $0x1518] sm:$0xff] }
 0xae3   :  { %v3031_v63 = vadd.f32 %v3029_v16, %v3025_v48  ;;  %v5325_v17 = vpack.c.bf16 %v3373_v43, %v3371_v22  ;;  %v5329_v48 = vpack.c.bf16 %v3377_v8, %v3375_v30  ;;  %v3374_v16 = vld [vmem:[#allocation2 + $0x1520] sm:$0xff]  ;;  %v3381_v24 = vld [vmem:[#allocation2 + $0x1558] sm:$0xff] }
 0xae4   :  { %v3026_v15 = vmul.f32 %v3024_v11, %v6104_v61  ;;  %v3030_v59 = vmul.f32 %v3028_v47, %v6336_v39  ;;  %v3036_v27 = vmul.f32 %v3034_v42, %v6369_v55  ;;  %v3042_v5 = vmul.f32 %v3040_v36, %v6371_v14  ;;  %v3095_v61 = vld [vmem:[#allocation4 + $0x2a] sm:$0x3]  ;;  %v3378_v42 = vld [vmem:[#allocation2 + $0x1540] sm:$0xff]  ;;  %v3380_v36 = vld [vmem:[#allocation2 + $0x1550] sm:$0xff] }
 0xae5   :  { %v3037_v33 = vadd.f32 %v3035_v0, %v3031_v63  ;;  %v3100_v39 = vrot.slane %v3095_v61, %v5762_v38  ;;  %v3104_v49 = vrot.slane %v3095_v61, %v5759_v35  ;;  %v3376_v0 = vld [vmem:[#allocation2 + $0x1530] sm:$0xff]  ;;  %5326 = vmatprep.subr.bf16.mxu0 %v5325_v17  ;;  %v3383_v63 = vld [vmem:[#allocation2 + $0x1568] sm:$0xff]  ;;  %v3386_v61 = vld [vmem:[#allocation2 + $0x1580] sm:$0xff] }
 0xae6   :  { %v3032_v3 = vadd.f32 %v3030_v59, %v3026_v15  ;;  %v5331_v11 = vpack.c.bf16 %v3376_v0, %v3374_v16  ;;  %v3385_v15 = vld [vmem:[#allocation2 + $0x1578] sm:$0xff]  ;;  %v5335_v59 = vpack.c.bf16 %v3380_v36, %v3378_v42  ;;  %v3394_v17 = vld [vmem:[#allocation2 + $0x15c0] sm:$0xff]  ;;  %v3400_v36 = vld [vmem:[#allocation2 + $0x15f0] sm:$0xff] }
 0xae7   :  { %v3043_v23 = vadd.f32 %v3041_v29, %v3037_v33  ;;  %v3379_v29 = vld [vmem:[#allocation2 + $0x1548] sm:$0xff]  ;;  %v3384_v33 = vld [vmem:[#allocation2 + $0x1570] sm:$0xff]  ;;  %v3397_v22 = vld [vmem:[#allocation2 + $0x15d8] sm:$0xff]  ;;  %v5351_v30 = vpack.c.bf16 %v3396_v28, %v3394_v17 }
 0xae8   :  { %v3038_v41 = vadd.f32 %v3036_v27, %v3032_v3  ;;  %v5333_v47 = vpack.c.bf16 %v3381_v24, %v3379_v29  ;;  %v5337_v27 = vpack.c.bf16 %v3385_v15, %v3383_v63  ;;  %v3387_v3 = vld [vmem:[#allocation2 + $0x1588] sm:$0xff]  ;;  %v3398_v42 = vld [vmem:[#allocation2 + $0x15e0] sm:$0xff]  ;;  %v3405_v15 = vld [vmem:[#allocation2 + $0x1618] sm:$0xff] }
 0xae9   :  { %v3399_v24 = vld [vmem:[#allocation2 + $0x15e8] sm:$0xff] }
 0xaea   :  { %v3044_v50 = vadd.f32 %v3042_v5, %v3038_v41  ;;  %v3382_v5 = vld [vmem:[#allocation2 + $0x1560] sm:$0xff]  ;;  %v3403_v63 = vld [vmem:[#allocation2 + $0x1608] sm:$0xff] }
 0xaeb   :  { %v5339_v41 = vpack.c.bf16 %v3384_v33, %v3382_v5  ;;  %v3407_v5 = vld [vmem:[#allocation2 + $0x1628] sm:$0xff]  ;;  %v3409_v33 = vld [vmem:[#allocation2 + $0x1638] sm:$0xff] }
 0xaec   :  { %4069 = vmatprep.mubr.msk.f32.mxu1 %vm113_vm0, %v3044_v50  ;;  %v3509_v28 = vld [vmem:[#allocation2 + $0x1688] sm:$0xff] }
 0xaed   :  { %3175 = vmatmul.mubr.f32.vlgmr.msra.gmra.mrb[18].mxu1 %v3043_v23  ;;  %v3389_v23 = vld [vmem:[#allocation2 + $0x1598] sm:$0xff] }
 0xaee   :  { %5280 = vmatpush1.bf16.msra.mxu1 %v6174_v56  ;;  %v5341_v50 = vpack.c.bf16 %v3389_v23, %v3387_v3  ;;  %v5361_v23 = vpack.c.bf16 %v3409_v33, %v3407_v5  ;;  %v3521_v5 = vld [vmem:[#allocation2 + $0x16e8] sm:$0xff]  ;;  %v3523_v33 = vld [vmem:[#allocation2 + $0x16f8] sm:$0xff] }
 0xaef   :  { %5282 = vmatprep.subr.bf16.mxu1 %v6178_v57 }
 0xaf2   :  { %5284 = vmatpush1.bf16.msra.mxu1 %v6186_v32 }
 0xaf3   :  { %5286 = vmatprep.subr.bf16.mxu1 %v6190_v51 }
 0xaf6   :  { %5288 = vmatpush1.bf16.msra.mxu1 %v6195_v26 }
 0xaf7   :  { %5290 = vmatprep.subr.bf16.mxu1 %v6198_v60 }
 0xafa   :  { %5292 = vmatpush1.bf16.msra.mxu1 %v6203_v40 }
 0xafb   :  { %5294 = vmatprep.subr.bf16.mxu1 %v6206_v31 }
 0xafe   :  { %5296 = vmatpush1.bf16.msra.mxu1 %v6211_v7 }
 0xaff   :  { %5298 = vmatprep.subr.bf16.mxu1 %v6214_v10 }
 0xb02   :  { %5300 = vmatpush1.bf16.msra.mxu1 %v6219_v53 }
 0xb03   :  { %5302 = vmatprep.subr.bf16.mxu1 %v6222_v44 }
 0xb06   :  { %5304 = vmatpush1.bf16.msra.mxu1 %v6227_v18 }
 0xb07   :  { %5306 = vmatprep.subr.bf16.mxu1 %v6230_v9 }
 0xb0a   :  { %5308 = vmatpush1.bf16.msra.mxu1 %v6235_v37 }
 0xb0b   :  { %5310 = vmatprep.subr.bf16.mxu1 %v6238_v46 }
 0xb0e   :  { %5312 = vmatpush1.bf16.msra.mxu1 %v6243_v2 }
 0xb0f   :  { %5314 = vmatprep.subr.bf16.mxu1 %v6246_v12 }
 0xb12   :  { %5316 = vmatpush1.bf16.msra.mxu1 %v6251_v45 }
 0xb13   :  { %5318 = vmatprep.subr.bf16.mxu1 %v6254_v4 }
 0xb16   :  { %5320 = vmatpush1.bf16.msra.mxu1 %v6259_v62 }
 0xb17   :  { %5322 = vmatprep.subr.bf16.mxu1 %v6264_v25 }
 0xb1a   :  { %5324 = vmatpush1.bf16.msra.mxu1 %v6269_v34 }
 0xbc0   :  { %v3176_v55 = vpop.f32.mrb[18].mxu1 }
 0xbc1   :  { %v3177_v14 = vadd.f32 %v3176_v55, %v3100_v39  ;;  %v3178_v20 = vpop.f32.mrb[19].mxu1  ;;  %v3388_v39 = vld [vmem:[#allocation2 + $0x1590] sm:$0xff]  ;;  %v3393_v55 = vld [vmem:[#allocation2 + $0x15b8] sm:$0xff] }
 0xbc2   :  { %v3179_v21 = vadd.f32 %v3178_v20, %v3104_v49  ;;  %v3391_v49 = vld [vmem:[#allocation2 + $0x15a8] sm:$0xff] }
 0xbc3   :  { %v3181_v19 = vadd.f32 %v3177_v14, %v6550_v1  ;;  %v5343_v14 = vpack.c.bf16 %v3388_v39, %v3386_v61  ;;  %v5345_v20 = vpack.c.bf16 %v3393_v55, %v3391_v49  ;;  %v3395_v1 = vld [vmem:[#allocation2 + $0x15c8] sm:$0xff]  ;;  %v3413_v39 = vld [vmem:[#allocation2 + $0x1658] sm:$0xff] }
 0xbc4   :  { %v6416_v58 = vadd.f32 %v3179_v21, %v6549_v52  ;;  %v3390_v21 = vld [vmem:[#allocation2 + $0x15a0] sm:$0xff]  ;;  %v3392_v52 = vld [vmem:[#allocation2 + $0x15b0] sm:$0xff]  ;;  %v5349_v6 = vpack.c.bf16 %v3397_v22, %v3395_v1  ;;  %v3411_v61 = vld [vmem:[#allocation2 + $0x1648] sm:$0xff] }
 0xbc5   :  { %v5347_v43 = vpack.c.bf16 %v3392_v52, %v3390_v21  ;;  %v5365_v55 = vpack.c.bf16 %v3413_v39, %v3411_v61  ;;  %v3415_v21 = vld [vmem:[#allocation2 + $0x1668] sm:$0xff]  ;;  %v3417_v52 = vld [vmem:[#allocation2 + $0x1678] sm:$0xff] }
 0xbc6   :  { %4070 = vmatprep.mubr.msk.f32.mxu0 %vm113_vm0, %v6416_v58  ;;  %v5369_v22 = vpack.c.bf16 %v3417_v52, %v3415_v21  ;;  %v3525_v61 = vld [vmem:[#allocation2 + $0x1708] sm:$0xff]  ;;  %v3527_v39 = vld [vmem:[#allocation2 + $0x1718] sm:$0xff] }
 0xbc7   :  { %3255 = vmatmul.mubr.f32.vlgmr.msra.gmra.mrb[24].mxu0 %v3181_v19  ;;  %v3529_v21 = vld [vmem:[#allocation2 + $0x1728] sm:$0xff]  ;;  %v3531_v52 = vld [vmem:[#allocation2 + $0x1738] sm:$0xff] }
 0xbc8   :  { %5328 = vmatpush1.bf16.msra.mxu0 %v5327_v54 }
 0xbc9   :  { %5330 = vmatprep.subr.bf16.mxu0 %v5329_v48 }
 0xbcc   :  { %5332 = vmatpush1.bf16.msra.mxu0 %v5331_v11  ;;  %v3401_v11 = vld [vmem:[#allocation2 + $0x15f8] sm:$0xff] }
 0xbcd   :  { %5334 = vmatprep.subr.bf16.mxu0 %v5333_v47  ;;  %v5353_v47 = vpack.c.bf16 %v3401_v11, %v3399_v24  ;;  %v3515_v24 = vld [vmem:[#allocation2 + $0x16b8] sm:$0xff] }
 0xbd0   :  { %5336 = vmatpush1.bf16.msra.mxu0 %v5335_v59  ;;  %v5357_v59 = vpack.c.bf16 %v3405_v15, %v3403_v63  ;;  %v3519_v63 = vld [vmem:[#allocation2 + $0x16d8] sm:$0xff] }
 0xbd1   :  { %5338 = vmatprep.subr.bf16.mxu0 %v5337_v27  ;;  %v3404_v27 = vld [vmem:[#allocation2 + $0x1610] sm:$0xff] }
 0xbd4   :  { %5340 = vmatpush1.bf16.msra.mxu0 %v5339_v41  ;;  %v3406_v41 = vld [vmem:[#allocation2 + $0x1620] sm:$0xff] }
 0xbd5   :  { %5342 = vmatprep.subr.bf16.mxu0 %v5341_v50  ;;  %v3408_v50 = vld [vmem:[#allocation2 + $0x1630] sm:$0xff] }
 0xbd6   :  { %v5363_v49 = vpack.c.bf16 %v3408_v50, %v3406_v41  ;;  %v3520_v41 = vld [vmem:[#allocation2 + $0x16e0] sm:$0xff]  ;;  %v3522_v50 = vld [vmem:[#allocation2 + $0x16f0] sm:$0xff] }
 0xbd8   :  { %5344 = vmatpush1.bf16.msra.mxu0 %v5343_v14  ;;  %v3410_v14 = vld [vmem:[#allocation2 + $0x1640] sm:$0xff] }
 0xbd9   :  { %5346 = vmatprep.subr.bf16.mxu0 %v5345_v20  ;;  %v3412_v20 = vld [vmem:[#allocation2 + $0x1650] sm:$0xff] }
 0xbda   :  { %v5367_v1 = vpack.c.bf16 %v3412_v20, %v3410_v14  ;;  %v3524_v14 = vld [vmem:[#allocation2 + $0x1700] sm:$0xff]  ;;  %v3526_v20 = vld [vmem:[#allocation2 + $0x1710] sm:$0xff] }
 0xbdc   :  { %5348 = vmatpush1.bf16.msra.mxu0 %v5347_v43  ;;  %v3414_v43 = vld [vmem:[#allocation2 + $0x1660] sm:$0xff] }
 0xbdd   :  { %5350 = vmatprep.subr.bf16.mxu0 %v5349_v6  ;;  %v3416_v6 = vld [vmem:[#allocation2 + $0x1670] sm:$0xff] }
 0xbde   :  { %v5371_v17 = vpack.c.bf16 %v3416_v6, %v3414_v43  ;;  %v3528_v43 = vld [vmem:[#allocation2 + $0x1720] sm:$0xff]  ;;  %v3530_v6 = vld [vmem:[#allocation2 + $0x1730] sm:$0xff] }
 0xbe0   :  { %5352 = vmatpush1.bf16.msra.mxu0 %v5351_v30  ;;  %v3511_v30 = vld [vmem:[#allocation2 + $0x1698] sm:$0xff] }
 0xbe1   :  { %5354 = vmatprep.subr.bf16.mxu0 %v5353_v47 }
 0xc9a   :  { %v3256_v8 = vpop.f32.mrb[24].mxu0 }
 0xc9b   :  { %v6421_v54 = vsub.f32 %v3181_v19, %v3256_v8  ;;  %v3258_v48 = vpop.f32.mrb[25].mxu0  ;;  %v5355_v19 = vpack.c.bf16 %v3400_v36, %v3398_v42  ;;  %v3508_v8 = vld [vmem:[#allocation2 + $0x1680] sm:$0xff]  ;;  %v3514_v36 = vld [vmem:[#allocation2 + $0x16b0] sm:$0xff] }
 0xc9c   :  { %v6424_v16 = vsub.f32 %v6416_v58, %v3258_v48  ;;  %v3402_v58 = vld [vmem:[#allocation2 + $0x1600] sm:$0xff]  ;;  %v5373_v48 = vpack.c.bf16 %v3511_v30, %v3509_v28  ;;  %v3535_v28 = vld [vmem:[#allocation2 + $0x1758] sm:$0xff]  ;;  %v5395_v30 = vpack.c.bf16 %v3530_v6, %v3528_v43 }
 0xc9d   :  { %v3263_v29 = vmul.f32 %v6421_v54, %v6421_v54  ;;  %5356 = vmatpush1.bf16.msra.mxu0 %v5355_v19  ;;  %v5359_v3 = vpack.c.bf16 %v3404_v27, %v3402_v58  ;;  %v3512_v42 = vld [vmem:[#allocation2 + $0x16a0] sm:$0xff]  ;;  %v3517_v19 = vld [vmem:[#allocation2 + $0x16c8] sm:$0xff]  ;;  %v3518_v27 = vld [vmem:[#allocation2 + $0x16d0] sm:$0xff] }
 0xc9e   :  { %v3264_v0 = vmul.f32 %v6424_v16, %v6424_v16  ;;  %5358 = vmatprep.subr.bf16.mxu0 %v5357_v59  ;;  %5374 = vmatprep.subr.bf16.mxu1 %v5373_v48  ;;  %v5379_v15 = vpack.c.bf16 %v3514_v36, %v3512_v42  ;;  %v5381_v58 = vpack.c.bf16 %v3519_v63, %v3517_v19  ;;  %v3516_v59 = vld [vmem:[#allocation2 + $0x16c0] sm:$0xff]  ;;  %v3538_v36 = vld [vmem:[#allocation2 + $0x1770] sm:$0xff]  ;;  %v3541_v19 = vld [vmem:[#allocation2 + $0x1788] sm:$0xff] }
 0xc9f   :  { %v3532_v48 = vld [vmem:[#allocation2 + $0x1740] sm:$0xff]  ;;  %v3543_v63 = vld [vmem:[#allocation2 + $0x1798] sm:$0xff] }
 0xca0   :  { %4071 = vmatprep.mubr.msk.f32.mxu1 %vm113_vm0, %v3264_v0  ;;  %v3510_v0 = vld [vmem:[#allocation2 + $0x1690] sm:$0xff]  ;;  %v3536_v42 = vld [vmem:[#allocation2 + $0x1760] sm:$0xff] }
 0xca1   :  { %3333 = vmatmul.mubr.f32.vlgmr.msra.gmra.mrb[20].mxu1 %v3263_v29  ;;  %5360 = vmatpush1.bf16.msra.mxu0 %v5359_v3  ;;  %v3513_v29 = vld [vmem:[#allocation2 + $0x16a8] sm:$0xff]  ;;  %v5375_v11 = vpack.c.bf16 %v3510_v0, %v3508_v8  ;;  %v5383_v3 = vpack.c.bf16 %v3518_v27, %v3516_v59  ;;  %v3534_v0 = vld [vmem:[#allocation2 + $0x1750] sm:$0xff]  ;;  %v3540_v59 = vld [vmem:[#allocation2 + $0x1780] sm:$0xff] }
 0xca2   :  { %5362 = vmatprep.subr.bf16.mxu0 %v5361_v23  ;;  %v5377_v47 = vpack.c.bf16 %v3515_v24, %v3513_v29  ;;  %v5385_v23 = vpack.c.bf16 %v3523_v33, %v3521_v5  ;;  %v3537_v29 = vld [vmem:[#allocation2 + $0x1768] sm:$0xff]  ;;  %v3539_v24 = vld [vmem:[#allocation2 + $0x1778] sm:$0xff]  ;;  %v3542_v27 = vld [vmem:[#allocation2 + $0x1790] sm:$0xff] }
 0xca3   :  { %5376 = vmatpush1.bf16.msra.mxu1 %v5375_v11  ;;  %v5399_v11 = vpack.c.bf16 %v3534_v0, %v3532_v48  ;;  %v3545_v5 = vld [vmem:[#allocation2 + $0x17a8] sm:$0xff]  ;;  %v3547_v33 = vld [vmem:[#allocation2 + $0x17b8] sm:$0xff] }
 0xca4   :  { %5378 = vmatprep.subr.bf16.mxu1 %v5377_v47  ;;  %v5401_v47 = vpack.c.bf16 %v3539_v24, %v3537_v29 }
 0xca5   :  { %5364 = vmatpush1.bf16.msra.mxu0 %v5363_v49  ;;  %v5387_v49 = vpack.c.bf16 %v3522_v50, %v3520_v41  ;;  %v3544_v41 = vld [vmem:[#allocation2 + $0x17a0] sm:$0xff]  ;;  %v3546_v50 = vld [vmem:[#allocation2 + $0x17b0] sm:$0xff] }
 0xca6   :  { %5366 = vmatprep.subr.bf16.mxu0 %v5365_v55  ;;  %v5389_v55 = vpack.c.bf16 %v3527_v39, %v3525_v61  ;;  %v3549_v61 = vld [vmem:[#allocation2 + $0x17c8] sm:$0xff]  ;;  %v3551_v39 = vld [vmem:[#allocation2 + $0x17d8] sm:$0xff] }
 0xca7   :  { %5380 = vmatpush1.bf16.msra.mxu1 %v5379_v15  ;;  %v5403_v15 = vpack.c.bf16 %v3538_v36, %v3536_v42  ;;  %v3553_v36 = vld [vmem:[#allocation2 + $0x17e8] sm:$0xff] }
 0xca8   :  { %5382 = vmatprep.subr.bf16.mxu1 %v5381_v58  ;;  %v5405_v58 = vpack.c.bf16 %v3543_v63, %v3541_v19  ;;  %v3555_v19 = vld [vmem:[#allocation2 + $0x17f8] sm:$0xff] }
 0xca9   :  { %5368 = vmatpush1.bf16.msra.mxu0 %v5367_v1  ;;  %v5391_v1 = vpack.c.bf16 %v3526_v20, %v3524_v14  ;;  %v5417_v63 = vpack.c.bf16 %v3555_v19, %v3553_v36  ;;  %v3909_v19 = vld [vmem:[#allocation2 + $0x18a0] sm:$0xff] }
 0xcaa   :  { %5370 = vmatprep.subr.bf16.mxu0 %v5369_v22  ;;  %v5393_v22 = vpack.c.bf16 %v3531_v52, %v3529_v21 }
 0xcab   :  { %5384 = vmatpush1.bf16.msra.mxu1 %v5383_v3  ;;  %v5407_v3 = vpack.c.bf16 %v3542_v27, %v3540_v59  ;;  %v3419_v27 = vld [vmem:[#allocation4 + $0x34] sm:$0x3] }
 0xcac   :  { %5386 = vmatprep.subr.bf16.mxu1 %v5385_v23  ;;  %v5409_v23 = vpack.c.bf16 %v3547_v33, %v3545_v5  ;;  %v3424_v5 = vrot.slane %v3419_v27, %v5762_v38  ;;  %v3428_v33 = vrot.slane %v3419_v27, %v5759_v35 }
 0xcad   :  { %5372 = vmatpush1.bf16.msra.mxu0 %v5371_v17  ;;  %v3533_v17 = vld [vmem:[#allocation2 + $0x1748] sm:$0xff] }
 0xcae   :  { %5422 = vmatprep.subr.bf16.mxu0 %v6167_v13  ;;  %v5397_v8 = vpack.c.bf16 %v3535_v28, %v3533_v17 }
 0xcaf   :  { %5388 = vmatpush1.bf16.msra.mxu1 %v5387_v49  ;;  %v5411_v49 = vpack.c.bf16 %v3546_v50, %v3544_v41 }
 0xcb0   :  { %5390 = vmatprep.subr.bf16.mxu1 %v5389_v55  ;;  %v5413_v55 = vpack.c.bf16 %v3551_v39, %v3549_v61 }
 0xcb3   :  { %5392 = vmatpush1.bf16.msra.mxu1 %v5391_v1  ;;  %v3184_v1 = vld [vmem:[#allocation4 + $0x2c] sm:$0x3] }
 0xcb4   :  { %5394 = vmatprep.subr.bf16.mxu1 %v5393_v22  ;;  %v3186_v22 = vld [vmem:[#allocation4 + $0x2e] sm:$0x3]  ;;  %v3347_v43 = vrot.slane %v3184_v1, %v5762_v38  ;;  %v3351_v17 = vrot.slane %v3184_v1, %v5759_v35 }
 0xcb5   :  { %v3364_v48 = vrot.slane %v3186_v22, %v5759_v35  ;;  %v3360_v29 = vrot.slane %v3186_v22, %v5762_v38  ;;  %v3899_v22 = vld [vmem:[#allocation2 + $0x1850] sm:$0xff] }
 0xcb7   :  { %5396 = vmatpush1.bf16.msra.mxu1 %v5395_v30 }
 0xcb8   :  { %5398 = vmatprep.subr.bf16.mxu1 %v5397_v8 }
 0xcbb   :  { %5400 = vmatpush1.bf16.msra.mxu1 %v5399_v11 }
 0xcbc   :  { %5402 = vmatprep.subr.bf16.mxu1 %v5401_v47 }
 0xcbf   :  { %5404 = vmatpush1.bf16.msra.mxu1 %v5403_v15  ;;  %v3552_v15 = vld [vmem:[#allocation2 + $0x17e0] sm:$0xff] }
 0xcc0   :  { %5406 = vmatprep.subr.bf16.mxu1 %v5405_v58  ;;  %v3554_v58 = vld [vmem:[#allocation2 + $0x17f0] sm:$0xff] }
 0xcc1   :  { %v5419_v59 = vpack.c.bf16 %v3554_v58, %v3552_v15  ;;  %v3914_v15 = vld [vmem:[#allocation2 + $0x18c8] sm:$0xff]  ;;  %v3916_v58 = vld [vmem:[#allocation2 + $0x18d8] sm:$0xff] }
 0xcc2   :  { %v5541_v27 = vpack.c.bf16 %v3916_v58, %v3914_v15 }
 0xcc3   :  { %5408 = vmatpush1.bf16.msra.mxu1 %v5407_v3 }
 0xcc4   :  { %5410 = vmatprep.subr.bf16.mxu1 %v5409_v23 }
 0xcc7   :  { %5412 = vmatpush1.bf16.msra.mxu1 %v5411_v49  ;;  %v3893_v49 = vld [vmem:[#allocation2 + $0x1820] sm:$0xff] }
 0xcc8   :  { %5414 = vmatprep.subr.bf16.mxu1 %v5413_v55  ;;  %v3895_v55 = vld [vmem:[#allocation2 + $0x1830] sm:$0xff] }
 0xd74   :  { %v3334_v14 = vpop.f32.mrb[20].mxu1 }
 0xd75   :  { %v3335_v20 = vadd.f32 1e-05, %v3334_v14  ;;  %v3336_v21 = vpop.f32.mrb[21].mxu1  ;;  %v5523_v14 = vpack.c.bf16 %v3895_v55, %v3893_v49  ;;  %v3933_v49 = vld [vmem:[#allocation2 + $0x1960] sm:$0xff]  ;;  %v3935_v55 = vld [vmem:[#allocation2 + $0x1970] sm:$0xff] }
 0xd76   :  { %v3337_v52 = vadd.f32 1e-05, %v3336_v21  ;;  %v3900_v21 = vld [vmem:[#allocation2 + $0x1858] sm:$0xff] }
 0xd77   :  { %5632 = vrsqrt.f32 %v3335_v20  ;;  %v3898_v20 = vld [vmem:[#allocation2 + $0x1848] sm:$0xff] }
 0xd78   :  { %5634 = vrsqrt.f32 %v3337_v52  ;;  %v3897_v52 = vld [vmem:[#allocation2 + $0x1840] sm:$0xff]  ;;  %v5525_v1 = vpack.c.bf16 %v3900_v21, %v3898_v20 }
 0xd81   :  { %v5633_v6 = vpop.eup %5632 }
 0xd82   :  { %v5635_v28 = vpop.eup %5634  ;;  %v3341_v30 = vmul.f32 %v5633_v6, %v6421_v54  ;;  %v3548_v54 = vld [vmem:[#allocation2 + $0x17c0] sm:$0xff]  ;;  %v3904_v6 = vld [vmem:[#allocation2 + $0x1878] sm:$0xff] }
 0xd83   :  { %v3342_v8 = vmul.f32 %v5635_v28, %v6424_v16  ;;  %v3550_v16 = vld [vmem:[#allocation2 + $0x17d0] sm:$0xff] }
 0xd84   :  { %v3354_v0 = vmul.f32 %v3347_v43, %v3341_v30  ;;  %v5415_v42 = vpack.c.bf16 %v3550_v16, %v3548_v54  ;;  %v3902_v43 = vld [vmem:[#allocation2 + $0x1868] sm:$0xff]  ;;  %v3901_v30 = vld [vmem:[#allocation2 + $0x1860] sm:$0xff]  ;;  %v3912_v16 = vld [vmem:[#allocation2 + $0x18b8] sm:$0xff] }
 0xd85   :  { %v3355_v24 = vmul.f32 %v3351_v17, %v3342_v8  ;;  %v5527_v17 = vpack.c.bf16 %v3899_v22, %v3897_v52  ;;  %v5529_v28 = vpack.c.bf16 %v3904_v6, %v3902_v43  ;;  %v3903_v8 = vld [vmem:[#allocation2 + $0x1870] sm:$0xff]  ;;  %v3910_v54 = vld [vmem:[#allocation2 + $0x18a8] sm:$0xff]  ;;  %v3832_v43 = vld [vmem:[#allocation4 + $0x38] sm:$0x3] }
 0xd86   :  { %v6440_v47 = vadd.f32 %v3360_v29, %v3354_v0  ;;  %5416 = vmatpush1.bf16.msra.mxu1 %v5415_v42  ;;  %v3908_v0 = vld [vmem:[#allocation2 + $0x1898] sm:$0xff]  ;;  %v5531_v29 = vpack.c.bf16 %v3903_v8, %v3901_v30  ;;  %v5537_v36 = vpack.c.bf16 %v3912_v16, %v3910_v54  ;;  %v3646_v22 = vld [vmem:[#allocation4 + $0x30] sm:$0x3]  ;;  %v3648_v6 = vld [vmem:[#allocation4 + $0x32] sm:$0x3] }
 0xd87   :  { %v6438_v11 = vadd.f32 %v3364_v48, %v3355_v24  ;;  %5418 = vmatprep.subr.bf16.mxu1 %v5417_v63  ;;  %v3906_v48 = vld [vmem:[#allocation2 + $0x1888] sm:$0xff]  ;;  %v3911_v63 = vld [vmem:[#allocation2 + $0x18b0] sm:$0xff]  ;;  %v3813_v8 = vrot.slane %v3646_v22, %v5759_v35 }
 0xd88   :  { %v5533_v24 = vpack.c.bf16 %v3908_v0, %v3906_v48 }
 0xd89   :  { %4072 = vmatprep.mubr.msk.f32.mxu0 %vm113_vm0, %v6438_v11 }
 0xd8a   :  { %3499 = vmatmul.mubr.f32.vlgmr.msra.gmra.mrb[26].mxu0 %v6440_v47  ;;  %5420 = vmatpush1.bf16.msra.mxu1 %v5419_v59  ;;  %v5539_v59 = vpack.c.bf16 %v3911_v63, %v3909_v19 }
 0xd8b   :  { %5424 = vmatpush1.bf16.msra.mxu0 %v6174_v56  ;;  %5470 = vmatprep.subr.bf16.mxu1 %v6167_v13  ;;  %v3557_v13 = vld [vmem:[#allocation4 + $0x36] sm:$0x3] }
 0xd8c   :  { %5426 = vmatprep.subr.bf16.mxu0 %v6178_v57 }
 0xd8f   :  { %5428 = vmatpush1.bf16.msra.mxu0 %v6186_v32 }
 0xd90   :  { %5430 = vmatprep.subr.bf16.mxu0 %v6190_v51 }
 0xd93   :  { %5432 = vmatpush1.bf16.msra.mxu0 %v6195_v26 }
 0xd94   :  { %5434 = vmatprep.subr.bf16.mxu0 %v6198_v60 }
 0xd97   :  { %5436 = vmatpush1.bf16.msra.mxu0 %v6203_v40 }
 0xd98   :  { %5438 = vmatprep.subr.bf16.mxu0 %v6206_v31 }
 0xd9b   :  { %5440 = vmatpush1.bf16.msra.mxu0 %v6211_v7 }
 0xd9c   :  { %5442 = vmatprep.subr.bf16.mxu0 %v6214_v10 }
 0xd9f   :  { %5444 = vmatpush1.bf16.msra.mxu0 %v6219_v53 }
 0xda0   :  { %5446 = vmatprep.subr.bf16.mxu0 %v6222_v44 }
 0xda3   :  { %5448 = vmatpush1.bf16.msra.mxu0 %v6227_v18 }
 0xda4   :  { %5450 = vmatprep.subr.bf16.mxu0 %v6230_v9 }
 0xda7   :  { %5452 = vmatpush1.bf16.msra.mxu0 %v6235_v37 }
 0xda8   :  { %5454 = vmatprep.subr.bf16.mxu0 %v6238_v46 }
 0xdab   :  { %5456 = vmatpush1.bf16.msra.mxu0 %v6243_v2 }
 0xdac   :  { %5458 = vmatprep.subr.bf16.mxu0 %v6246_v12 }
 0xdaf   :  { %5460 = vmatpush1.bf16.msra.mxu0 %v6251_v45 }
 0xdb0   :  { %5462 = vmatprep.subr.bf16.mxu0 %v6254_v4 }
 0xdb3   :  { %5464 = vmatpush1.bf16.msra.mxu0 %v6259_v62 }
 0xdb4   :  { %5466 = vmatprep.subr.bf16.mxu0 %v6264_v25 }
 0xdb7   :  { %5468 = vmatpush1.bf16.msra.mxu0 %v6269_v34 }
 0xe5d   :  { %v3500_v3 = vpop.f32.mrb[26].mxu0 }
 0xe5e   :  { %v3501_v23 = vadd.f32 %v3500_v3, %v3424_v5  ;;  %v3502_v41 = vpop.f32.mrb[27].mxu0  ;;  %v3913_v5 = vld [vmem:[#allocation2 + $0x18c0] sm:$0xff]  ;;  %v3918_v3 = vld [vmem:[#allocation2 + $0x18e8] sm:$0xff] }
 0xe5f   :  { %v3503_v50 = vadd.f32 %v3502_v41, %v3428_v33  ;;  %v3915_v33 = vld [vmem:[#allocation2 + $0x18d0] sm:$0xff] }
 0xe60   :  { %v3505_v39 = vmax.f32 %v3501_v23, 0.0  ;;  %v3920_v23 = vld [vmem:[#allocation2 + $0x18f8] sm:$0xff]  ;;  %v5543_v41 = vpack.c.bf16 %v3915_v33, %v3913_v5 }
 0xe61   :  { %v3506_v61 = vmax.f32 %v3503_v50, 0.0  ;;  %v5545_v50 = vpack.c.bf16 %v3920_v23, %v3918_v3  ;;  %v3834_v33 = vld [vmem:[#allocation4 + $0x3a] sm:$0x3] }
 0xe62   :  { %v3859_v3 = vsub.f32 1.0, %v3834_v33 }
 0xe63   :  { %4073 = vmatprep.mubr.msk.f32.mxu1 %vm113_vm0, %v3506_v61  ;;  %v3917_v61 = vld [vmem:[#allocation2 + $0x18e0] sm:$0xff] }
 0xe64   :  { %3637 = vmatmul.mubr.f32.vlgmr.msra.gmra.mrb[22].mxu1 %v3505_v39  ;;  %v3919_v39 = vld [vmem:[#allocation2 + $0x18f0] sm:$0xff]  ;;  %v3864_v23 = vrot.slane %v3859_v3, %v5762_v38 }
 0xe65   :  { %5472 = vmatpush1.bf16.msra.mxu1 %v6174_v56  ;;  %v3562_v56 = vrot.slane %v3557_v13, %v5762_v38 }
 0xe66   :  { %5474 = vmatprep.subr.bf16.mxu1 %v6178_v57  ;;  %v3566_v57 = vrot.slane %v3557_v13, %v5759_v35  ;;  %v3922_v13 = vld [vmem:[#allocation2 + $0x1908] sm:$0xff] }
 0xe69   :  { %5476 = vmatpush1.bf16.msra.mxu1 %v6186_v32 }
 0xe6a   :  { %5478 = vmatprep.subr.bf16.mxu1 %v6190_v51 }
 0xe6d   :  { %5480 = vmatpush1.bf16.msra.mxu1 %v6195_v26 }
 0xe6e   :  { %5482 = vmatprep.subr.bf16.mxu1 %v6198_v60 }
 0xe71   :  { %5484 = vmatpush1.bf16.msra.mxu1 %v6203_v40 }
 0xe72   :  { %5486 = vmatprep.subr.bf16.mxu1 %v6206_v31 }
 0xe75   :  { %5488 = vmatpush1.bf16.msra.mxu1 %v6211_v7 }
 0xe76   :  { %5490 = vmatprep.subr.bf16.mxu1 %v6214_v10 }
 0xe79   :  { %5492 = vmatpush1.bf16.msra.mxu1 %v6219_v53 }
 0xe7a   :  { %5494 = vmatprep.subr.bf16.mxu1 %v6222_v44 }
 0xe7d   :  { %5496 = vmatpush1.bf16.msra.mxu1 %v6227_v18 }
 0xe7e   :  { %5498 = vmatprep.subr.bf16.mxu1 %v6230_v9 }
 0xe81   :  { %5500 = vmatpush1.bf16.msra.mxu1 %v6235_v37  ;;  %v3890_v37 = vld [vmem:[#allocation2 + $0x1808] sm:$0xff] }
 0xe82   :  { %5502 = vmatprep.subr.bf16.mxu1 %v6238_v46  ;;  %v3892_v46 = vld [vmem:[#allocation2 + $0x1818] sm:$0xff] }
 0xe85   :  { %5504 = vmatpush1.bf16.msra.mxu1 %v6243_v2  ;;  %v5517_v2 = vpack.c.bf16 %v3892_v46, %v3890_v37  ;;  %v3932_v37 = vld [vmem:[#allocation2 + $0x1958] sm:$0xff] }
 0xe86   :  { %5506 = vmatprep.subr.bf16.mxu1 %v6246_v12  ;;  %v3889_v12 = vld [vmem:[#allocation2 + $0x1800] sm:$0xff] }
 0xe87   :  { %5518 = vmatprep.subr.bf16.mxu0 %v5517_v2 }
 0xe89   :  { %5508 = vmatpush1.bf16.msra.mxu1 %v6251_v45  ;;  %v3891_v45 = vld [vmem:[#allocation2 + $0x1810] sm:$0xff] }
 0xe8a   :  { %5510 = vmatprep.subr.bf16.mxu1 %v6254_v4  ;;  %v5519_v4 = vpack.c.bf16 %v3891_v45, %v3889_v12  ;;  %v3929_v12 = vld [vmem:[#allocation2 + $0x1940] sm:$0xff]  ;;  %v3931_v45 = vld [vmem:[#allocation2 + $0x1950] sm:$0xff] }
 0xe8d   :  { %5512 = vmatpush1.bf16.msra.mxu1 %v6259_v62  ;;  %v3894_v62 = vld [vmem:[#allocation2 + $0x1828] sm:$0xff] }
 0xe8e   :  { %5514 = vmatprep.subr.bf16.mxu1 %v6264_v25  ;;  %v3896_v25 = vld [vmem:[#allocation2 + $0x1838] sm:$0xff] }
 0xe91   :  { %5516 = vmatpush1.bf16.msra.mxu1 %v6269_v34  ;;  %v5521_v34 = vpack.c.bf16 %v3896_v25, %v3894_v62  ;;  %v3936_v62 = vld [vmem:[#allocation2 + $0x1978] sm:$0xff]  ;;  %v5559_v25 = vpack.c.bf16 %v3931_v45, %v3929_v12 }
 0xe92   :  { %v6551_v45 = vld [vmem:[#allocation8_spill] sm:$0xff] }
 0xf37   :  { %v3638_v32 = vpop.f32.mrb[22].mxu1 }
 0xf38   :  { %v3639_v51 = vadd.f32 %v3638_v32, %v3562_v56  ;;  %v3640_v26 = vpop.f32.mrb[23].mxu1  ;;  %v3924_v56 = vld [vmem:[#allocation2 + $0x1918] sm:$0xff] }
 0xf39   :  { %v3641_v60 = vadd.f32 %v3640_v26, %v3566_v57  ;;  %v5547_v57 = vpack.c.bf16 %v3919_v39, %v3917_v61  ;;  %v5549_v32 = vpack.c.bf16 %v3924_v56, %v3922_v13  ;;  %v3923_v26 = vld [vmem:[#allocation2 + $0x1910] sm:$0xff]  ;;  %v3881_v39 = vrot.slane %v3834_v33, %v5759_v35 }
 0xf3a   :  { %v3643_v31 = vadd.f32 %v3639_v51, %v6440_v47  ;;  %v3907_v47 = vld [vmem:[#allocation2 + $0x1890] sm:$0xff]  ;;  %v3921_v51 = vld [vmem:[#allocation2 + $0x1900] sm:$0xff] }
 0xf3b   :  { %v3644_v40 = vadd.f32 %v3641_v60, %v6438_v11  ;;  %v3905_v11 = vld [vmem:[#allocation2 + $0x1880] sm:$0xff]  ;;  %v3926_v60 = vld [vmem:[#allocation2 + $0x1928] sm:$0xff] }
 0xf3c   :  { %v5535_v42 = vpack.c.bf16 %v3907_v47, %v3905_v11  ;;  %v3826_v11 = vrot.slane %v3648_v6, %v5759_v35 }
 0xf3d   :  { %4074 = vmatprep.mubr.msk.f32.mxu0 %vm113_vm0, %v3644_v40 }
 0xf3e   :  { %3717 = vmatmul.mubr.f32.vlgmr.msra.gmra.mrb[28].mxu0 %v3643_v31 }
 0xf3f   :  { %5520 = vmatpush1.bf16.msra.mxu0 %v5519_v4  ;;  %v3934_v4 = vld [vmem:[#allocation2 + $0x1968] sm:$0xff] }
 0xf40   :  { %5522 = vmatprep.subr.bf16.mxu0 %v5521_v34  ;;  %v5561_v34 = vpack.c.bf16 %v3936_v62, %v3934_v4 }
 0xf43   :  { %5524 = vmatpush1.bf16.msra.mxu0 %v5523_v14  ;;  %v5563_v14 = vpack.c.bf16 %v3935_v55, %v3933_v49 }
 0xf44   :  { %5526 = vmatprep.subr.bf16.mxu0 %v5525_v1 }
 0xf47   :  { %5528 = vmatpush1.bf16.msra.mxu0 %v5527_v17  ;;  %v3835_v17 = vsub.f32 0.0, %v3832_v43 }
 0xf48   :  { %5530 = vmatprep.subr.bf16.mxu0 %v5529_v28  ;;  %v3809_v28 = vrot.slane %v3646_v22, %v5762_v38 }
 0xf49   :  { %v3840_v54 = vrot.slane %v3835_v17, %v5762_v38 }
 0xf4b   :  { %5532 = vmatpush1.bf16.msra.mxu0 %v5531_v29  ;;  %v3822_v29 = vrot.slane %v3648_v6, %v5762_v38 }
 0xf4c   :  { %5534 = vmatprep.subr.bf16.mxu0 %v5533_v24 }
 0xf4f   :  { %5536 = vmatpush1.bf16.msra.mxu0 %v5535_v42  ;;  %v3844_v42 = vrot.slane %v3835_v17, %v5759_v35 }
 0xf50   :  { %5538 = vmatprep.subr.bf16.mxu0 %v5537_v36 }
 0xf53   :  { %5540 = vmatpush1.bf16.msra.mxu0 %v5539_v59 }
 0xf54   :  { %5542 = vmatprep.subr.bf16.mxu0 %v5541_v27 }
 0xf57   :  { %5544 = vmatpush1.bf16.msra.mxu0 %v5543_v41  ;;  %v3868_v41 = vrot.slane %v3859_v3, %v5759_v35 }
 0xf58   :  { %5546 = vmatprep.subr.bf16.mxu0 %v5545_v50  ;;  %v3877_v50 = vrot.slane %v3834_v33, %v5762_v38 }
 0xf5b   :  { %5548 = vmatpush1.bf16.msra.mxu0 %v5547_v57 }
 0xf5c   :  { %5550 = vmatprep.subr.bf16.mxu0 %v5549_v32 }
0x1011   :  { %v3718_v7 = vpop.f32.mrb[28].mxu0 }
0x1012   :  { %v6500_v10 = vsub.f32 %v3643_v31, %v3718_v7  ;;  %v3720_v53 = vpop.f32.mrb[29].mxu0  ;;  %v5551_v31 = vpack.c.bf16 %v3923_v26, %v3921_v51 }
0x1013   :  { %v6502_v44 = vsub.f32 %v3644_v40, %v3720_v53  ;;  %v3928_v40 = vld [vmem:[#allocation2 + $0x1938] sm:$0xff]  ;;  %v3925_v53 = vld [vmem:[#allocation2 + $0x1920] sm:$0xff] }
0x1014   :  { %v3725_v9 = vmul.f32 %v6500_v10, %v6500_v10  ;;  %v5553_v7 = vpack.c.bf16 %v3928_v40, %v3926_v60  ;;  %5552 = vmatpush1.bf16.msra.mxu0 %v5551_v31  ;;  %v3938_v40 = vld [vmem:[#allocation4 + $0x3c] sm:$0x3]  ;;  %v5702_v31 = vmov 1983009808  }
0x1015   :  { %v3726_v18 = vmul.f32 %v6502_v44, %v6502_v44 }
0x1016   :  { %5554 = vmatprep.subr.bf16.mxu0 %v5553_v7  ;;  %v4028_v7 = vunpack.c.l.s4 %v5702_v31 }
0x1017   :  { %4075 = vmatprep.mubr.msk.f32.mxu1 %vm113_vm0, %v3726_v18  ;;  %v3927_v18 = vld [vmem:[#allocation2 + $0x1930] sm:$0xff] }
0x1018   :  { %3795 = vmatmul.mubr.f32.vlgmr.msra.gmra.mrb[24].mxu1 %v3725_v9  ;;  %v3930_v9 = vld [vmem:[#allocation2 + $0x1948] sm:$0xff]  ;;  %v5555_v46 = vpack.c.bf16 %v3927_v18, %v3925_v53  ;;  %v3943_v53 = vrot.slane %v3938_v40, %v5762_v38  ;;  %v3947_v18 = vrot.slane %v3938_v40, %v5759_v35 }
0x1019   :  { %v5557_v2 = vpack.c.bf16 %v3932_v37, %v3930_v9  ;;  %v4029_v9 = vunpack.c.0.s8 %v4028_v7 }
0x101a   :  { %5556 = vmatpush1.bf16.msra.mxu0 %v5555_v46 }
0x101b   :  { %5558 = vmatprep.subr.bf16.mxu0 %v5557_v2  ;;  %v4032_v4 = vsub.s32 %v4029_v9, %v6551_v45 }
0x101e   :  { %5560 = vmatpush1.bf16.msra.mxu0 %v5559_v25 }
0x101f   :  { %5562 = vmatprep.subr.bf16.mxu0 %v5561_v34 }
0x1022   :  { %5564 = vmatpush1.bf16.msra.mxu0 %v5563_v14 }
0x10eb   :  { %v3796_v20 = vpop.f32.mrb[24].mxu1 }
0x10ec   :  { %v3797_v21 = vadd.f32 1e-05, %v3796_v20  ;;  %v3798_v52 = vpop.f32.mrb[25].mxu1 }
0x10ed   :  { %v3799_v1 = vadd.f32 1e-05, %v3798_v52 }
0x10ee   :  { %5636 = vrsqrt.f32 %v3797_v21 }
0x10ef   :  { %5638 = vrsqrt.f32 %v3799_v1 }
0x10f8   :  { %v5637_v30 = vpop.eup %5636 }
0x10f9   :  { %v5639_v48 = vpop.eup %5638  ;;  %v3803_v0 = vmul.f32 %v5637_v30, %v6500_v10 }
0x10fa   :  { %v3804_v24 = vmul.f32 %v5639_v48, %v6502_v44 }
0x10fb   :  { %v3816_v47 = vmul.f32 %v3809_v28, %v3803_v0 }
0x10fc   :  { %v3817_v16 = vmul.f32 %v3813_v8, %v3804_v24 }
0x10fd   :  { %v3829_v36 = vadd.f32 %v3822_v29, %v3816_v47 }
0x10fe   :  { %v3830_v19 = vadd.f32 %v3826_v11, %v3817_v16 }
0x10ff   :  { %v3847_v63 = vmul.f32 %v3840_v54, %v3829_v36 }
0x1100   :  { %v3848_v15 = vmul.f32 %v3844_v42, %v3830_v19 }
0x1101   :  { %v3849_v58 = vmul.f32 1.442695, %v3847_v63 }
0x1102   :  { %v3851_v59 = vmul.f32 1.442695, %v3848_v15 }
0x1103   :  { %5640 = vpow2.f32 %v3849_v58 }
0x1104   :  { %5642 = vpow2.f32 %v3851_v59 }
0x110d   :  { %v5641_v10 = vpop.eup %5640 }
0x110e   :  { %v5643_v27 = vpop.eup %5642  ;;  %v3853_v5 = vadd.f32 1.0, %v5641_v10 }
0x110f   :  { %v3854_v44 = vadd.f32 1.0, %v5643_v27 }
0x1110   :  { %5644 = vrcp.f32 %v3853_v5 }
0x1111   :  { %5646 = vrcp.f32 %v3854_v44 }
0x111a   :  { %v5645_v61 = vpop.eup %5644 }
0x111b   :  { %v5647_v13 = vpop.eup %5646  ;;  %v3871_v56 = vmul.f32 %v5645_v61, %v3864_v23 }
0x111c   :  { %v3872_v57 = vmul.f32 %v5647_v13, %v3868_v41 }
0x111d   :  { %v3884_v32 = vadd.f32 %v3877_v50, %v3871_v56 }
0x111e   :  { %v3885_v51 = vadd.f32 %v3881_v39, %v3872_v57 }
0x111f   :  { %v3886_v60 = vmul.f32 %v3884_v32, %v3829_v36 }
0x1120   :  { %v3887_v26 = vmul.f32 %v3885_v51, %v3830_v19 }
0x1122   :  { %4076 = vmatprep.mubr.msk.f32.mxu0 %vm113_vm0, %v3887_v26 }
0x1123   :  { %4018 = vmatmul.mubr.f32.vlgmr.msra.gmra.mrb[30].mxu0 %v3886_v60 }
0x11f6   :  { %v4019_v37 = vpop.f32.mrb[30].mxu0 }
0x11f7   :  { %v4020_v46 = vadd.f32 %v4019_v37, %v3943_v53  ;;  %v4021_v2 = vpop.f32.mrb[31].mxu0 }
0x11f8   :  { %v4022_v12 = vadd.f32 %v4021_v2, %v3947_v18 }
0x11fa   :  { %v4026_v62 = vcombine.low %v4020_v46, %v4022_v12 }
0x11fc   :  { %v4033_v25 = vrot.slane %v4026_v62, %v4032_v4 }
0x11fe   :  { %4038 = vst.msk [vmem:[%s6531_s3] sm:$0xf] %vm4037_vm3, %v4033_v25 }
0x11ff   :  { %4043 = vsyncpa [#allocation3], 1 }
0x1200   :  { %4044 = vsyncpa [#allocation5], 1 }

</bundles_post_ra>
